<compile_context>
chip_gen: v6e
topology: v6e:2x2x1
jax: 0.10.0
libtpu: 0.0.40
codegen_flags: <defaults>
</compile_context>

<pallas_src>
import functools
import math

import jax
import jax.numpy as jnp
from jax import lax
from jax.experimental import pallas as pl
from jax.experimental.pallas import tpu as pltpu


def _pick_block(dim, target, align):
    """Largest block <= target that is a multiple of `align` and divides `dim`.
    Falls back to the full dim (block == array extent is always legal)."""
    if dim <= target:
        return dim
    t = (min(target, dim) // align) * align
    while t >= align:
        if dim % t == 0:
            return t
        t -= align
    return dim


# --------------------------------------------------------------------------- #
# Linear: y = x @ W + b
# --------------------------------------------------------------------------- #
_RESIDENT_VMEM_BUDGET = 24 * 1024 * 1024   # leaves headroom under the 32 MiB scoped
_VMEM_LIMIT_BYTES = 32 * 1024 * 1024       # >= every generation's scoped default


def _linear_resident_kernel(x_ref, w_ref, b_ref, o_ref):
    x = x_ref[...]
    w = w_ref[...]
    if x.dtype != w.dtype:
        x = x.astype(w.dtype)            # cast absorbed into the tile (no HBM pass)
    acc = jnp.dot(x, w, preferred_element_type=jnp.float32)
    o_ref[...] = (acc + b_ref[...].astype(jnp.float32)).astype(o_ref.dtype)


def _linear_tiled_kernel(x_ref, w_ref, b_ref, o_ref, acc_ref):
    k = pl.program_id(2)

    @pl.when(k == 0)
    def _init():
        acc_ref[...] = jnp.zeros_like(acc_ref)

    x = x_ref[...]
    w = w_ref[...]
    if x.dtype != w.dtype:
        x = x.astype(w.dtype)
    acc_ref[...] += jnp.dot(x, w, preferred_element_type=jnp.float32)

    @pl.when(k == pl.num_programs(2) - 1)
    def _finalize():
        o_ref[...] = (acc_ref[...] + b_ref[...].astype(jnp.float32)
                      ).astype(o_ref.dtype)


def pallas_linear(x2d, w, b, *, out_dtype=None, bm_target=512):
    """y = x2d @ w + b. Resident-weight 1-D grid when it fits VMEM, else tiled."""
    M, K = x2d.shape
    K2, N = w.shape
    assert K == K2 and b.shape == (N,)
    out_dtype = x2d.dtype if out_dtype is None else out_dtype
    b2d = b.reshape(1, N)

    bm = _pick_block(M, bm_target, 16)
    xi = jnp.dtype(x2d.dtype).itemsize
    wi = jnp.dtype(w.dtype).itemsize
    oi = jnp.dtype(out_dtype).itemsize
    cost = pl.CostEstimate(
        flops=2 * M * N * K, transcendentals=0,
        bytes_accessed=M * K * xi + K * N * wi + M * N * oi)

    # Footprint with BlockSpec double-buffering (bias padded to 8 sublanes).
    resident_bytes = 2 * (bm * K * xi + K * N * wi + 8 * N * 4 + bm * N * oi)
    if resident_bytes <= _RESIDENT_VMEM_BUDGET:
        return pl.pallas_call(
            _linear_resident_kernel,
            out_shape=jax.ShapeDtypeStruct((M, N), out_dtype),
            grid=(M // bm,),
            in_specs=[
                pl.BlockSpec((bm, K), lambda i: (i, 0)),
                pl.BlockSpec((K, N), lambda i: (0, 0)),   # weight stays VMEM-resident
                pl.BlockSpec((1, N), lambda i: (0, 0)),
            ],
            out_specs=pl.BlockSpec((bm, N), lambda i: (i, 0)),
            compiler_params=pltpu.CompilerParams(
                dimension_semantics=("parallel",),
                vmem_limit_bytes=_VMEM_LIMIT_BYTES),
            cost_estimate=cost,
        )(x2d, w, b2d)

    # Fallback: K-reduction tiling with an f32 VMEM accumulator.
    bn = _pick_block(N, 256, 128)
    bk = _pick_block(K, 512, 128)
    return pl.pallas_call(
        _linear_tiled_kernel,
        out_shape=jax.ShapeDtypeStruct((M, N), out_dtype),
        grid=(M // bm, N // bn, K // bk),
        in_specs=[
            pl.BlockSpec((bm, bk), lambda i, j, k: (i, k)),
            pl.BlockSpec((bk, bn), lambda i, j, k: (k, j)),
            pl.BlockSpec((1, bn), lambda i, j, k: (0, j)),
        ],
        out_specs=pl.BlockSpec((bm, bn), lambda i, j, k: (i, j)),
        scratch_shapes=[pltpu.VMEM((bm, bn), jnp.float32)],
        compiler_params=pltpu.CompilerParams(
            dimension_semantics=("parallel", "parallel", "arbitrary")),
        cost_estimate=cost,
    )(x2d, w, b2d)


# --------------------------------------------------------------------------- #
# Flash attention (causal): lower-triangular pair enumeration, packed heads
# --------------------------------------------------------------------------- #
def _flash_attn_kernel(qi_ref, ki_ref, q_ref, k_ref, v_ref, o_ref,
                       m_sc, l_sc, acc_sc, *, g_heads, head_dim):
    p = pl.program_id(1)
    qi = qi_ref[p]
    ki = ki_ref[p]

    @pl.when(ki == 0)
    def _init():
        m_sc[...] = jnp.full(m_sc.shape, -jnp.inf, dtype=m_sc.dtype)
        l_sc[...] = jnp.zeros(l_sc.shape, dtype=l_sc.dtype)
        acc_sc[...] = jnp.zeros(acc_sc.shape, dtype=acc_sc.dtype)

    def _update(masked):
        # 1/sqrt(D) is pre-folded into the Q weights, so no per-step scaling here.
        for g in range(g_heads):
            lo, hi = g * head_dim, (g + 1) * head_dim
            q = q_ref[:, lo:hi]
            k = k_ref[:, lo:hi]
            s = lax.dot_general(q, k, (((1,), (1,)), ((), ())),
                                preferred_element_type=jnp.float32)
            if masked:      # only the diagonal block pays the iota/compare/select
                r = lax.broadcasted_iota(jnp.int32, s.shape, 0)
                c = lax.broadcasted_iota(jnp.int32, s.shape, 1)
                s = jnp.where(c <= r, s, -jnp.inf)
            m_prev = m_sc[g]
            m_new = jnp.maximum(m_prev, jnp.max(s, axis=-1, keepdims=True))
            alpha = jnp.exp(m_prev - m_new)
            # TODO(synk): on v6e, computing pm/row-sum in bf16 (~2x EUP) is possible.
            pm = jnp.exp(s - m_new)
            l_sc[g] = alpha * l_sc[g] + jnp.sum(pm, axis=-1, keepdims=True)
            acc_sc[g] = alpha * acc_sc[g] + jnp.dot(
                pm.astype(v_ref.dtype), v_ref[:, lo:hi],
                preferred_element_type=jnp.float32)
            m_sc[g] = m_new

    @pl.when(ki < qi)          # interior block: fully visible, mask-free path
    def _interior():
        _update(masked=False)

    @pl.when(ki == qi)         # diagonal block: masked update + finalize (last step)
    def _diag_and_finalize():
        _update(masked=True)
        outs = [acc_sc[g] * pl.reciprocal(l_sc[g], approx=True)
                for g in range(g_heads)]
        out = outs[0] if g_heads == 1 else jnp.concatenate(outs, axis=-1)
        o_ref[...] = out.astype(o_ref.dtype)


def pallas_flash_attention(qkv, n_head, *, block_q=256):
    """Causal SDPA reading q/k/v straight from the packed (B, T, 3C) slab and writing
    a lane-dense (B, T, C) slab; heads are grouped so every block is 128-lane dense."""
    B, T, C3 = qkv.shape
    C = C3 // 3
    H = n_head
    D = C // H

    # Pack G heads per grid step so the column-block width W = G*D is a multiple of
    # 128 (lane-dense loads/stores, no (B,H,T,D) transposes).
    G = 1 if D % 128 == 0 else math.lcm(D, 128) // D
    if H % G != 0:
        # TODO(synk): support head dims whose lane-packing group does not divide n_head.
        raise NotImplementedError(f"unsupported head_dim={D} with n_head={H}")
    W = G * D
    HG = H // G

    blk = _pick_block(T, block_q, 16)      # bf16 packs 16 rows per sublane group
    nq = T // blk
    # Enumerate only lower-triangular (qi, ki) pairs -> no dead grid steps.
    pair_list = [(q, k) for q in range(nq) for k in range(q + 1)]
    qi_tbl = jnp.asarray([p[0] for p in pair_list], dtype=jnp.int32)
    ki_tbl = jnp.asarray([p[1] for p in pair_list], dtype=jnp.int32)
    n_pairs = len(pair_list)

    def q_map(g, p, qi_t, ki_t):
        return (g // HG, qi_t[p], g % HG)

    def k_map(g, p, qi_t, ki_t):
        return (g // HG, ki_t[p], HG + g % HG)

    def v_map(g, p, qi_t, ki_t):
        return (g // HG, ki_t[p], 2 * HG + g % HG)

    def o_map(g, p, qi_t, ki_t):
        return (g // HG, qi_t[p], g % HG)

    itemsize = jnp.dtype(qkv.dtype).itemsize
    cost = pl.CostEstimate(
        flops=2 * B * H * T * T * D,               # causal: half of dense 4*B*H*T*T*D
        transcendentals=B * H * T * T // 2,
        bytes_accessed=(B * T * 3 * C + B * T * C) * itemsize)

    grid_spec = pltpu.PrefetchScalarGridSpec(
        num_scalar_prefetch=2,
        grid=(B * HG, n_pairs),                    # leading parallel axis = B*HG (megacore)
        in_specs=[
            pl.BlockSpec((None, blk, W), q_map),
            pl.BlockSpec((None, blk, W), k_map),
            pl.BlockSpec((None, blk, W), v_map),
        ],
        out_specs=pl.BlockSpec((None, blk, W), o_map),
        scratch_shapes=[
            pltpu.VMEM((G, blk, 1), jnp.float32),   # m
            pltpu.VMEM((G, blk, 1), jnp.float32),   # l
            pltpu.VMEM((G, blk, D), jnp.float32),   # acc
        ])

    kernel = functools.partial(_flash_attn_kernel, g_heads=G, head_dim=D)
    return pl.pallas_call(
        kernel,
        out_shape=jax.ShapeDtypeStruct((B, T, C), qkv.dtype),
        grid_spec=grid_spec,
        compiler_params=pltpu.CompilerParams(
            dimension_semantics=("parallel", "arbitrary")),
        cost_estimate=cost,
    )(qi_tbl, ki_tbl, qkv, qkv, qkv)


# --------------------------------------------------------------------------- #
# Module wrapper
# --------------------------------------------------------------------------- #
class CausalSelfAttentionPallas:
    """Pallas-TPU forward for nanoGPT CausalSelfAttention.

    Original weights kept in f32 (reference semantics); bf16 copies with 1/sqrt(D)
    folded into the Q columns are cached once at __init__ for the kernels. Matmuls run
    in bf16 with f32 accumulation; softmax statistics in f32; final output f32.
    """

    def __init__(self, n_embd, n_head, key, compute_dtype=jnp.bfloat16):
        assert n_embd % n_head == 0
        self.n_embd = n_embd
        self.n_head = n_head
        self.head_dim = n_embd // n_head
        self.compute_dtype = compute_dtype
        k1, k2, k3, k4 = jax.random.split(key, 4)
        bound = 1.0 / math.sqrt(n_embd)
        self.w_attn = jax.random.uniform(k1, (n_embd, 3 * n_embd), jnp.float32, -bound, bound)
        self.b_attn = jax.random.uniform(k2, (3 * n_embd,), jnp.float32, -bound, bound)
        self.w_proj = jax.random.uniform(k3, (n_embd, n_embd), jnp.float32, -bound, bound)
        self.b_proj = jax.random.uniform(k4, (n_embd,), jnp.float32, -bound, bound)

        # Cached kernel-side parameters: bf16 weights, attention scale folded into Q.
        scale = 1.0 / math.sqrt(self.head_dim)
        col_scale = jnp.concatenate([
            jnp.full((n_embd,), scale, jnp.float32),
            jnp.ones((2 * n_embd,), jnp.float32)])
        self.w_attn_c = (self.w_attn * col_scale[None, :]).astype(compute_dtype)
        self.b_attn_c = self.b_attn * col_scale            # bias added in f32 in-kernel
        self.w_proj_c = self.w_proj.astype(compute_dtype)
        self.b_proj_c = self.b_proj

    def __call__(self, x, attn_block=256):
        B, T, C = x.shape
        # c_attn: x stays f32 in HBM; the kernel casts the tile to bf16 on load.
        qkv = pallas_linear(x.reshape(B * T, C), self.w_attn_c, self.b_attn_c,
                            out_dtype=self.compute_dtype)
        qkv = qkv.reshape(B, T, 3 * C)
        # Causal flash attention straight off the packed QKV slab -> (B, T, C).
        y = pallas_flash_attention(qkv, self.n_head, block_q=attn_block)
        # c_proj
        out = pallas_linear(y.reshape(B * T, C), self.w_proj_c, self.b_proj_c,
                            out_dtype=jnp.float32)
        return out.reshape(B, T, C)


# Pure-JAX f32 reference for correctness checking (original module semantics).
def reference_forward(mod, x):
    B, T, C = x.shape
    H, D = mod.n_head, C // mod.n_head
    qkv = x @ mod.w_attn + mod.b_attn
    q, k, v = jnp.split(qkv, 3, axis=2)
    q = q.reshape(B, T, H, D).transpose(0, 2, 1, 3)
    k = k.reshape(B, T, H, D).transpose(0, 2, 1, 3)
    v = v.reshape(B, T, H, D).transpose(0, 2, 1, 3)
    s = jnp.einsum("bhqd,bhkd->bhqk", q, k) / math.sqrt(D)
    mask = jnp.tril(jnp.ones((T, T), dtype=bool))
    s = jnp.where(mask, s, -jnp.inf)
    p = jax.nn.softmax(s, axis=-1)
    y = jnp.einsum("bhqk,bhkd->bhqd", p, v)
    y = y.transpose(0, 2, 1, 3).reshape(B, T, C)
    return y @ mod.w_proj + mod.b_proj


def _check(batch, seq, n_embd, n_head, key, attn_block=256):
    k_param, k_x = jax.random.split(key)
    mod = CausalSelfAttentionPallas(n_embd, n_head, k_param)
    x = jax.random.normal(k_x, (batch, seq, n_embd), dtype=jnp.float32)
    y = jax.block_until_ready(mod(x, attn_block=attn_block))
    assert y.shape == (batch, seq, n_embd)
    y_ref = reference_forward(mod, x)
    err = float(jnp.max(jnp.abs(y - y_ref)))
    # bf16 matmul inputs with f32 accumulation -> loosened tolerance vs f32 ref.
    assert jnp.allclose(y, y_ref, atol=5e-2, rtol=5e-2), (
        f"mismatch vs reference (max abs err {err:.4f})")


if __name__ == "__main__":
    root = jax.random.PRNGKey(0)
    k1, k2 = jax.random.split(root)
    # head_dim = 128 (G=1): single-head column blocks, 2 q-blocks -> 3 causal pairs.
    _check(batch=2, seq=512, n_embd=256, n_head=2, key=k1, attn_block=256)
    # head_dim = 64 (GPT-2 style, G=2 heads packed per step), multi-block causal path.
    _check(batch=2, seq=256, n_embd=256, n_head=4, key=k2, attn_block=128)
    print("KERNEL_OK")
</pallas_src>

<mosaic_0001>
module attributes {stable_mosaic.version = 11 : i64} {
  func.func @_linear_resident_kernel(%arg0: i32, %arg1: memref<512x256xf32, #tpu.memory_space<vmem>>, %arg2: memref<256x768xbf16, #tpu.memory_space<vmem>>, %arg3: memref<1x768xf32, #tpu.memory_space<vmem>>, %arg4: memref<512x768xbf16, #tpu.memory_space<vmem>>) attributes {dimension_semantics = [#tpu.dimension_semantics<parallel>], iteration_bounds = array<i64: 2>, scalar_prefetch = 0 : i64, scratch_operands = 0 : i64, tpu.core_type = #tpu.core_type<tc>, window_params = [{transform_indices = @transform_0, window_bounds = array<i64: 512, 256>}, {pipeline_mode = #tpu.pipeline_mode<synchronous>, transform_indices = @transform_1, window_bounds = array<i64: 256, 768>}, {pipeline_mode = #tpu.pipeline_mode<synchronous>, transform_indices = @transform_2, window_bounds = array<i64: 1, 768>}, {transform_indices = @transform_3, window_bounds = array<i64: 512, 768>}]} {
    %c0 = arith.constant 0 : index
    %c0_0 = arith.constant 0 : index
    %0 = vector.load %arg1[%c0, %c0_0] : memref<512x256xf32, #tpu.memory_space<vmem>>, vector<512x256xf32>
    %c0_1 = arith.constant 0 : index
    %c0_2 = arith.constant 0 : index
    %1 = vector.load %arg2[%c0_1, %c0_2] : memref<256x768xbf16, #tpu.memory_space<vmem>>, vector<256x768xbf16>
    %2 = arith.truncf %0 : vector<512x256xf32> to vector<512x256xbf16>
    %cst = arith.constant dense<0.000000e+00> : vector<512x768xf32>
    %3 = tpu.matmul %2, %1, %cst {dimension_numbers = #tpu.dot_dimension_numbers<[1], [0], [0], [1], [0, 0, 1, 1], [], []>} : vector<512x256xbf16>, vector<256x768xbf16>, vector<512x768xf32> -> vector<512x768xf32>
    %c0_3 = arith.constant 0 : index
    %c0_4 = arith.constant 0 : index
    %4 = vector.load %arg3[%c0_3, %c0_4] : memref<1x768xf32, #tpu.memory_space<vmem>>, vector<1x768xf32>
    %5 = vector.broadcast %4 : vector<1x768xf32> to vector<512x768xf32>
    %6 = arith.addf %3, %5 : vector<512x768xf32>
    %7 = arith.truncf %6 : vector<512x768xf32> to vector<512x768xbf16>
    %c0_5 = arith.constant 0 : index
    %c0_6 = arith.constant 0 : index
    %8 = vector.load %arg4[%c0_5, %c0_6] : memref<512x768xbf16, #tpu.memory_space<vmem>>, vector<512x768xbf16>
    tpu.vector_store %arg4[%c0_5, %c0_6], %7 {strides = array<i32>} : memref<512x768xbf16, #tpu.memory_space<vmem>>, vector<512x768xbf16>,
    return
  }
  func.func @transform_0(%arg0: i32) -> (i32, i32) {
    %c0_i32 = arith.constant 0 : i32
    %c0_i32_0 = arith.constant 0 : i32
    return %arg0, %c0_i32 : i32, i32
  }
  func.func @transform_1(%arg0: i32) -> (i32, i32) {
    %c0_i32 = arith.constant 0 : i32
    %c0_i32_0 = arith.constant 0 : i32
    %c0_i32_1 = arith.constant 0 : i32
    return %c0_i32, %c0_i32_0 : i32, i32
  }
  func.func @transform_2(%arg0: i32) -> (i32, i32) {
    %c0_i32 = arith.constant 0 : i32
    %c0_i32_0 = arith.constant 0 : i32
    %c0_i32_1 = arith.constant 0 : i32
    return %c0_i32, %c0_i32_0 : i32, i32
  }
  func.func @transform_3(%arg0: i32) -> (i32, i32) {
    %c0_i32 = arith.constant 0 : i32
    %c0_i32_0 = arith.constant 0 : i32
    return %arg0, %c0_i32 : i32, i32
  }
}

</mosaic_0001>

<bundles_post_ra>
// kernel: tpu_custom_call.1
= control target key start
LH: loop header
LB: loop body
LE: loop exit
PB: predicated region body
PF: predicated region fallthrough
CT: control target
= control target key end

     0   :  { %8 = vsyncpa [#allocation3], 0  ;;  %s5706_s0 = inlined_call_operand.hbm [shape: f32[1024,256], index: 0, kind: input, shape index: {}]   ;;  %s5707_s1 = inlined_call_operand.hbm [shape: bf16[256,768], index: 1, kind: input, shape index: {}]   ;;  %s5708_s2 = inlined_call_operand.hbm [shape: f32[1,768], index: 2, kind: input, shape index: {}]   ;;  %s5709_s3 = inlined_call_operand.hbm [shape: bf16[1024,768], index: 3, kind: output, shape index: {}]  }
   0x1   :  { %10 = vsyncpa [#allocation3 + $0x1], 0 }
   0x2   :  { %11 = vsyncpa [#allocation6], 0 }
   0x3   :  { %12 = vsyncpa [#allocation4], 0 }
   0x4   :  { %14 = vsyncpa [#allocation4 + $0x1], 0  ;;  %s4460_s12 = smov 0   ;;  %s4462_s13 = smov 0  }
   0x5   :  { %s4464_s14 = smov 0   ;;  %s4466_s15 = smov 0  }
   0x6 LB: > { %s4481_s16 = sadd.s32 4294967295, %s4428_s15   ;;  %s3529_s17 = sadd.s32 4294967294, %s4428_s15   ;;  %s4428_s15 = sphi %s4466_s15, %s5771_s15   ;;  %s4424_s14 = sphi %s4464_s14, %s5770_s14   ;;  %s4420_s13 = sphi %s4462_s13, %s5769_s13   ;;  %s4416_s12 = sphi %s4460_s12, %s5768_s12  }
   0x7   : > { %p40_p0 = scmp.ne.s32.totalorder %s4420_s13, %s4416_s12  ;;  %p5710_p1 = scmp.eq.s32.totalorder %s4481_s16, 0 }
   0x8   : > { %p112_p3 = scmp.eq.s32.totalorder %s3529_s17, 1  ;;  %p3530_p5 = scmp.ge.s32.totalorder %s4428_s15, 1 }
   0x9   : > { %p4490_p4 = por %p5710_p1, %p40_p0  ;;  %p119_p7 = scmp.lt.s32.totalorder %s4428_s15, 3 }
   0xa   : > { %p4495_p6 = por %p112_p3, %p40_p0  ;;  %s4430_s21 = smov [#allocation5]  }
   0xb   : > { %s5734_s18 = scalar_select %p4490_p4, 1, 0 }
   0xc   : > { %s5735_s19 = scalar_select %p4495_p6, 1, 0 }
   0xd   : > { %p4500_p8 = pnand %p3530_p5, %p119_p7  ;;  %s131_s22 = sshll.u32 %s4430_s21, 4  ;;  %s132_s22 = int_to_ptr.vmem [resolvable:$true] %s131_s22 }
   0xe   : > { %s4431_s24 = smov [#allocation7]   ;;  %s4291_s26 = scalar_lea.vmem %s132_s22, 12288 }
   0xf   : > { %s5736_s20 = scalar_select %p4500_p8, 1, 0 }
  0x10   : > { %p4075_p9 = pneg %p4500_p8  ;;  %s145_s25 = sshll.u32 %s4431_s24, 4  ;;  %s146_s25 = int_to_ptr.vmem [resolvable:$true] %s145_s25 }
  0x11   : > { %p4292_p13 = scmp.ne.s32.totalorder %s132_s22, %s4291_s26  ;;  %p4299_p5 = scmp.lt.s32.totalorder %s132_s22, %s132_s22 }
  0x12   : > { %p4509_p11 = pnand %p4075_p9, %p5710_p1  ;;  %p4300_p7 = scmp.lt.s32.totalorder %s4291_s26, %s4291_s26 }
  0x14   : > { %p4282_p12 = pneg %p4509_p11  ;;  %p4301_p10 = por %p4300_p7, %p4299_p5 }
  0x16   : > { %p4294_p0 = pnand %p4292_p13, %p4282_p12 }
  0x18   : > { %p4295_p3 = pneg %p4294_p0 }
  0x1a   : > { %p4302_p9 = pnand %p4301_p10, %p4295_p3 }
  0x1c   : > { %4305 = shalt.err (!%p4302_p9)
}
  0x1d   : > { %s4432_s27 = smov 384   ;;  %s4433_s28 = smov 24  }
  0x1e   : > { %4078 = dma.hbm_to_vmem [thread:$0]  (!%p4509_p11), %s5707_s1, 12288, %s132_s22, [#allocation6], %s4432_s27, %s4432_s27, %s4433_s28  }
  0x1f   : > { %s4317_s4 = scalar_lea.vmem %s146_s25, 96  ;;  %p4325_p2 = scmp.lt.s32.totalorder %s146_s25, %s146_s25 }
  0x20   : > { %p4318_p1 = scmp.ne.s32.totalorder %s146_s25, %s4317_s4  ;;  %p4326_p6 = scmp.lt.s32.totalorder %s4317_s4, %s4317_s4 }
  0x22   : > { %p4320_p13 = pnand %p4318_p1, %p4282_p12  ;;  %p4327_p5 = por %p4326_p6, %p4325_p2 }
  0x24   : > { %p4321_p0 = pneg %p4320_p13 }
  0x26   : > { %p4328_p10 = pnand %p4327_p5, %p4321_p0 }
  0x28   : > { %4331 = shalt.err (!%p4328_p10)
}
  0x29   : > { %4081 = dma.hbm_to_vmem [thread:$0]  (!%p4509_p11), %s5708_s2, 96, %s146_s25, [#allocation6]  }
  0x2a   : > { %s4532_s7 = sadd.s32 1, %s4428_s15   ;;  %s27_s8 = sadd.s32 1, %s4424_s14 }
  0x2b   : > { %s24_s9 = ssub.s32 %s4428_s15, %s4532_s7  ;;  %p34_p1 = scmp.ne.s32.totalorder %s4424_s14, %s4420_s13 }
  0x2c   : > { %p25_p2 = scmp.eq.s32.totalorder %s24_s9, 0  ;;  %p35_p6 = scmp.eq.s32.totalorder %s4428_s15, 0 }
  0x2d   : > { %p5738_p12 = scmp.eq.s32.totalorder %s4481_s16, 1  ;;  %p4092_p7 = scmp.lt.s32.totalorder %s4428_s15, 2 }
  0x2e   : > { %s4548_s11 = scalar_select %p25_p2, %s4424_s14, %s27_s8  }
  0x2f   : > { %p4542_p3 = por %p5738_p12, %p34_p1  ;;  %p36_p9 = por %p35_p6, %p34_p1 }
  0x30   : > { %s156_s17 = sand.u32 1, %s4424_s14   ;;  %s3836_s22 = sshll.u32 %s4428_s15, 14 }
  0x31   : > { %s5739_s10 = scalar_select %p4542_p3, 1, 0 }
  0x32   : > { %s3534_s21 = sshll.u32 %s156_s17, 10  ;;  %s4555_s25 = scalar_lea.hbm %s5706_s0, %s3836_s22 }
  0x33   : > { %s160_s26 = scalar_lea.vmem [#allocation2], %s3534_s21  ;;  %p4559_p11 = pnand %p4092_p7, %p36_p9 }
  0x34   : > { %s168_s27 = sshll.u32 %s160_s26, 4  ;;  %s4563_s29 = scalar_lea.sflag [#allocation3], %s156_s17  ;;  %s4557_s27 = int_to_ptr.vmem [resolvable:$true] %s168_s27 }
  0x35   : > { %s4332_s30 = scalar_lea.hbm %s4555_s25, 16384  ;;  %p4334_p0 = pneg %p4559_p11 }
  0x36   : > { %p4333_p13 = scmp.ne.s32.totalorder %s4555_s25, %s4332_s30  ;;  %s4337_s6 = scalar_lea.hbm %s5706_s0, 32768 }
  0x37   : > { %p4338_p1 = scmp.lt.s32.totalorder %s4555_s25, %s5706_s0  ;;  %p4339_p2 = scmp.lt.s32.totalorder %s4337_s6, %s4332_s30 }
  0x38   : > { %p4335_p5 = pnand %p4334_p0, %p4333_p13 }
  0x39   : > { %p4340_p6 = por %p4339_p2, %p4338_p1 }
  0x3a   : > { %p4336_p10 = pneg %p4335_p5 }
  0x3c   : > { %p4341_p12 = pnand %p4340_p6, %p4336_p10 }
  0x3e   : > { %4344 = shalt.err (!%p4341_p12)
}
  0x3f   : > { %s4345_s17 = scalar_lea.vmem %s4557_s27, 16384  ;;  %s4434_s21 = smov [#allocation2]  }
  0x40   : > { %p4346_p7 = scmp.ne.s32.totalorder %s4557_s27, %s4345_s17  ;;  %s4350_s22 = sshll.u32 %s4434_s21, 4  ;;  %s4351_s22 = int_to_ptr.vmem [resolvable:$false] %s4350_s22 }
  0x41   : > { %s4352_s23 = scalar_lea.vmem %s4351_s22, 32768  ;;  %p4353_p5 = scmp.lt.s32.totalorder %s4557_s27, %s4351_s22 }
  0x42   : > { %p4348_p9 = pnand %p4346_p7, %p4334_p0  ;;  %p4354_p3 = scmp.lt.s32.totalorder %s4352_s23, %s4345_s17 }
  0x44   : > { %p4349_p13 = pneg %p4348_p9  ;;  %p4355_p4 = por %p4354_p3, %p4353_p5 }
  0x46   : > { %p4356_p8 = pnand %p4355_p4, %p4349_p13 }
  0x48   : > { %4359 = shalt.err (!%p4356_p8)
}
  0x49   : > { %s4435_s24 = smov 256   ;;  %s4436_s26 = smov 16  }
  0x4a   : > { %4085 = dma.hbm_to_vmem [thread:$0]  (!%p4559_p11), %s4555_s25, 16384, %s4557_s27, %s4563_s29, %s4435_s24, %s4435_s24, %s4436_s26  }
  0x4b   : > { %p5741_p0 = scmp.ne.s32.totalorder %s5736_s20, 0 }
  0x4d   : > { %180 = sbr.rel (%p5741_p0) target bundleno = 747 (0x2eb), region = 32 }
  0x52   : > { %s4587_s30 = sand.u32 1, %s4420_s13   ;;  %p5742_p4 = scmp.ne.s32.totalorder %s5734_s18, 0 }
  0x53   : > { %s3539_s4 = sshll.u32 %s4587_s30, 10  ;;  %s183_s5 = scalar_lea.sflag [#allocation3], %s4587_s30 }
  0x54   : > { %s4591_s6 = scalar_lea.vmem [#allocation2], %s3539_s4 }
  0x55   : > { %4403 = dma.done.wait (%p5742_p4), %s183_s5, 16384  }
  0x56   : > { %4405 = vsyncadd (%p5742_p4), %s183_s5, 4294950912  ;;  %p5743_p8 = scmp.eq.s32.totalorder %s4481_s16, 0 }
  0x58   : > { %4407 = dma.done.wait (%p5743_p8), [#allocation6], 12384   ;;  %p5744_p3 = pmov %p5743_p8 }
  0x59   : > { %v4136_v0 = vld [vmem:[#allocation5 + $0x154] ss:$24 sps:$4 sm:$0xff]   ;;  %v4138_v1 = vld [vmem:[#allocation5 + $0x150] ss:$24 sps:$4 sm:$0xff]   ;;  %v4139_v2 = vld [vmem:[#allocation5 + $0x124] ss:$24 sps:$4 sm:$0xff]  }
  0x5a   : > { %4409 = vsyncadd (%p5744_p3), [#allocation6], 4294954912  ;;  %1019 = vmatprep.subr.bf16.mxu0 %v4136_v0  ;;  %4029 = vmatprep.subr.bf16.mxu1 %v4136_v0  ;;  %v4141_v3 = vld [vmem:[#allocation5 + $0x120] ss:$24 sps:$4 sm:$0xff]   ;;  %v4142_v4 = vld [vmem:[#allocation5 + $0xf4] ss:$24 sps:$4 sm:$0xff]  }
  0x5b   : > { %1020 = vmatpush1.bf16.msra.mxu0 %v4138_v1  ;;  %4045 = vmatpush1.bf16.msra.mxu1 %v4138_v1  ;;  %v4144_v5 = vld [vmem:[#allocation5 + $0xf0] ss:$24 sps:$4 sm:$0xff]   ;;  %v4145_v6 = vld [vmem:[#allocation5 + $0xc4] ss:$24 sps:$4 sm:$0xff]   ;;  %v4147_v7 = vld [vmem:[#allocation5 + $0xc0] ss:$24 sps:$4 sm:$0xff]  }
  0x5c   : > { %1021 = vmatprep.subr.bf16.mxu0 %v4139_v2  ;;  %4030 = vmatprep.subr.bf16.mxu1 %v4139_v2  ;;  %v4148_v8 = vld [vmem:[#allocation5 + $0x94] ss:$24 sps:$4 sm:$0xff]   ;;  %v4150_v9 = vld [vmem:[#allocation5 + $0x90] ss:$24 sps:$4 sm:$0xff]   ;;  %v4151_v10 = vld [vmem:[#allocation5 + $0x64] ss:$24 sps:$4 sm:$0xff]  }
  0x5d   : > { %v4153_v11 = vld [vmem:[#allocation5 + $0x60] ss:$24 sps:$4 sm:$0xff]   ;;  %v4154_v12 = vld [vmem:[#allocation5 + $0x34] ss:$24 sps:$4 sm:$0xff]   ;;  %v4156_v18 = vld [vmem:[#allocation5 + $0x30] ss:$24 sps:$4 sm:$0xff]  }
  0x5e   : > { %v220_v13 = vld [vmem:[%s4591_s6 + $0x8] sm:$0xff]  ;;  %v222_v14 = vld [vmem:[%s4591_s6 + $0x18] sm:$0xff]  ;;  %v219_v38 = vld [vmem:[%s4591_s6] sm:$0xff]  ;;  %s4061_s18 = smul.u32 1536, %s4587_s30  ;;  %s3423_s8 = scalar_lea.sflag [#allocation4], %s4587_s30 }
  0x5f   : > { %1022 = vmatpush1.bf16.msra.mxu0 %v4141_v3  ;;  %4046 = vmatpush1.bf16.msra.mxu1 %v4141_v3  ;;  %v4603_v15 = vpack.c.bf16 %v222_v14, %v220_v13  ;;  %v284_v16 = vld [vmem:[%s4591_s6 + $0x208] sm:$0xff]  ;;  %v286_v17 = vld [vmem:[%s4591_s6 + $0x218] sm:$0xff]  ;;  %v221_v39 = vld [vmem:[%s4591_s6 + $0x10] sm:$0xff]  ;;  %s4062_s25 = smul.u32 24576, %s4481_s16  ;;  %p5765_p10 = scmp.ne.s32.totalorder %s5739_s10, 0 }
  0x60   : > { %1023 = vmatprep.subr.bf16.mxu0 %v4142_v4  ;;  %4031 = vmatprep.subr.bf16.mxu1 %v4142_v4  ;;  %v4607_v19 = vpack.c.bf16 %v286_v17, %v284_v16  ;;  %v4157_v20 = vld [vmem:[#allocation5 + $0x4] ss:$24 sps:$4 sm:$0xff]   ;;  %v4159_v21 = vld [vmem:[#allocation5] ss:$24 sps:$4 sm:$0xff]   ;;  %v4160_v22 = vld [vmem:[#allocation5 + $0x2d4] ss:$24 sps:$4 sm:$0xff]   ;;  %v4619_v48 = vpack.c.bf16 %v221_v39, %v219_v38 }
  0x61   : > { %1051 = vmatprep.mubr.bf16.mxu0 %v4603_v15  ;;  %v4162_v23 = vld [vmem:[#allocation5 + $0x2d0] ss:$24 sps:$4 sm:$0xff]   ;;  %v4163_v24 = vld [vmem:[#allocation5 + $0x2a4] ss:$24 sps:$4 sm:$0xff]   ;;  %v4165_v25 = vld [vmem:[#allocation5 + $0x2a0] ss:$24 sps:$4 sm:$0xff]   ;;  %s5659_s29 = scalar_lea.hbm %s5709_s3, %s4062_s25 }
  0x62   : > { %1211 = vmatprep.mubr.bf16.mxu1 %v4607_v19  ;;  %v4166_v26 = vld [vmem:[#allocation5 + $0x274] ss:$24 sps:$4 sm:$0xff]   ;;  %v4168_v27 = vld [vmem:[#allocation5 + $0x270] ss:$24 sps:$4 sm:$0xff]   ;;  %v4169_v28 = vld [vmem:[#allocation5 + $0x244] ss:$24 sps:$4 sm:$0xff]  }
  0x63   : > { %1024 = vmatpush1.bf16.msra.mxu0 %v4144_v5  ;;  %4047 = vmatpush1.bf16.msra.mxu1 %v4144_v5  ;;  %v4171_v29 = vld [vmem:[#allocation5 + $0x240] ss:$24 sps:$4 sm:$0xff]   ;;  %v4172_v30 = vld [vmem:[#allocation5 + $0x214] ss:$24 sps:$4 sm:$0xff]   ;;  %v4174_v31 = vld [vmem:[#allocation5 + $0x210] ss:$24 sps:$4 sm:$0xff]  }
  0x64   : > { %1025 = vmatprep.subr.bf16.mxu0 %v4145_v6  ;;  %4032 = vmatprep.subr.bf16.mxu1 %v4145_v6  ;;  %v4175_v32 = vld [vmem:[#allocation5 + $0x1e4] ss:$24 sps:$4 sm:$0xff]   ;;  %v4177_v33 = vld [vmem:[#allocation5 + $0x1e0] ss:$24 sps:$4 sm:$0xff]   ;;  %v4178_v34 = vld [vmem:[#allocation5 + $0x1b4] ss:$24 sps:$4 sm:$0xff]  }
  0x65   : > { %v4180_v35 = vld [vmem:[#allocation5 + $0x1b0] ss:$24 sps:$4 sm:$0xff]   ;;  %v4181_v36 = vld [vmem:[#allocation5 + $0x184] ss:$24 sps:$4 sm:$0xff]   ;;  %v4183_v37 = vld [vmem:[#allocation5 + $0x180] ss:$24 sps:$4 sm:$0xff]  }
  0x66   : > { %v283_v40 = vld [vmem:[%s4591_s6 + $0x200] sm:$0xff]  ;;  %v285_v41 = vld [vmem:[%s4591_s6 + $0x210] sm:$0xff]  ;;  %v224_v44 = vld [vmem:[%s4591_s6 + $0x28] sm:$0xff]  ;;  %s4976_s20 = scalar_lea.vmem [#allocation8], %s4061_s18  ;;  %s4437_s17 = smov [#allocation8]  }
  0x67   : > { %1026 = vmatpush1.bf16.msra.mxu0 %v4147_v7  ;;  %4048 = vmatpush1.bf16.msra.mxu1 %v4147_v7  ;;  %v4186_v42 = vld [vmem:[#allocation5 + $0x15c] ss:$24 sps:$4 sm:$0xff]   ;;  %v288_v46 = vld [vmem:[%s4591_s6 + $0x228] sm:$0xff]  ;;  %v4621_v49 = vpack.c.bf16 %v285_v41, %v283_v40  ;;  %v4184_v50 = vld [vmem:[#allocation5 + $0x158] ss:$24 sps:$4 sm:$0xff]   ;;  %s3437_s27 = sshll.u32 %s4976_s20, 4  ;;  %s5661_s27 = int_to_ptr.vmem [resolvable:$true] %s3437_s27 }
  0x68   : > { %1027 = vmatprep.subr.bf16.mxu0 %v4148_v8  ;;  %4033 = vmatprep.subr.bf16.mxu1 %v4148_v8  ;;  %v4189_v43 = vld [vmem:[#allocation5 + $0x164] ss:$24 sps:$4 sm:$0xff]   ;;  %v4187_v51 = vld [vmem:[#allocation5 + $0x160] ss:$24 sps:$4 sm:$0xff]   ;;  %v225_v55 = vld [vmem:[%s4591_s6 + $0x30] sm:$0xff]  ;;  %s4360_s9 = scalar_lea.vmem %s5661_s27, 24576 }
  0x69   : > { %v226_v45 = vld [vmem:[%s4591_s6 + $0x38] sm:$0xff]  ;;  %v223_v54 = vld [vmem:[%s4591_s6 + $0x20] sm:$0xff]  ;;  %v289_v57 = vld [vmem:[%s4591_s6 + $0x230] sm:$0xff]  ;;  %p4361_p11 = scmp.ne.s32.totalorder %s5661_s27, %s4360_s9  ;;  %s4364_s21 = sshll.u32 %s4437_s17, 4  ;;  %s4365_s21 = int_to_ptr.vmem [resolvable:$false] %s4364_s21 }
  0x6a   : > { %v290_v47 = vld [vmem:[%s4591_s6 + $0x238] sm:$0xff]  ;;  %v4623_v52 = vpack.c.bf16 %v226_v45, %v224_v44  ;;  %v287_v56 = vld [vmem:[%s4591_s6 + $0x220] sm:$0xff]  ;;  %v4193_v60 = vld [vmem:[#allocation5 + $0x130] ss:$24 sps:$4 sm:$0xff]   ;;  %v4639_v4 = vpack.c.bf16 %v225_v55, %v223_v54  ;;  %s4366_s22 = scalar_lea.vmem %s4365_s21, 49152  ;;  %p4367_p6 = scmp.lt.s32.totalorder %s5661_s27, %s4365_s21 }
  0x6b   : > { %1028 = vmatpush1.bf16.msra.mxu0 %v4150_v9  ;;  %4049 = vmatpush1.bf16.msra.mxu1 %v4150_v9  ;;  %v4625_v53 = vpack.c.bf16 %v290_v47, %v288_v46  ;;  %v4190_v58 = vld [vmem:[#allocation5 + $0x128] ss:$24 sps:$4 sm:$0xff]   ;;  %v4192_v59 = vld [vmem:[#allocation5 + $0x12c] ss:$24 sps:$4 sm:$0xff]   ;;  %v230_v63 = vld [vmem:[%s4591_s6 + $0x58] sm:$0xff]  ;;  %v4641_v5 = vpack.c.bf16 %v289_v57, %v287_v56  ;;  %p4362_p1 = pnand %p4361_p11, %p5765_p10  ;;  %p4368_p12 = scmp.lt.s32.totalorder %s4366_s22, %s4360_s9 }
  0x6c   : > { %1029 = vmatprep.subr.bf16.mxu0 %v4151_v10  ;;  %4034 = vmatprep.subr.bf16.mxu1 %v4151_v10  ;;  %v4195_v61 = vld [vmem:[#allocation5 + $0x134] ss:$24 sps:$4 sm:$0xff]   ;;  %v294_v1 = vld [vmem:[%s4591_s6 + $0x258] sm:$0xff]  ;;  %v291_v14 = vld [vmem:[%s4591_s6 + $0x240] sm:$0xff] }
  0x6d   : > { %v228_v62 = vld [vmem:[%s4591_s6 + $0x48] sm:$0xff]  ;;  %v4198_v2 = vld [vmem:[#allocation5 + $0xfc] ss:$24 sps:$4 sm:$0xff]   ;;  %v4196_v8 = vld [vmem:[#allocation5 + $0xf8] ss:$24 sps:$4 sm:$0xff]   ;;  %p4363_p2 = pneg %p4362_p1  ;;  %p4369_p7 = por %p4368_p12, %p4367_p6 }
  0x6e   : > { %v292_v0 = vld [vmem:[%s4591_s6 + $0x248] sm:$0xff]  ;;  %v4201_v3 = vld [vmem:[#allocation5 + $0x104] ss:$24 sps:$4 sm:$0xff]   ;;  %v4643_v6 = vpack.c.bf16 %v230_v63, %v228_v62  ;;  %v4199_v9 = vld [vmem:[#allocation5 + $0x100] ss:$24 sps:$4 sm:$0xff]  }
  0x6f   : > { %1030 = vmatpush1.bf16.msra.mxu0 %v4153_v11  ;;  %4050 = vmatpush1.bf16.msra.mxu1 %v4153_v11  ;;  %v4645_v7 = vpack.c.bf16 %v294_v1, %v292_v0  ;;  %v4204_v10 = vld [vmem:[#allocation5 + $0xcc] ss:$24 sps:$4 sm:$0xff]   ;;  %v293_v16 = vld [vmem:[%s4591_s6 + $0x250] sm:$0xff]  ;;  %v238_v39 = vld [vmem:[%s4591_s6 + $0x98] sm:$0xff]  ;;  %p4370_p9 = pnand %p4369_p7, %p4363_p2 }
  0x70   : > { %1031 = vmatprep.subr.bf16.mxu0 %v4154_v12  ;;  %4035 = vmatprep.subr.bf16.mxu1 %v4154_v12  ;;  %v227_v11 = vld [vmem:[%s4591_s6 + $0x40] sm:$0xff]  ;;  %v229_v12 = vld [vmem:[%s4591_s6 + $0x50] sm:$0xff]  ;;  %v232_v17 = vld [vmem:[%s4591_s6 + $0x68] sm:$0xff] }
  0x71   : > { %v4207_v13 = vld [vmem:[#allocation5 + $0xd4] ss:$24 sps:$4 sm:$0xff]   ;;  %v302_v41 = vld [vmem:[%s4591_s6 + $0x298] sm:$0xff]  ;;  %v235_v57 = vld [vmem:[%s4591_s6 + $0x80] sm:$0xff] }
  0x72   : > { %v236_v38 = vld [vmem:[%s4591_s6 + $0x88] sm:$0xff]  ;;  %v4222_v44 = vld [vmem:[#allocation5 + $0x3c] ss:$24 sps:$4 sm:$0xff]   ;;  %v4220_v54 = vld [vmem:[#allocation5 + $0x38] ss:$24 sps:$4 sm:$0xff]  }
  0x73   : > { %1032 = vmatpush1.bf16.msra.mxu0 %v4156_v18  ;;  %4051 = vmatpush1.bf16.msra.mxu1 %v4156_v18  ;;  %v234_v18 = vld [vmem:[%s4591_s6 + $0x78] sm:$0xff]  ;;  %v300_v40 = vld [vmem:[%s4591_s6 + $0x288] sm:$0xff] }
  0x74   : > { %1033 = vmatprep.subr.bf16.mxu0 %v4157_v20  ;;  %4036 = vmatprep.subr.bf16.mxu1 %v4157_v20  ;;  %v296_v20 = vld [vmem:[%s4591_s6 + $0x268] sm:$0xff]  ;;  %v4225_v45 = vld [vmem:[#allocation5 + $0x44] ss:$24 sps:$4 sm:$0xff]   ;;  %v4223_v55 = vld [vmem:[#allocation5 + $0x40] ss:$24 sps:$4 sm:$0xff]  }
  0x75   : > { %v4228_v56 = vld [vmem:[#allocation5 + $0xc] ss:$24 sps:$4 sm:$0xff]   ;;  %v242_v63 = vld [vmem:[%s4591_s6 + $0xb8] sm:$0xff] }
  0x76   : > { %v240_v62 = vld [vmem:[%s4591_s6 + $0xa8] sm:$0xff]  ;;  %v306_v1 = vld [vmem:[%s4591_s6 + $0x2b8] sm:$0xff] }
  0x77   : > { %1034 = vmatpush1.bf16.msra.mxu0 %v4159_v21  ;;  %4052 = vmatpush1.bf16.msra.mxu1 %v4159_v21  ;;  %v298_v21 = vld [vmem:[%s4591_s6 + $0x278] sm:$0xff]  ;;  %v304_v0 = vld [vmem:[%s4591_s6 + $0x2a8] sm:$0xff] }
  0x78   : > { %1035 = vmatprep.subr.bf16.mxu0 %v4160_v22  ;;  %4037 = vmatprep.subr.bf16.mxu1 %v4160_v22  ;;  %v4202_v22 = vld [vmem:[#allocation5 + $0xc8] ss:$24 sps:$4 sm:$0xff]  }
  0x7b   : > { %1036 = vmatpush2.bf16.msra.mxu0 %v4162_v23  ;;  %4053 = vmatpush2.bf16.msra.mxu1 %v4162_v23  ;;  %v4205_v23 = vld [vmem:[#allocation5 + $0xd0] ss:$24 sps:$4 sm:$0xff]  }
  0x7c   : > { %1037 = vmatprep.subr.bf16.mxu0 %v4163_v24  ;;  %4038 = vmatprep.subr.bf16.mxu1 %v4163_v24  ;;  %v4210_v24 = vld [vmem:[#allocation5 + $0x9c] ss:$24 sps:$4 sm:$0xff]  }
  0x7f   : > { %1038 = vmatpush2.bf16.msra.mxu0 %v4165_v25  ;;  %4054 = vmatpush2.bf16.msra.mxu1 %v4165_v25  ;;  %v4213_v25 = vld [vmem:[#allocation5 + $0xa4] ss:$24 sps:$4 sm:$0xff]  }
  0x80   : > { %1039 = vmatprep.subr.bf16.mxu0 %v4166_v26  ;;  %4039 = vmatprep.subr.bf16.mxu1 %v4166_v26  ;;  %v4659_v26 = vpack.c.bf16 %v229_v12, %v227_v11  ;;  %v4703_v12 = vpack.c.bf16 %v242_v63, %v240_v62  ;;  %v4258_v62 = vld [vmem:[#allocation5 + $0x21c] ss:$24 sps:$4 sm:$0xff]  }
  0x81   : > { %v4261_v63 = vld [vmem:[#allocation5 + $0x224] ss:$24 sps:$4 sm:$0xff]  }
  0x83   : > { %1040 = vmatpush2.bf16.msra.mxu0 %v4168_v27  ;;  %4055 = vmatpush2.bf16.msra.mxu1 %v4168_v27  ;;  %v4661_v27 = vpack.c.bf16 %v293_v16, %v291_v14  ;;  %v4232_v14 = vld [vmem:[#allocation5 + $0x2d8] ss:$24 sps:$4 sm:$0xff]  }
  0x84   : > { %1041 = vmatprep.subr.bf16.mxu0 %v4169_v28  ;;  %4040 = vmatprep.subr.bf16.mxu1 %v4169_v28  ;;  %v4663_v28 = vpack.c.bf16 %v234_v18, %v232_v17  ;;  %v4235_v16 = vld [vmem:[#allocation5 + $0x2e0] ss:$24 sps:$4 sm:$0xff]   ;;  %v241_v18 = vld [vmem:[%s4591_s6 + $0xb0] sm:$0xff] }
  0x85   : > { %v239_v17 = vld [vmem:[%s4591_s6 + $0xa0] sm:$0xff] }
  0x87   : > { %1042 = vmatpush2.bf16.msra.mxu0 %v4171_v29  ;;  %4056 = vmatpush2.bf16.msra.mxu1 %v4171_v29  ;;  %v4665_v29 = vpack.c.bf16 %v298_v21, %v296_v20  ;;  %v303_v20 = vld [vmem:[%s4591_s6 + $0x2a0] sm:$0xff]  ;;  %v305_v21 = vld [vmem:[%s4591_s6 + $0x2b0] sm:$0xff] }
  0x88   : > { %1043 = vmatprep.subr.bf16.mxu0 %v4172_v30  ;;  %4041 = vmatprep.subr.bf16.mxu1 %v4172_v30  ;;  %v4208_v30 = vld [vmem:[#allocation5 + $0x98] ss:$24 sps:$4 sm:$0xff]  }
  0x8b   : > { %1044 = vmatpush2.bf16.msra.mxu0 %v4174_v31  ;;  %4057 = vmatpush2.bf16.msra.mxu1 %v4174_v31  ;;  %v4211_v31 = vld [vmem:[#allocation5 + $0xa0] ss:$24 sps:$4 sm:$0xff]  }
  0x8c   : > { %1045 = vmatprep.subr.bf16.mxu0 %v4175_v32  ;;  %4042 = vmatprep.subr.bf16.mxu1 %v4175_v32  ;;  %v231_v32 = vld [vmem:[%s4591_s6 + $0x60] sm:$0xff] }
  0x8f   : > { %1046 = vmatpush2.bf16.msra.mxu0 %v4177_v33  ;;  %4058 = vmatpush2.bf16.msra.mxu1 %v4177_v33  ;;  %v233_v33 = vld [vmem:[%s4591_s6 + $0x70] sm:$0xff] }
  0x90   : > { %1047 = vmatprep.subr.bf16.mxu0 %v4178_v34  ;;  %4043 = vmatprep.subr.bf16.mxu1 %v4178_v34  ;;  %v295_v34 = vld [vmem:[%s4591_s6 + $0x260] sm:$0xff]  ;;  %v4679_v46 = vpack.c.bf16 %v233_v33, %v231_v32  ;;  %v4241_v33 = vld [vmem:[#allocation5 + $0x2b0] ss:$24 sps:$4 sm:$0xff]  }
  0x91   : > { %v4238_v32 = vld [vmem:[#allocation5 + $0x2a8] ss:$24 sps:$4 sm:$0xff]  }
  0x93   : > { %1048 = vmatpush2.bf16.msra.mxu0 %v4180_v35  ;;  %4059 = vmatpush2.bf16.msra.mxu1 %v4180_v35  ;;  %v297_v35 = vld [vmem:[%s4591_s6 + $0x270] sm:$0xff] }
  0x94   : > { %1049 = vmatprep.subr.bf16.mxu0 %v4181_v36  ;;  %4044 = vmatprep.subr.bf16.mxu1 %v4181_v36  ;;  %v4216_v36 = vld [vmem:[#allocation5 + $0x6c] ss:$24 sps:$4 sm:$0xff]   ;;  %v4681_v47 = vpack.c.bf16 %v297_v35, %v295_v34  ;;  %v4246_v34 = vld [vmem:[#allocation5 + $0x27c] ss:$24 sps:$4 sm:$0xff]  }
  0x95   : > { %v4249_v35 = vld [vmem:[#allocation5 + $0x284] ss:$24 sps:$4 sm:$0xff]  }
  0x97   : > { %1050 = vmatpush2.bf16.msra.mxu0 %v4183_v37  ;;  %4060 = vmatpush2.bf16.msra.mxu1 %v4183_v37  ;;  %v4219_v37 = vld [vmem:[#allocation5 + $0x74] ss:$24 sps:$4 sm:$0xff]  }
  0x98   : > { %1372 = vmatprep.subr.bf16.mxu1 %v4186_v42  ;;  %1725 = vmatprep.subr.bf16.mxu0 %v4189_v43  ;;  %v4214_v42 = vld [vmem:[#allocation5 + $0x68] ss:$24 sps:$4 sm:$0xff]  }
  0x99   : > { %v4217_v43 = vld [vmem:[#allocation5 + $0x70] ss:$24 sps:$4 sm:$0xff]  }
  0x9a   : > { %1052 = vmatmul.mubr.bf16.vlgmr.msra.gmra.mxu0 %v4619_v48  ;;  %1212 = vmatmul.mubr.bf16.vlgmr.msra.gmra.mxu1 %v4621_v49 }
  0x9b   : > { %1373 = vmatpush1.bf16.msra.mxu1 %v4184_v50  ;;  %1726 = vmatpush1.bf16.msra.mxu0 %v4187_v51  ;;  %v4683_v50 = vpack.c.bf16 %v238_v39, %v236_v38  ;;  %v4685_v51 = vpack.c.bf16 %v302_v41, %v300_v40  ;;  %v4244_v40 = vld [vmem:[#allocation5 + $0x278] ss:$24 sps:$4 sm:$0xff]  }
  0x9c   : > { %1061 = vmatprep.mubr.bf16.mxu0 %v4623_v52  ;;  %1221 = vmatprep.mubr.bf16.mxu1 %v4625_v53  ;;  %v4247_v41 = vld [vmem:[#allocation5 + $0x280] ss:$24 sps:$4 sm:$0xff]  }
  0x9d   : > { %1374 = vmatprep.subr.bf16.mxu1 %v4192_v59  ;;  %1727 = vmatprep.subr.bf16.mxu0 %v4195_v61  ;;  %v4231_v59 = vld [vmem:[#allocation5 + $0x14] ss:$24 sps:$4 sm:$0xff]  }
  0x9e   : > { %v301_v61 = vld [vmem:[%s4591_s6 + $0x290] sm:$0xff] }
  0x9f   : > { %1375 = vmatpush1.bf16.msra.mxu1 %v4190_v58  ;;  %1728 = vmatpush1.bf16.msra.mxu0 %v4193_v60  ;;  %v237_v58 = vld [vmem:[%s4591_s6 + $0x90] sm:$0xff]  ;;  %v299_v60 = vld [vmem:[%s4591_s6 + $0x280] sm:$0xff] }
  0xa0   : > { %1376 = vmatprep.subr.bf16.mxu1 %v4198_v2  ;;  %1729 = vmatprep.subr.bf16.mxu0 %v4201_v3  ;;  %v4226_v2 = vld [vmem:[#allocation5 + $0x8] ss:$24 sps:$4 sm:$0xff]   ;;  %v4701_v11 = vpack.c.bf16 %v301_v61, %v299_v60 }
  0xa1   : > { %v4229_v3 = vld [vmem:[#allocation5 + $0x10] ss:$24 sps:$4 sm:$0xff]  }
  0xa2   : > { %1062 = vmatmul.mubr.bf16.gmra.mxu0 %v4639_v4  ;;  %1222 = vmatmul.mubr.bf16.gmra.mxu1 %v4641_v5  ;;  %v4250_v60 = vld [vmem:[#allocation5 + $0x248] ss:$24 sps:$4 sm:$0xff]  }
  0xa3   : > { %1071 = vmatprep.mubr.bf16.mxu0 %v4643_v6  ;;  %1231 = vmatprep.mubr.bf16.mxu1 %v4645_v7  ;;  %v4253_v61 = vld [vmem:[#allocation5 + $0x250] ss:$24 sps:$4 sm:$0xff]  }
  0xa4   : > { %1377 = vmatpush1.bf16.msra.mxu1 %v4196_v8  ;;  %1730 = vmatpush1.bf16.msra.mxu0 %v4199_v9  ;;  %v4234_v8 = vld [vmem:[#allocation5 + $0x2dc] ss:$24 sps:$4 sm:$0xff]  }
  0xa5   : > { %1378 = vmatprep.subr.bf16.mxu1 %v4204_v10  ;;  %1731 = vmatprep.subr.bf16.mxu0 %v4207_v13  ;;  %v4237_v9 = vld [vmem:[#allocation5 + $0x2e4] ss:$24 sps:$4 sm:$0xff]   ;;  %v4699_v10 = vpack.c.bf16 %v237_v58, %v235_v57  ;;  %v4705_v13 = vpack.c.bf16 %v306_v1, %v304_v0  ;;  %v312_v58 = vld [vmem:[%s4591_s6 + $0x2e8] sm:$0xff] }
  0xa6   : > { %v250_v57 = vld [vmem:[%s4591_s6 + $0xf8] sm:$0xff] }
  0xa8   : > { %1379 = vmatpush1.bf16.msra.mxu1 %v4202_v22  ;;  %1732 = vmatpush1.bf16.msra.mxu0 %v4205_v23  ;;  %v4240_v22 = vld [vmem:[#allocation5 + $0x2ac] ss:$24 sps:$4 sm:$0xff]  }
  0xa9   : > { %1380 = vmatprep.subr.bf16.mxu1 %v4210_v24  ;;  %1733 = vmatprep.subr.bf16.mxu0 %v4213_v25  ;;  %v4243_v23 = vld [vmem:[#allocation5 + $0x2b4] ss:$24 sps:$4 sm:$0xff]   ;;  %v246_v25 = vld [vmem:[%s4591_s6 + $0xd8] sm:$0xff] }
  0xaa   : > { %1072 = vmatmul.mubr.bf16.gmra.mxu0 %v4659_v26  ;;  %1232 = vmatmul.mubr.bf16.gmra.mxu1 %v4661_v27  ;;  %v244_v24 = vld [vmem:[%s4591_s6 + $0xc8] sm:$0xff] }
  0xab   : > { %1081 = vmatprep.mubr.bf16.mxu0 %v4663_v28  ;;  %1241 = vmatprep.mubr.bf16.mxu1 %v4665_v29  ;;  %v4723_v38 = vpack.c.bf16 %v246_v25, %v244_v24  ;;  %v316_v24 = vld [vmem:[%s4591_s6 + $0x308] sm:$0xff]  ;;  %v318_v25 = vld [vmem:[%s4591_s6 + $0x318] sm:$0xff] }
  0xac   : > { %1381 = vmatpush1.bf16.msra.mxu1 %v4208_v30  ;;  %1734 = vmatpush1.bf16.msra.mxu0 %v4211_v31  ;;  %v308_v30 = vld [vmem:[%s4591_s6 + $0x2c8] sm:$0xff]  ;;  %v310_v31 = vld [vmem:[%s4591_s6 + $0x2d8] sm:$0xff] }
  0xad   : > { %1382 = vmatprep.subr.bf16.mxu1 %v4216_v36  ;;  %1735 = vmatprep.subr.bf16.mxu0 %v4219_v37  ;;  %v4719_v36 = vpack.c.bf16 %v241_v18, %v239_v17  ;;  %v4721_v37 = vpack.c.bf16 %v305_v21, %v303_v20  ;;  %v4725_v39 = vpack.c.bf16 %v310_v31, %v308_v30  ;;  %v4267_v17 = vld [vmem:[#allocation5 + $0x1f4] ss:$24 sps:$4 sm:$0xff]   ;;  %v311_v20 = vld [vmem:[%s4591_s6 + $0x2e0] sm:$0xff]  ;;  %v4265_v31 = vld [vmem:[#allocation5 + $0x1f0] ss:$24 sps:$4 sm:$0xff]  }
  0xae   : > { %v249_v18 = vld [vmem:[%s4591_s6 + $0xf0] sm:$0xff]  ;;  %v4262_v30 = vld [vmem:[#allocation5 + $0x1e8] ss:$24 sps:$4 sm:$0xff]  }
  0xaf   : > { %v313_v21 = vld [vmem:[%s4591_s6 + $0x2f0] sm:$0xff] }
  0xb0   : > { %1383 = vmatpush1.bf16.msra.mxu1 %v4214_v42  ;;  %1736 = vmatpush1.bf16.msra.mxu0 %v4217_v43  ;;  %v4252_v42 = vld [vmem:[#allocation5 + $0x24c] ss:$24 sps:$4 sm:$0xff]  }
  0xb1   : > { %1384 = vmatprep.subr.bf16.mxu1 %v4222_v44  ;;  %1737 = vmatprep.subr.bf16.mxu0 %v4225_v45  ;;  %v243_v43 = vld [vmem:[%s4591_s6 + $0xc0] sm:$0xff]  ;;  %v4255_v44 = vld [vmem:[#allocation5 + $0x254] ss:$24 sps:$4 sm:$0xff]  }
  0xb2   : > { %1082 = vmatmul.mubr.bf16.gmra.mxu0 %v4679_v46  ;;  %1242 = vmatmul.mubr.bf16.gmra.mxu1 %v4681_v47  ;;  %v245_v45 = vld [vmem:[%s4591_s6 + $0xd0] sm:$0xff] }
  0xb3   : > { %1091 = vmatprep.mubr.bf16.mxu0 %v4683_v50  ;;  %1251 = vmatprep.mubr.bf16.mxu1 %v4685_v51  ;;  %v4739_v0 = vpack.c.bf16 %v245_v45, %v243_v43  ;;  %v4271_v43 = vld [vmem:[#allocation5 + $0x1c0] ss:$24 sps:$4 sm:$0xff]   ;;  %v4276_v45 = vld [vmem:[#allocation5 + $0x18c] ss:$24 sps:$4 sm:$0xff]  }
  0xb4   : > { %1385 = vmatpush1.bf16.msra.mxu1 %v4220_v54  ;;  %1738 = vmatpush1.bf16.msra.mxu0 %v4223_v55  ;;  %v307_v54 = vld [vmem:[%s4591_s6 + $0x2c0] sm:$0xff]  ;;  %v309_v55 = vld [vmem:[%s4591_s6 + $0x2d0] sm:$0xff] }
  0xb5   : > { %1386 = vmatprep.subr.bf16.mxu1 %v4228_v56  ;;  %1739 = vmatprep.subr.bf16.mxu0 %v4231_v59  ;;  %v248_v56 = vld [vmem:[%s4591_s6 + $0xe8] sm:$0xff]  ;;  %v314_v59 = vld [vmem:[%s4591_s6 + $0x2f8] sm:$0xff]  ;;  %v4741_v1 = vpack.c.bf16 %v309_v55, %v307_v54  ;;  %v253_v55 = vld [vmem:[%s4591_s6 + $0x110] sm:$0xff] }
  0xb6   : > { %v4279_v54 = vld [vmem:[#allocation5 + $0x194] ss:$24 sps:$4 sm:$0xff]  }
  0xb8   : > { %1387 = vmatpush1.bf16.msra.mxu1 %v4226_v2  ;;  %1740 = vmatpush1.bf16.msra.mxu0 %v4229_v3  ;;  %v4743_v2 = vpack.c.bf16 %v250_v57, %v248_v56  ;;  %v4745_v3 = vpack.c.bf16 %v314_v59, %v312_v58  ;;  %v315_v56 = vld [vmem:[%s4591_s6 + $0x300] sm:$0xff]  ;;  %v317_v57 = vld [vmem:[%s4591_s6 + $0x310] sm:$0xff]  ;;  %v256_v58 = vld [vmem:[%s4591_s6 + $0x128] sm:$0xff] }
  0xb9   : > { %1388 = vmatprep.subr.bf16.mxu1 %v4234_v8  ;;  %1741 = vmatprep.subr.bf16.mxu0 %v4237_v9  ;;  %v4256_v8 = vld [vmem:[#allocation5 + $0x218] ss:$24 sps:$4 sm:$0xff]  }
  0xba   : > { %1092 = vmatmul.mubr.bf16.gmra.mxu0 %v4699_v10  ;;  %1252 = vmatmul.mubr.bf16.gmra.mxu1 %v4701_v11  ;;  %v4259_v9 = vld [vmem:[#allocation5 + $0x220] ss:$24 sps:$4 sm:$0xff]  }
  0xbb   : > { %1101 = vmatprep.mubr.bf16.mxu0 %v4703_v12  ;;  %1261 = vmatprep.mubr.bf16.mxu1 %v4705_v13  ;;  %v258_v59 = vld [vmem:[%s4591_s6 + $0x138] sm:$0xff] }
  0xbc   : > { %1389 = vmatpush2.bf16.msra.mxu1 %v4232_v14  ;;  %1742 = vmatpush2.bf16.msra.mxu0 %v4235_v16  ;;  %v247_v14 = vld [vmem:[%s4591_s6 + $0xe0] sm:$0xff] }
  0xbd   : > { %1390 = vmatprep.subr.bf16.mxu1 %v4240_v22  ;;  %1743 = vmatprep.subr.bf16.mxu0 %v4243_v23  ;;  %v4264_v16 = vld [vmem:[#allocation5 + $0x1ec] ss:$24 sps:$4 sm:$0xff]   ;;  %v254_v23 = vld [vmem:[%s4591_s6 + $0x118] sm:$0xff] }
  0xbe   : > { %v252_v22 = vld [vmem:[%s4591_s6 + $0x108] sm:$0xff] }
  0xc0   : > { %1391 = vmatpush2.bf16.msra.mxu1 %v4238_v32  ;;  %1744 = vmatpush2.bf16.msra.mxu0 %v4241_v33  ;;  %v4270_v32 = vld [vmem:[#allocation5 + $0x1bc] ss:$24 sps:$4 sm:$0xff]  }
  0xc1   : > { %1392 = vmatprep.subr.bf16.mxu1 %v4246_v34  ;;  %1745 = vmatprep.subr.bf16.mxu0 %v4249_v35  ;;  %v4273_v33 = vld [vmem:[#allocation5 + $0x1c4] ss:$24 sps:$4 sm:$0xff]   ;;  %v4759_v34 = vpack.c.bf16 %v249_v18, %v247_v14  ;;  %v4761_v35 = vpack.c.bf16 %v313_v21, %v311_v20  ;;  %v4783_v14 = vpack.c.bf16 %v258_v59, %v256_v58  ;;  %v257_v18 = vld [vmem:[%s4591_s6 + $0x130] sm:$0xff] }
  0xc2   : > { %1102 = vmatmul.mubr.bf16.gmra.mxu0 %v4719_v36  ;;  %1262 = vmatmul.mubr.bf16.gmra.mxu1 %v4721_v37  ;;  %v319_v20 = vld [vmem:[%s4591_s6 + $0x320] sm:$0xff]  ;;  %v321_v21 = vld [vmem:[%s4591_s6 + $0x330] sm:$0xff] }
  0xc3   : > { %1111 = vmatprep.mubr.bf16.mxu0 %v4723_v38  ;;  %1271 = vmatprep.mubr.bf16.mxu1 %v4725_v39 }
  0xc4   : > { %1393 = vmatpush2.bf16.msra.mxu1 %v4244_v40  ;;  %1746 = vmatpush2.bf16.msra.mxu0 %v4247_v41  ;;  %v4763_v40 = vpack.c.bf16 %v254_v23, %v252_v22  ;;  %v4765_v41 = vpack.c.bf16 %v318_v25, %v316_v24  ;;  %v260_v22 = vld [vmem:[%s4591_s6 + $0x148] sm:$0xff]  ;;  %v262_v23 = vld [vmem:[%s4591_s6 + $0x158] sm:$0xff] }
  0xc5   : > { %1394 = vmatprep.subr.bf16.mxu1 %v4252_v42  ;;  %1747 = vmatprep.subr.bf16.mxu0 %v4255_v44  ;;  %v4268_v42 = vld [vmem:[#allocation5 + $0x1b8] ss:$24 sps:$4 sm:$0xff]   ;;  %v251_v44 = vld [vmem:[%s4591_s6 + $0x100] sm:$0xff]  ;;  %v324_v24 = vld [vmem:[%s4591_s6 + $0x348] sm:$0xff] }
  0xc6   : > { %v326_v25 = vld [vmem:[%s4591_s6 + $0x358] sm:$0xff] }
  0xc8   : > { %1395 = vmatpush2.bf16.msra.mxu1 %v4250_v60  ;;  %1748 = vmatpush2.bf16.msra.mxu0 %v4253_v61  ;;  %v320_v60 = vld [vmem:[%s4591_s6 + $0x328] sm:$0xff]  ;;  %v322_v61 = vld [vmem:[%s4591_s6 + $0x338] sm:$0xff] }
  0xc9   : > { %1396 = vmatprep.subr.bf16.mxu1 %v4258_v62  ;;  %1749 = vmatprep.subr.bf16.mxu0 %v4261_v63  ;;  %v4274_v62 = vld [vmem:[#allocation5 + $0x188] ss:$24 sps:$4 sm:$0xff]  }
  0xca   : > { %1112 = vmatmul.mubr.bf16.gmra.mxu0 %v4739_v0  ;;  %1272 = vmatmul.mubr.bf16.gmra.mxu1 %v4741_v1  ;;  %v4277_v63 = vld [vmem:[#allocation5 + $0x190] ss:$24 sps:$4 sm:$0xff]  }
  0xcb   : > { %1121 = vmatprep.mubr.bf16.mxu0 %v4743_v2  ;;  %1281 = vmatprep.mubr.bf16.mxu1 %v4745_v3 }
  0xcc   : > { %1397 = vmatpush2.bf16.msra.mxu1 %v4256_v8  ;;  %1750 = vmatpush2.bf16.msra.mxu0 %v4259_v9  ;;  %v4779_v8 = vpack.c.bf16 %v253_v55, %v251_v44  ;;  %v4781_v9 = vpack.c.bf16 %v317_v57, %v315_v56  ;;  %v323_v44 = vld [vmem:[%s4591_s6 + $0x340] sm:$0xff]  ;;  %v266_v55 = vld [vmem:[%s4591_s6 + $0x178] sm:$0xff]  ;;  %v328_v56 = vld [vmem:[%s4591_s6 + $0x368] sm:$0xff] }
  0xcd   : > { %1398 = vmatprep.subr.bf16.mxu1 %v4264_v16  ;;  %1751 = vmatprep.subr.bf16.mxu0 %v4267_v17  ;;  %v4785_v16 = vpack.c.bf16 %v322_v61, %v320_v60  ;;  %v255_v17 = vld [vmem:[%s4591_s6 + $0x120] sm:$0xff]  ;;  %v330_v57 = vld [vmem:[%s4591_s6 + $0x378] sm:$0xff] }
  0xce   : > { %v4825_v61 = vpack.c.bf16 %v330_v57, %v328_v56  ;;  %v272_v56 = vld [vmem:[%s4591_s6 + $0x1a8] sm:$0xff]  ;;  %v274_v57 = vld [vmem:[%s4591_s6 + $0x1b8] sm:$0xff] }
  0xd0   : > { %1399 = vmatpush2.bf16.msra.mxu1 %v4262_v30  ;;  %1752 = vmatpush2.bf16.msra.mxu0 %v4265_v31  ;;  %v4799_v30 = vpack.c.bf16 %v257_v18, %v255_v17  ;;  %v4801_v31 = vpack.c.bf16 %v321_v21, %v319_v20  ;;  %5748 = vst [vmem:[#allocation15_spill] sm:$0xff] %v4825_v61  ;;  %v327_v17 = vld [vmem:[%s4591_s6 + $0x360] sm:$0xff]  ;;  %v329_v18 = vld [vmem:[%s4591_s6 + $0x370] sm:$0xff]  ;;  %v268_v20 = vld [vmem:[%s4591_s6 + $0x188] sm:$0xff] }
  0xd1   : > { %1400 = vmatprep.subr.bf16.mxu1 %v4270_v32  ;;  %1753 = vmatprep.subr.bf16.mxu0 %v4273_v33  ;;  %v4803_v32 = vpack.c.bf16 %v262_v23, %v260_v22  ;;  %v4805_v33 = vpack.c.bf16 %v326_v25, %v324_v24  ;;  %v270_v21 = vld [vmem:[%s4591_s6 + $0x198] sm:$0xff]  ;;  %v332_v22 = vld [vmem:[%s4591_s6 + $0x388] sm:$0xff]  ;;  %v4841_v25 = vpack.c.bf16 %v329_v18, %v327_v17 }
  0xd2   : > { %1122 = vmatmul.mubr.bf16.gmra.mxu0 %v4759_v34  ;;  %1282 = vmatmul.mubr.bf16.gmra.mxu1 %v4761_v35  ;;  %5745 = vst [vmem:[#allocation12_spill] sm:$0xff] %v4801_v31  ;;  %v334_v23 = vld [vmem:[%s4591_s6 + $0x398] sm:$0xff] }
  0xd3   : > { %1131 = vmatprep.mubr.bf16.mxu0 %v4763_v40  ;;  %1291 = vmatprep.mubr.bf16.mxu1 %v4765_v41  ;;  %5746 = vst [vmem:[#allocation13_spill] sm:$0xff] %v4805_v33  ;;  %5749 = vst [vmem:[#allocation16_spill] sm:$0xff] %v4841_v25 }
  0xd4   : > { %1401 = vmatpush2.bf16.msra.mxu1 %v4268_v42  ;;  %1754 = vmatpush2.bf16.msra.mxu0 %v4271_v43  ;;  %v259_v42 = vld [vmem:[%s4591_s6 + $0x140] sm:$0xff]  ;;  %v261_v43 = vld [vmem:[%s4591_s6 + $0x150] sm:$0xff] }
  0xd5   : > { %1402 = vmatprep.subr.bf16.mxu1 %v4276_v45  ;;  %1755 = vmatprep.subr.bf16.mxu0 %v4279_v54  ;;  %v325_v45 = vld [vmem:[%s4591_s6 + $0x350] sm:$0xff]  ;;  %v264_v54 = vld [vmem:[%s4591_s6 + $0x168] sm:$0xff]  ;;  %v4819_v58 = vpack.c.bf16 %v261_v43, %v259_v42  ;;  %v4843_v42 = vpack.c.bf16 %v270_v21, %v268_v20  ;;  %v4845_v43 = vpack.c.bf16 %v334_v23, %v332_v22  ;;  %v271_v22 = vld [vmem:[%s4591_s6 + $0x1a0] sm:$0xff] }
  0xd6   : > { %v4821_v59 = vpack.c.bf16 %v325_v45, %v323_v44  ;;  %v4823_v60 = vpack.c.bf16 %v266_v55, %v264_v54  ;;  %v267_v44 = vld [vmem:[%s4591_s6 + $0x180] sm:$0xff]  ;;  %v269_v45 = vld [vmem:[%s4591_s6 + $0x190] sm:$0xff]  ;;  %v4863_v20 = vpack.c.bf16 %v274_v57, %v272_v56  ;;  %v340_v56 = vld [vmem:[%s4591_s6 + $0x3c8] sm:$0xff] }
  0xd7   : > { %5750 = vst [vmem:[#allocation17_spill] sm:$0xff] %v4845_v43  ;;  %v331_v54 = vld [vmem:[%s4591_s6 + $0x380] sm:$0xff]  ;;  %v333_v55 = vld [vmem:[%s4591_s6 + $0x390] sm:$0xff]  ;;  %v4859_v17 = vpack.c.bf16 %v269_v45, %v267_v44  ;;  %v342_v57 = vld [vmem:[%s4591_s6 + $0x3d8] sm:$0xff] }
  0xd8   : > { %1403 = vmatpush2.bf16.msra.mxu1 %v4274_v62  ;;  %1756 = vmatpush2.bf16.msra.mxu0 %v4277_v63  ;;  %5747 = vst [vmem:[#allocation14_spill] sm:$0xff] %v4821_v59  ;;  %v263_v62 = vld [vmem:[%s4591_s6 + $0x160] sm:$0xff]  ;;  %v265_v63 = vld [vmem:[%s4591_s6 + $0x170] sm:$0xff]  ;;  %v4861_v18 = vpack.c.bf16 %v333_v55, %v331_v54  ;;  %v276_v54 = vld [vmem:[%s4591_s6 + $0x1c8] sm:$0xff] }
  0xd9   : > { %v4839_v24 = vpack.c.bf16 %v265_v63, %v263_v62  ;;  %v336_v62 = vld [vmem:[%s4591_s6 + $0x3a8] sm:$0xff]  ;;  %v338_v63 = vld [vmem:[%s4591_s6 + $0x3b8] sm:$0xff]  ;;  %v273_v23 = vld [vmem:[%s4591_s6 + $0x1b0] sm:$0xff] }
  0xda   : > { %1132 = vmatmul.mubr.bf16.gmra.mxu0 %v4779_v8  ;;  %1292 = vmatmul.mubr.bf16.gmra.mxu1 %v4781_v9  ;;  %5751 = vst [vmem:[#allocation18_spill] sm:$0xff] %v4861_v18  ;;  %v4865_v21 = vpack.c.bf16 %v338_v63, %v336_v62  ;;  %v335_v44 = vld [vmem:[%s4591_s6 + $0x3a0] sm:$0xff]  ;;  %v337_v45 = vld [vmem:[%s4591_s6 + $0x3b0] sm:$0xff]  ;;  %v278_v55 = vld [vmem:[%s4591_s6 + $0x1d8] sm:$0xff]  ;;  %v4879_v62 = vpack.c.bf16 %v273_v23, %v271_v22 }
  0xdb   : > { %1141 = vmatprep.mubr.bf16.mxu0 %v4783_v14  ;;  %1301 = vmatprep.mubr.bf16.mxu1 %v4785_v16  ;;  %v4881_v63 = vpack.c.bf16 %v337_v45, %v335_v44  ;;  %v339_v22 = vld [vmem:[%s4591_s6 + $0x3c0] sm:$0xff]  ;;  %v341_v23 = vld [vmem:[%s4591_s6 + $0x3d0] sm:$0xff]  ;;  %v280_v44 = vld [vmem:[%s4591_s6 + $0x1e8] sm:$0xff] }
  0xdc   : > { %5752 = vst [vmem:[#allocation19_spill] sm:$0xff] %v4865_v21  ;;  %v282_v45 = vld [vmem:[%s4591_s6 + $0x1f8] sm:$0xff] }
  0xdd   : > { %5753 = vst [vmem:[#allocation20_spill] sm:$0xff] %v4881_v63 }
  0xe2   : > { %1142 = vmatmul.mubr.bf16.gmra.mxu0 %v4799_v30  ;;  %1302 = vmatmul.mubr.bf16.gmra.mxu1 %v4801_v31  ;;  %v345_v31 = vld [vmem:[%s4591_s6 + $0x3f0] sm:$0xff] }
  0xe3   : > { %1151 = vmatprep.mubr.bf16.mxu0 %v4803_v32  ;;  %1311 = vmatprep.mubr.bf16.mxu1 %v4805_v33  ;;  %v343_v33 = vld [vmem:[%s4591_s6 + $0x3e0] sm:$0xff] }
  0xea   : > { %1152 = vmatmul.mubr.bf16.gmra.mxu0 %v4819_v58  ;;  %1312 = vmatmul.mubr.bf16.gmra.mxu1 %v4821_v59  ;;  %v281_v59 = vld [vmem:[%s4591_s6 + $0x1f0] sm:$0xff] }
  0xeb   : > { %1161 = vmatprep.mubr.bf16.mxu0 %v4823_v60  ;;  %1321 = vmatprep.mubr.bf16.mxu1 %v4825_v61 }
  0xf2   : > { %1162 = vmatmul.mubr.bf16.gmra.mxu0 %v4839_v24  ;;  %1322 = vmatmul.mubr.bf16.gmra.mxu1 %v4841_v25  ;;  %v277_v25 = vld [vmem:[%s4591_s6 + $0x1d0] sm:$0xff] }
  0xf3   : > { %1171 = vmatprep.mubr.bf16.mxu0 %v4843_v42  ;;  %1331 = vmatprep.mubr.bf16.mxu1 %v4845_v43  ;;  %v4885_v43 = vpack.c.bf16 %v342_v57, %v340_v56  ;;  %v4901_v57 = vpack.c.bf16 %v341_v23, %v339_v22 }
  0xf5   : > { %5754 = vst [vmem:[#allocation21_spill] sm:$0xff] %v4885_v43 }
  0xfa   : > { %1172 = vmatmul.mubr.bf16.gmra.mxu0 %v4859_v17  ;;  %1332 = vmatmul.mubr.bf16.gmra.mxu1 %v4861_v18  ;;  %v4883_v18 = vpack.c.bf16 %v278_v55, %v276_v54  ;;  %v344_v54 = vld [vmem:[%s4591_s6 + $0x3e8] sm:$0xff]  ;;  %v346_v55 = vld [vmem:[%s4591_s6 + $0x3f8] sm:$0xff] }
  0xfb   : > { %1181 = vmatprep.mubr.bf16.mxu0 %v4863_v20  ;;  %1341 = vmatprep.mubr.bf16.mxu1 %v4865_v21  ;;  %v275_v21 = vld [vmem:[%s4591_s6 + $0x1c0] sm:$0xff]  ;;  %v4905_v61 = vpack.c.bf16 %v346_v55, %v344_v54 }
  0xfc   : > { %v4899_v56 = vpack.c.bf16 %v277_v25, %v275_v21  ;;  %v4917_v21 = vpack.c.bf16 %v345_v31, %v343_v33 }
 0x102   : > { %1182 = vmatmul.mubr.bf16.gmra.mxu0 %v4879_v62  ;;  %1342 = vmatmul.mubr.bf16.gmra.mxu1 %v4881_v63  ;;  %v4903_v63 = vpack.c.bf16 %v282_v45, %v280_v44 }
 0x103   : > { %1191 = vmatprep.mubr.bf16.mxu0 %v4883_v18  ;;  %1351 = vmatprep.mubr.bf16.mxu1 %v4885_v43  ;;  %v279_v43 = vld [vmem:[%s4591_s6 + $0x1e0] sm:$0xff] }
 0x104   : > { %v4915_v25 = vpack.c.bf16 %v281_v59, %v279_v43 }
 0x10a   : > { %1192 = vmatmul.mubr.bf16.gmra.mxu0 %v4899_v56  ;;  %1352 = vmatmul.mubr.bf16.gmra.mxu1 %v4901_v57 }
 0x10b   : > { %1201 = vmatprep.mubr.bf16.mxu0 %v4903_v63  ;;  %1361 = vmatprep.mubr.bf16.mxu1 %v4905_v61 }
 0x112   : > { %1202 = vmatmul.mubr.bf16.gmra.mxu0 %v4915_v25  ;;  %1362 = vmatmul.mubr.bf16.gmra.mxu1 %v4917_v21 }
 0x113   : > { %1404 = vmatprep.mubr.bf16.mxu1 %v4603_v15  ;;  %1757 = vmatprep.mubr.bf16.mxu0 %v4603_v15  ;;  %v509_v15 = vlaneseq }
 0x11a   : > { %1405 = vmatmul.mubr.bf16.vlgmr.msra.gmra.mxu1 %v4619_v48  ;;  %1758 = vmatmul.mubr.bf16.vlgmr.msra.gmra.mxu0 %v4619_v48  ;;  %v4951_v48 = vshrl.u32 %v509_v15, 7 }
 0x11b   : > { %1414 = vmatprep.mubr.bf16.mxu1 %v4623_v52  ;;  %1767 = vmatprep.mubr.bf16.mxu0 %v4623_v52 }
 0x11c   : > { %v511_v52 = vsub.s32 0, %v4951_v48 }
 0x122   : > { %1415 = vmatmul.mubr.bf16.gmra.mxu1 %v4639_v4  ;;  %1768 = vmatmul.mubr.bf16.gmra.mxu0 %v4639_v4  ;;  %v515_v4 = vsub.s32 1, %v4951_v48 }
 0x123   : > { %1424 = vmatprep.mubr.bf16.mxu1 %v4643_v6  ;;  %1777 = vmatprep.mubr.bf16.mxu0 %v4643_v6  ;;  %v4959_v6 = vld [vmem:[#allocation7] sm:$0x3f] }
 0x12a   : > { %1425 = vmatmul.mubr.bf16.gmra.mxu1 %v4659_v26  ;;  %1778 = vmatmul.mubr.bf16.gmra.mxu0 %v4659_v26  ;;  %v4962_v26 = vrot.slane %v4959_v6, %v511_v52 }
 0x12b   : > { %1434 = vmatprep.mubr.bf16.mxu1 %v4663_v28  ;;  %1787 = vmatprep.mubr.bf16.mxu0 %v4663_v28  ;;  %v4965_v28 = vrot.slane %v4959_v6, %v515_v4 }
 0x132   : > { %1435 = vmatmul.mubr.bf16.gmra.mxu1 %v4679_v46  ;;  %1788 = vmatmul.mubr.bf16.gmra.mxu0 %v4679_v46 }
 0x133   : > { %1444 = vmatprep.mubr.bf16.mxu1 %v4683_v50  ;;  %1797 = vmatprep.mubr.bf16.mxu0 %v4683_v50 }
 0x13a   : > { %1445 = vmatmul.mubr.bf16.gmra.mxu1 %v4699_v10  ;;  %1798 = vmatmul.mubr.bf16.gmra.mxu0 %v4699_v10 }
 0x13b   : > { %1454 = vmatprep.mubr.bf16.mxu1 %v4703_v12  ;;  %1807 = vmatprep.mubr.bf16.mxu0 %v4703_v12 }
 0x142   : > { %1455 = vmatmul.mubr.bf16.gmra.mxu1 %v4719_v36  ;;  %1808 = vmatmul.mubr.bf16.gmra.mxu0 %v4719_v36 }
 0x143   : > { %1464 = vmatprep.mubr.bf16.mxu1 %v4723_v38  ;;  %1817 = vmatprep.mubr.bf16.mxu0 %v4723_v38 }
 0x14a   : > { %1465 = vmatmul.mubr.bf16.gmra.mxu1 %v4739_v0  ;;  %1818 = vmatmul.mubr.bf16.gmra.mxu0 %v4739_v0 }
 0x14b   : > { %1474 = vmatprep.mubr.bf16.mxu1 %v4743_v2  ;;  %1827 = vmatprep.mubr.bf16.mxu0 %v4743_v2 }
 0x152   : > { %1475 = vmatmul.mubr.bf16.gmra.mxu1 %v4759_v34  ;;  %1828 = vmatmul.mubr.bf16.gmra.mxu0 %v4759_v34 }
 0x153   : > { %1484 = vmatprep.mubr.bf16.mxu1 %v4763_v40  ;;  %1837 = vmatprep.mubr.bf16.mxu0 %v4763_v40 }
 0x15a   : > { %v1053_v46 = vpop.f32.mrf.mxu0  ;;  %v1213_v50 = vpop.f32.mrf.mxu1  ;;  %1485 = vmatmul.mubr.bf16.gmra.mxu1 %v4779_v8  ;;  %1838 = vmatmul.mubr.bf16.gmra.mxu0 %v4779_v8 }
 0x15b   : > { %1494 = vmatprep.mubr.bf16.mxu1 %v4783_v14  ;;  %1847 = vmatprep.mubr.bf16.mxu0 %v4783_v14  ;;  %v1054_v36 = vadd.f32 %v1053_v46, %v4962_v26  ;;  %v1214_v38 = vadd.f32 %v1213_v50, %v4962_v26 }
 0x15c   : > { %v1055_v10 = vpop.f32.mrf.mxu0  ;;  %v1215_v12 = vpop.f32.mrf.mxu1 }
 0x15d   : > { %v1056_v0 = vadd.f32 %v1055_v10, %v4965_v28  ;;  %v1216_v2 = vadd.f32 %v1215_v12, %v4965_v28 }
 0x15e   : > { %v1057_v34 = vpop.f32.mrf.mxu0  ;;  %v1217_v40 = vpop.f32.mrf.mxu1 }
 0x15f   : > { %v3837_v31 = vpack.c.bf16 %v1056_v0, %v1054_v36  ;;  %v3933_v33 = vpack.c.bf16 %v1216_v2, %v1214_v38  ;;  %v1058_v14 = vadd.f32 %v1057_v34, %v4962_v26  ;;  %v1218_v43 = vadd.f32 %v1217_v40, %v4962_v26 }
 0x160   : > { %v1059_v8 = vpop.f32.mrf.mxu0  ;;  %v1219_v59 = vpop.f32.mrf.mxu1 }
 0x161   : > { %3230 = vst [vmem:[%s4976_s20] sm:$0xff] %v3837_v31  ;;  %3326 = vst [vmem:[%s4976_s20 + $0x300] sm:$0xff] %v3933_v33  ;;  %v1060_v22 = vadd.f32 %v1059_v8, %v4965_v28  ;;  %v1220_v23 = vadd.f32 %v1219_v59, %v4965_v28 }
 0x162   : > { %v1063_v44 = vpop.f32.mrf.mxu0  ;;  %v1223_v45 = vpop.f32.mrf.mxu1  ;;  %1495 = vmatmul.mubr.bf16.gmra.mxu1 %v4799_v30  ;;  %1848 = vmatmul.mubr.bf16.gmra.mxu0 %v4799_v30 }
 0x163   : > { %v3840_v54 = vpack.c.bf16 %v1060_v22, %v1058_v14  ;;  %v3936_v55 = vpack.c.bf16 %v1220_v23, %v1218_v43  ;;  %1504 = vmatprep.mubr.bf16.mxu1 %v4803_v32  ;;  %1857 = vmatprep.mubr.bf16.mxu0 %v4803_v32  ;;  %v1064_v4 = vadd.f32 %v1063_v44, %v4962_v26 }
 0x164   : > { %v1065_v15 = vpop.f32.mrf.mxu0  ;;  %v1225_v52 = vpop.f32.mrf.mxu1  ;;  %v1224_v46 = vadd.f32 %v1223_v45, %v4962_v26 }
 0x165   : > { %3233 = vst [vmem:[%s4976_s20 + $0x18] sm:$0xff] %v3840_v54  ;;  %3329 = vst [vmem:[%s4976_s20 + $0x318] sm:$0xff] %v3936_v55  ;;  %v1066_v50 = vadd.f32 %v1065_v15, %v4965_v28  ;;  %v1226_v30 = vadd.f32 %v1225_v52, %v4965_v28 }
 0x166   : > { %v1067_v10 = vpop.f32.mrf.mxu0  ;;  %v1227_v12 = vpop.f32.mrf.mxu1 }
 0x167   : > { %v3843_v36 = vpack.c.bf16 %v1066_v50, %v1064_v4  ;;  %v3939_v38 = vpack.c.bf16 %v1226_v30, %v1224_v46  ;;  %v1068_v32 = vadd.f32 %v1067_v10, %v4962_v26  ;;  %v1228_v34 = vadd.f32 %v1227_v12, %v4962_v26 }
 0x168   : > { %v1069_v0 = vpop.f32.mrf.mxu0  ;;  %v1229_v2 = vpop.f32.mrf.mxu1 }
 0x169   : > { %3236 = vst [vmem:[%s4976_s20 + $0x30] sm:$0xff] %v3843_v36  ;;  %3332 = vst [vmem:[%s4976_s20 + $0x330] sm:$0xff] %v3939_v38  ;;  %v1070_v40 = vadd.f32 %v1069_v0, %v4965_v28  ;;  %v1230_v31 = vadd.f32 %v1229_v2, %v4965_v28 }
 0x16a   : > { %v1073_v33 = vpop.f32.mrf.mxu0  ;;  %v1233_v8 = vpop.f32.mrf.mxu1  ;;  %1505 = vmatmul.mubr.bf16.gmra.mxu1 %v4819_v58  ;;  %1858 = vmatmul.mubr.bf16.gmra.mxu0 %v4819_v58 }
 0x16b   : > { %v3846_v59 = vpack.c.bf16 %v1070_v40, %v1068_v32  ;;  %v3942_v14 = vpack.c.bf16 %v1230_v31, %v1228_v34  ;;  %1514 = vmatprep.mubr.bf16.mxu1 %v4823_v60  ;;  %1867 = vmatprep.mubr.bf16.mxu0 %v4823_v60  ;;  %v1074_v23 = vadd.f32 %v1073_v33, %v4962_v26 }
 0x16c   : > { %v1075_v43 = vpop.f32.mrf.mxu0  ;;  %v1235_v22 = vpop.f32.mrf.mxu1  ;;  %v1234_v44 = vadd.f32 %v1233_v8, %v4962_v26 }
 0x16d   : > { %3239 = vst [vmem:[%s4976_s20 + $0x48] sm:$0xff] %v3846_v59  ;;  %3335 = vst [vmem:[%s4976_s20 + $0x348] sm:$0xff] %v3942_v14  ;;  %v1076_v45 = vadd.f32 %v1075_v43, %v4965_v28  ;;  %v1236_v58 = vadd.f32 %v1235_v22, %v4965_v28 }
 0x16e   : > { %v1077_v54 = vpop.f32.mrf.mxu0  ;;  %v1237_v55 = vpop.f32.mrf.mxu1 }
 0x16f   : > { %v3849_v15 = vpack.c.bf16 %v1076_v45, %v1074_v23  ;;  %v3945_v52 = vpack.c.bf16 %v1236_v58, %v1234_v44  ;;  %v1078_v60 = vadd.f32 %v1077_v54, %v4962_v26  ;;  %v1238_v50 = vadd.f32 %v1237_v55, %v4962_v26 }
 0x170   : > { %v1079_v4 = vpop.f32.mrf.mxu0  ;;  %v1239_v46 = vpop.f32.mrf.mxu1 }
 0x171   : > { %3242 = vst [vmem:[%s4976_s20 + $0x60] sm:$0xff] %v3849_v15  ;;  %3338 = vst [vmem:[%s4976_s20 + $0x360] sm:$0xff] %v3945_v52  ;;  %v1080_v30 = vadd.f32 %v1079_v4, %v4965_v28  ;;  %v1240_v10 = vadd.f32 %v1239_v46, %v4965_v28 }
 0x172   : > { %v1083_v12 = vpop.f32.mrf.mxu0  ;;  %v1243_v36 = vpop.f32.mrf.mxu1  ;;  %1515 = vmatmul.mubr.bf16.gmra.mxu1 %v4839_v24  ;;  %1868 = vmatmul.mubr.bf16.gmra.mxu0 %v4839_v24 }
 0x173   : > { %v3852_v38 = vpack.c.bf16 %v1080_v30, %v1078_v60  ;;  %v3948_v0 = vpack.c.bf16 %v1240_v10, %v1238_v50  ;;  %1524 = vmatprep.mubr.bf16.mxu1 %v4843_v42  ;;  %1877 = vmatprep.mubr.bf16.mxu0 %v4843_v42  ;;  %v1084_v34 = vadd.f32 %v1083_v12, %v4962_v26 }
 0x174   : > { %v1085_v2 = vpop.f32.mrf.mxu0  ;;  %v1245_v32 = vpop.f32.mrf.mxu1  ;;  %v1244_v40 = vadd.f32 %v1243_v36, %v4962_v26 }
 0x175   : > { %3245 = vst [vmem:[%s4976_s20 + $0x78] sm:$0xff] %v3852_v38  ;;  %3341 = vst [vmem:[%s4976_s20 + $0x378] sm:$0xff] %v3948_v0  ;;  %v1086_v31 = vadd.f32 %v1085_v2, %v4965_v28  ;;  %v1246_v24 = vadd.f32 %v1245_v32, %v4965_v28 }
 0x176   : > { %v1087_v33 = vpop.f32.mrf.mxu0  ;;  %v1247_v8 = vpop.f32.mrf.mxu1 }
 0x177   : > { %v3855_v59 = vpack.c.bf16 %v1086_v31, %v1084_v34  ;;  %v3951_v14 = vpack.c.bf16 %v1246_v24, %v1244_v40  ;;  %v1088_v42 = vadd.f32 %v1087_v33, %v4962_v26  ;;  %v1248_v23 = vadd.f32 %v1247_v8, %v4962_v26 }
 0x178   : > { %v1089_v43 = vpop.f32.mrf.mxu0  ;;  %v1249_v22 = vpop.f32.mrf.mxu1 }
 0x179   : > { %3248 = vst [vmem:[%s4976_s20 + $0x90] sm:$0xff] %v3855_v59  ;;  %3344 = vst [vmem:[%s4976_s20 + $0x390] sm:$0xff] %v3951_v14  ;;  %v1090_v44 = vadd.f32 %v1089_v43, %v4965_v28  ;;  %v1250_v45 = vadd.f32 %v1249_v22, %v4965_v28 }
 0x17a   : > { %v1093_v58 = vpop.f32.mrf.mxu0  ;;  %v1253_v54 = vpop.f32.mrf.mxu1  ;;  %1525 = vmatmul.mubr.bf16.gmra.mxu1 %v4859_v17  ;;  %1878 = vmatmul.mubr.bf16.gmra.mxu0 %v4859_v17 }
 0x17b   : > { %v3858_v55 = vpack.c.bf16 %v1090_v44, %v1088_v42  ;;  %v3954_v15 = vpack.c.bf16 %v1250_v45, %v1248_v23  ;;  %1534 = vmatprep.mubr.bf16.mxu1 %v4863_v20  ;;  %1887 = vmatprep.mubr.bf16.mxu0 %v4863_v20  ;;  %v1094_v46 = vadd.f32 %v1093_v58, %v4962_v26 }
 0x17c   : > { %v1095_v52 = vpop.f32.mrf.mxu0  ;;  %v1255_v4 = vpop.f32.mrf.mxu1  ;;  %v1254_v60 = vadd.f32 %v1253_v54, %v4962_v26 }
 0x17d   : > { %3251 = vst [vmem:[%s4976_s20 + $0xa8] sm:$0xff] %v3858_v55  ;;  %3347 = vst [vmem:[%s4976_s20 + $0x3a8] sm:$0xff] %v3954_v15  ;;  %v1096_v50 = vadd.f32 %v1095_v52, %v4965_v28  ;;  %v1256_v17 = vadd.f32 %v1255_v4, %v4965_v28 }
 0x17e   : > { %v1097_v30 = vpop.f32.mrf.mxu0  ;;  %v1257_v10 = vpop.f32.mrf.mxu1 }
 0x17f   : > { %v3861_v12 = vpack.c.bf16 %v1096_v50, %v1094_v46  ;;  %v3957_v36 = vpack.c.bf16 %v1256_v17, %v1254_v60  ;;  %v1098_v20 = vadd.f32 %v1097_v30, %v4962_v26  ;;  %v1258_v2 = vadd.f32 %v1257_v10, %v4962_v26 }
 0x180   : > { %v1099_v38 = vpop.f32.mrf.mxu0  ;;  %v1259_v0 = vpop.f32.mrf.mxu1 }
 0x181   : > { %3254 = vst [vmem:[%s4976_s20 + $0xc0] sm:$0xff] %v3861_v12  ;;  %3350 = vst [vmem:[%s4976_s20 + $0x3c0] sm:$0xff] %v3957_v36  ;;  %v1100_v32 = vadd.f32 %v1099_v38, %v4965_v28  ;;  %v1260_v34 = vadd.f32 %v1259_v0, %v4965_v28 }
 0x182   : > { %v1103_v40 = vpop.f32.mrf.mxu0  ;;  %v1263_v31 = vpop.f32.mrf.mxu1  ;;  %1535 = vmatmul.mubr.bf16.gmra.mxu1 %v4879_v62  ;;  %1888 = vmatmul.mubr.bf16.gmra.mxu0 %v4879_v62 }
 0x183   : > { %v3864_v24 = vpack.c.bf16 %v1100_v32, %v1098_v20  ;;  %v3960_v33 = vpack.c.bf16 %v1260_v34, %v1258_v2  ;;  %1544 = vmatprep.mubr.bf16.mxu1 %v4883_v18  ;;  %1897 = vmatprep.mubr.bf16.mxu0 %v4883_v18  ;;  %v1104_v14 = vadd.f32 %v1103_v40, %v4962_v26 }
 0x184   : > { %v1105_v8 = vpop.f32.mrf.mxu0  ;;  %v1265_v59 = vpop.f32.mrf.mxu1  ;;  %v1264_v43 = vadd.f32 %v1263_v31, %v4962_v26 }
 0x185   : > { %3257 = vst [vmem:[%s4976_s20 + $0xd8] sm:$0xff] %v3864_v24  ;;  %3353 = vst [vmem:[%s4976_s20 + $0x3d8] sm:$0xff] %v3960_v33  ;;  %v1106_v22 = vadd.f32 %v1105_v8, %v4965_v28  ;;  %v1266_v62 = vadd.f32 %v1265_v59, %v4965_v28 }
 0x186   : > { %v1107_v42 = vpop.f32.mrf.mxu0  ;;  %v1267_v23 = vpop.f32.mrf.mxu1 }
 0x187   : > { %v3867_v44 = vpack.c.bf16 %v1106_v22, %v1104_v14  ;;  %v3963_v45 = vpack.c.bf16 %v1266_v62, %v1264_v43  ;;  %v1108_v18 = vadd.f32 %v1107_v42, %v4962_v26  ;;  %v1268_v55 = vadd.f32 %v1267_v23, %v4962_v26 }
 0x188   : > { %v1109_v58 = vpop.f32.mrf.mxu0  ;;  %v1269_v54 = vpop.f32.mrf.mxu1 }
 0x189   : > { %3260 = vst [vmem:[%s4976_s20 + $0xf0] sm:$0xff] %v3867_v44  ;;  %3356 = vst [vmem:[%s4976_s20 + $0x3f0] sm:$0xff] %v3963_v45  ;;  %v1110_v15 = vadd.f32 %v1109_v58, %v4965_v28  ;;  %v1270_v52 = vadd.f32 %v1269_v54, %v4965_v28 }
 0x18a   : > { %v1113_v4 = vpop.f32.mrf.mxu0  ;;  %v1273_v46 = vpop.f32.mrf.mxu1  ;;  %1545 = vmatmul.mubr.bf16.gmra.mxu1 %v4899_v56  ;;  %1898 = vmatmul.mubr.bf16.gmra.mxu0 %v4899_v56 }
 0x18b   : > { %v3870_v60 = vpack.c.bf16 %v1110_v15, %v1108_v18  ;;  %v3966_v50 = vpack.c.bf16 %v1270_v52, %v1268_v55  ;;  %1554 = vmatprep.mubr.bf16.mxu1 %v4903_v63  ;;  %1907 = vmatprep.mubr.bf16.mxu0 %v4903_v63  ;;  %v1114_v10 = vadd.f32 %v1113_v4, %v4962_v26 }
 0x18c   : > { %v1115_v17 = vpop.f32.mrf.mxu0  ;;  %v1275_v30 = vpop.f32.mrf.mxu1  ;;  %v1274_v12 = vadd.f32 %v1273_v46, %v4962_v26 }
 0x18d   : > { %3263 = vst [vmem:[%s4976_s20 + $0x108] sm:$0xff] %v3870_v60  ;;  %3359 = vst [vmem:[%s4976_s20 + $0x408] sm:$0xff] %v3966_v50  ;;  %v1116_v36 = vadd.f32 %v1115_v17, %v4965_v28  ;;  %v1276_v56 = vadd.f32 %v1275_v30, %v4965_v28 }
 0x18e   : > { %v1117_v38 = vpop.f32.mrf.mxu0  ;;  %v1277_v0 = vpop.f32.mrf.mxu1 }
 0x18f   : > { %v3873_v20 = vpack.c.bf16 %v1116_v36, %v1114_v10  ;;  %v3969_v2 = vpack.c.bf16 %v1276_v56, %v1274_v12  ;;  %v1118_v63 = vadd.f32 %v1117_v38, %v4962_v26  ;;  %v1278_v40 = vadd.f32 %v1277_v0, %v4962_v26 }
 0x190   : > { %v1119_v32 = vpop.f32.mrf.mxu0  ;;  %v1279_v34 = vpop.f32.mrf.mxu1 }
 0x191   : > { %3266 = vst [vmem:[%s4976_s20 + $0x120] sm:$0xff] %v3873_v20  ;;  %3362 = vst [vmem:[%s4976_s20 + $0x420] sm:$0xff] %v3969_v2  ;;  %v1120_v31 = vadd.f32 %v1119_v32, %v4965_v28  ;;  %v1280_v24 = vadd.f32 %v1279_v34, %v4965_v28 }
 0x192   : > { %v1123_v33 = vpop.f32.mrf.mxu0  ;;  %v1283_v8 = vpop.f32.mrf.mxu1  ;;  %1555 = vmatmul.mubr.bf16.gmra.mxu1 %v4915_v25  ;;  %1908 = vmatmul.mubr.bf16.gmra.mxu0 %v4915_v25 }
 0x193   : > { %v3876_v59 = vpack.c.bf16 %v1120_v31, %v1118_v63  ;;  %v3972_v14 = vpack.c.bf16 %v1280_v24, %v1278_v40  ;;  %1564 = vmatprep.mubr.bf16.mxu1 %v4607_v19  ;;  %1917 = vmatprep.mubr.bf16.mxu0 %v4607_v19  ;;  %v1124_v62 = vadd.f32 %v1123_v33, %v4962_v26 }
 0x194   : > { %v1125_v43 = vpop.f32.mrf.mxu0  ;;  %v1285_v22 = vpop.f32.mrf.mxu1  ;;  %v1284_v42 = vadd.f32 %v1283_v8, %v4962_v26 }
 0x195   : > { %3269 = vst [vmem:[%s4976_s20 + $0x138] sm:$0xff] %v3876_v59  ;;  %3365 = vst [vmem:[%s4976_s20 + $0x438] sm:$0xff] %v3972_v14  ;;  %v1126_v23 = vadd.f32 %v1125_v43, %v4965_v28  ;;  %v1286_v25 = vadd.f32 %v1285_v22, %v4965_v28 }
 0x196   : > { %v1127_v44 = vpop.f32.mrf.mxu0  ;;  %v1287_v45 = vpop.f32.mrf.mxu1 }
 0x197   : > { %v3879_v58 = vpack.c.bf16 %v1126_v23, %v1124_v62  ;;  %v3975_v54 = vpack.c.bf16 %v1286_v25, %v1284_v42  ;;  %v1128_v19 = vadd.f32 %v1127_v44, %v4962_v26  ;;  %v1288_v15 = vadd.f32 %v1287_v45, %v4962_v26 }
 0x198   : > { %v1129_v18 = vpop.f32.mrf.mxu0  ;;  %v1289_v55 = vpop.f32.mrf.mxu1 }
 0x199   : > { %3272 = vst [vmem:[%s4976_s20 + $0x150] sm:$0xff] %v3879_v58  ;;  %3368 = vst [vmem:[%s4976_s20 + $0x450] sm:$0xff] %v3975_v54  ;;  %v1130_v52 = vadd.f32 %v1129_v18, %v4965_v28  ;;  %v1290_v4 = vadd.f32 %v1289_v55, %v4965_v28 }
 0x19a   : > { %v1133_v46 = vpop.f32.mrf.mxu0  ;;  %v1293_v60 = vpop.f32.mrf.mxu1  ;;  %1565 = vmatmul.mubr.bf16.gmra.mxu1 %v4621_v49  ;;  %1918 = vmatmul.mubr.bf16.gmra.mxu0 %v4621_v49 }
 0x19b   : > { %v3882_v50 = vpack.c.bf16 %v1130_v52, %v1128_v19  ;;  %v3978_v17 = vpack.c.bf16 %v1290_v4, %v1288_v15  ;;  %1574 = vmatprep.mubr.bf16.mxu1 %v4625_v53  ;;  %1927 = vmatprep.mubr.bf16.mxu0 %v4625_v53  ;;  %v1134_v12 = vadd.f32 %v1133_v46, %v4962_v26 }
 0x19c   : > { %v1135_v30 = vpop.f32.mrf.mxu0  ;;  %v1295_v10 = vpop.f32.mrf.mxu1  ;;  %v1294_v36 = vadd.f32 %v1293_v60, %v4962_v26 }
 0x19d   : > { %3275 = vst [vmem:[%s4976_s20 + $0x168] sm:$0xff] %v3882_v50  ;;  %3371 = vst [vmem:[%s4976_s20 + $0x468] sm:$0xff] %v3978_v17  ;;  %v1136_v56 = vadd.f32 %v1135_v30, %v4965_v28  ;;  %v1296_v49 = vadd.f32 %v1295_v10, %v4965_v28 }
 0x19e   : > { %v1137_v38 = vpop.f32.mrf.mxu0  ;;  %v1297_v0 = vpop.f32.mrf.mxu1 }
 0x19f   : > { %v3885_v20 = vpack.c.bf16 %v1136_v56, %v1134_v12  ;;  %v3981_v2 = vpack.c.bf16 %v1296_v49, %v1294_v36  ;;  %v1138_v53 = vadd.f32 %v1137_v38, %v4962_v26  ;;  %v1298_v63 = vadd.f32 %v1297_v0, %v4962_v26 }
 0x1a0   : > { %v1139_v32 = vpop.f32.mrf.mxu0  ;;  %v1299_v34 = vpop.f32.mrf.mxu1 }
 0x1a1   : > { %3278 = vst [vmem:[%s4976_s20 + $0x180] sm:$0xff] %v3885_v20  ;;  %3374 = vst [vmem:[%s4976_s20 + $0x480] sm:$0xff] %v3981_v2  ;;  %v1140_v40 = vadd.f32 %v1139_v32, %v4965_v28  ;;  %v1300_v31 = vadd.f32 %v1299_v34, %v4965_v28 }
 0x1a2   : > { %v1143_v24 = vpop.f32.mrf.mxu0  ;;  %v1303_v33 = vpop.f32.mrf.mxu1  ;;  %1575 = vmatmul.mubr.bf16.gmra.mxu1 %v4641_v5  ;;  %1928 = vmatmul.mubr.bf16.gmra.mxu0 %v4641_v5 }
 0x1a3   : > { %v3888_v8 = vpack.c.bf16 %v1140_v40, %v1138_v53  ;;  %v3984_v59 = vpack.c.bf16 %v1300_v31, %v1298_v63  ;;  %1584 = vmatprep.mubr.bf16.mxu1 %v4645_v7  ;;  %1937 = vmatprep.mubr.bf16.mxu0 %v4645_v7  ;;  %v1144_v22 = vadd.f32 %v1143_v24, %v4962_v26 }
 0x1a4   : > { %v1145_v14 = vpop.f32.mrf.mxu0  ;;  %v1305_v43 = vpop.f32.mrf.mxu1  ;;  %v1304_v62 = vadd.f32 %v1303_v33, %v4962_v26 }
 0x1a5   : > { %3281 = vst [vmem:[%s4976_s20 + $0x198] sm:$0xff] %v3888_v8  ;;  %3377 = vst [vmem:[%s4976_s20 + $0x498] sm:$0xff] %v3984_v59  ;;  %v1146_v42 = vadd.f32 %v1145_v14, %v4965_v28  ;;  %v1306_v5 = vadd.f32 %v1305_v43, %v4965_v28 }
 0x1a6   : > { %v1147_v23 = vpop.f32.mrf.mxu0  ;;  %v1307_v25 = vpop.f32.mrf.mxu1 }
 0x1a7   : > { %v3891_v44 = vpack.c.bf16 %v1146_v42, %v1144_v22  ;;  %v3987_v45 = vpack.c.bf16 %v1306_v5, %v1304_v62  ;;  %v1148_v7 = vadd.f32 %v1147_v23, %v4962_v26  ;;  %v1308_v18 = vadd.f32 %v1307_v25, %v4962_v26 }
 0x1a8   : > { %v1149_v58 = vpop.f32.mrf.mxu0  ;;  %v1309_v54 = vpop.f32.mrf.mxu1 }
 0x1a9   : > { %3284 = vst [vmem:[%s4976_s20 + $0x1b0] sm:$0xff] %v3891_v44  ;;  %3380 = vst [vmem:[%s4976_s20 + $0x4b0] sm:$0xff] %v3987_v45  ;;  %v1150_v55 = vadd.f32 %v1149_v58, %v4965_v28  ;;  %v1310_v19 = vadd.f32 %v1309_v54, %v4965_v28 }
 0x1aa   : > { %v1153_v15 = vpop.f32.mrf.mxu0  ;;  %v1313_v52 = vpop.f32.mrf.mxu1  ;;  %1585 = vmatmul.mubr.bf16.gmra.mxu1 %v4661_v27  ;;  %1938 = vmatmul.mubr.bf16.gmra.mxu0 %v4661_v27 }
 0x1ab   : > { %v3894_v4 = vpack.c.bf16 %v1150_v55, %v1148_v7  ;;  %v3990_v46 = vpack.c.bf16 %v1310_v19, %v1308_v18  ;;  %1594 = vmatprep.mubr.bf16.mxu1 %v4665_v29  ;;  %1947 = vmatprep.mubr.bf16.mxu0 %v4665_v29  ;;  %v1154_v17 = vadd.f32 %v1153_v15, %v4962_v26 }
 0x1ac   : > { %v1155_v60 = vpop.f32.mrf.mxu0  ;;  %v1315_v50 = vpop.f32.mrf.mxu1  ;;  %v1314_v30 = vadd.f32 %v1313_v52, %v4962_v26 }
 0x1ad   : > { %3287 = vst [vmem:[%s4976_s20 + $0x1c8] sm:$0xff] %v3894_v4  ;;  %3383 = vst [vmem:[%s4976_s20 + $0x4c8] sm:$0xff] %v3990_v46  ;;  %v1156_v10 = vadd.f32 %v1155_v60, %v4965_v28  ;;  %v1316_v27 = vadd.f32 %v1315_v50, %v4965_v28 }
 0x1ae   : > { %v1157_v12 = vpop.f32.mrf.mxu0  ;;  %v1317_v36 = vpop.f32.mrf.mxu1 }
 0x1af   : > { %v3897_v56 = vpack.c.bf16 %v1156_v10, %v1154_v17  ;;  %v3993_v49 = vpack.c.bf16 %v1316_v27, %v1314_v30  ;;  %v1158_v29 = vadd.f32 %v1157_v12, %v4962_v26  ;;  %v1318_v20 = vadd.f32 %v1317_v36, %v4962_v26 }
 0x1b0   : > { %v1159_v38 = vpop.f32.mrf.mxu0  ;;  %v1319_v0 = vpop.f32.mrf.mxu1 }
 0x1b1   : > { %3290 = vst [vmem:[%s4976_s20 + $0x1e0] sm:$0xff] %v3897_v56  ;;  %3386 = vst [vmem:[%s4976_s20 + $0x4e0] sm:$0xff] %v3993_v49  ;;  %v1160_v2 = vadd.f32 %v1159_v38, %v4965_v28  ;;  %v1320_v32 = vadd.f32 %v1319_v0, %v4965_v28 }
 0x1b2   : > { %v1163_v34 = vpop.f32.mrf.mxu0  ;;  %v1323_v53 = vpop.f32.mrf.mxu1  ;;  %1595 = vmatmul.mubr.bf16.gmra.mxu1 %v4681_v47  ;;  %1948 = vmatmul.mubr.bf16.gmra.mxu0 %v4681_v47 }
 0x1b3   : > { %v3900_v63 = vpack.c.bf16 %v1160_v2, %v1158_v29  ;;  %v3996_v40 = vpack.c.bf16 %v1320_v32, %v1318_v20  ;;  %1604 = vmatprep.mubr.bf16.mxu1 %v4685_v51  ;;  %1957 = vmatprep.mubr.bf16.mxu0 %v4685_v51  ;;  %v1164_v33 = vadd.f32 %v1163_v34, %v4962_v26 }
 0x1b4   : > { %v1165_v31 = vpop.f32.mrf.mxu0  ;;  %v1325_v24 = vpop.f32.mrf.mxu1  ;;  %v1324_v8 = vadd.f32 %v1323_v53, %v4962_v26 }
 0x1b5   : > { %3293 = vst [vmem:[%s4976_s20 + $0x1f8] sm:$0xff] %v3900_v63  ;;  %3389 = vst [vmem:[%s4976_s20 + $0x4f8] sm:$0xff] %v3996_v40  ;;  %v1166_v59 = vadd.f32 %v1165_v31, %v4965_v28  ;;  %v1326_v47 = vadd.f32 %v1325_v24, %v4965_v28 }
 0x1b6   : > { %v1167_v14 = vpop.f32.mrf.mxu0  ;;  %v1327_v43 = vpop.f32.mrf.mxu1 }
 0x1b7   : > { %v3903_v22 = vpack.c.bf16 %v1166_v59, %v1164_v33  ;;  %v3999_v62 = vpack.c.bf16 %v1326_v47, %v1324_v8  ;;  %v1168_v51 = vadd.f32 %v1167_v14, %v4962_v26  ;;  %v1328_v23 = vadd.f32 %v1327_v43, %v4962_v26 }
 0x1b8   : > { %v1169_v42 = vpop.f32.mrf.mxu0  ;;  %v1329_v5 = vpop.f32.mrf.mxu1 }
 0x1b9   : > { %3296 = vst [vmem:[%s4976_s20 + $0x210] sm:$0xff] %v3903_v22  ;;  %3392 = vst [vmem:[%s4976_s20 + $0x510] sm:$0xff] %v3999_v62  ;;  %v1170_v25 = vadd.f32 %v1169_v42, %v4965_v28  ;;  %v1330_v44 = vadd.f32 %v1329_v5, %v4965_v28 }
 0x1ba   : > { %v1173_v45 = vpop.f32.mrf.mxu0  ;;  %v1333_v58 = vpop.f32.mrf.mxu1  ;;  %1605 = vmatmul.mubr.bf16.gmra.mxu1 %v4701_v11  ;;  %1958 = vmatmul.mubr.bf16.gmra.mxu0 %v4701_v11 }
 0x1bb   : > { %v3906_v54 = vpack.c.bf16 %v1170_v25, %v1168_v51  ;;  %v4002_v7 = vpack.c.bf16 %v1330_v44, %v1328_v23  ;;  %1614 = vmatprep.mubr.bf16.mxu1 %v4705_v13  ;;  %1967 = vmatprep.mubr.bf16.mxu0 %v4705_v13  ;;  %v1174_v19 = vadd.f32 %v1173_v45, %v4962_v26 }
 0x1bc   : > { %v1175_v18 = vpop.f32.mrf.mxu0  ;;  %v1335_v55 = vpop.f32.mrf.mxu1  ;;  %v1334_v15 = vadd.f32 %v1333_v58, %v4962_v26 }
 0x1bd   : > { %3299 = vst [vmem:[%s4976_s20 + $0x228] sm:$0xff] %v3906_v54  ;;  %3395 = vst [vmem:[%s4976_s20 + $0x528] sm:$0xff] %v4002_v7  ;;  %v1176_v52 = vadd.f32 %v1175_v18, %v4965_v28  ;;  %v1336_v11 = vadd.f32 %v1335_v55, %v4965_v28 }
 0x1be   : > { %v1177_v4 = vpop.f32.mrf.mxu0  ;;  %v1337_v46 = vpop.f32.mrf.mxu1 }
 0x1bf   : > { %v3909_v60 = vpack.c.bf16 %v1176_v52, %v1174_v19  ;;  %v4005_v50 = vpack.c.bf16 %v1336_v11, %v1334_v15  ;;  %v1178_v13 = vadd.f32 %v1177_v4, %v4962_v26  ;;  %v1338_v10 = vadd.f32 %v1337_v46, %v4962_v26 }
 0x1c0   : > { %v1179_v17 = vpop.f32.mrf.mxu0  ;;  %v1339_v30 = vpop.f32.mrf.mxu1 }
 0x1c1   : > { %3302 = vst [vmem:[%s4976_s20 + $0x240] sm:$0xff] %v3909_v60  ;;  %3398 = vst [vmem:[%s4976_s20 + $0x540] sm:$0xff] %v4005_v50  ;;  %v1180_v27 = vadd.f32 %v1179_v17, %v4965_v28  ;;  %v1340_v12 = vadd.f32 %v1339_v30, %v4965_v28  ;;  %v519_v50 = vsub.s32 2, %v4951_v48  ;;  %v527_v17 = vsub.s32 4, %v4951_v48 }
 0x1c2   : > { %v1183_v36 = vpop.f32.mrf.mxu0  ;;  %v1343_v56 = vpop.f32.mrf.mxu1  ;;  %1615 = vmatmul.mubr.bf16.gmra.mxu1 %v4721_v37  ;;  %1968 = vmatmul.mubr.bf16.gmra.mxu0 %v4721_v37  ;;  %v523_v30 = vsub.s32 3, %v4951_v48 }
 0x1c3   : > { %v3912_v49 = vpack.c.bf16 %v1180_v27, %v1178_v13  ;;  %v4008_v38 = vpack.c.bf16 %v1340_v12, %v1338_v10  ;;  %1624 = vmatprep.mubr.bf16.mxu1 %v4725_v39  ;;  %1977 = vmatprep.mubr.bf16.mxu0 %v4725_v39  ;;  %v1184_v20 = vadd.f32 %v1183_v36, %v4962_v26  ;;  %v531_v13 = vsub.s32 5, %v4951_v48 }
 0x1c4   : > { %v1185_v0 = vpop.f32.mrf.mxu0  ;;  %v1345_v29 = vpop.f32.mrf.mxu1  ;;  %v1344_v2 = vadd.f32 %v1343_v56, %v4962_v26  ;;  %v5223_v48 = vrot.slane %v4959_v6, %v519_v50 }
 0x1c5   : > { %3305 = vst [vmem:[%s4976_s20 + $0x258] sm:$0xff] %v3912_v49  ;;  %3401 = vst [vmem:[%s4976_s20 + $0x558] sm:$0xff] %v4008_v38  ;;  %v1186_v32 = vadd.f32 %v1185_v0, %v4965_v28  ;;  %v1346_v37 = vadd.f32 %v1345_v29, %v4965_v28  ;;  %v5226_v29 = vrot.slane %v4959_v6, %v527_v17 }
 0x1c6   : > { %v1187_v34 = vpop.f32.mrf.mxu0  ;;  %v1347_v53 = vpop.f32.mrf.mxu1 }
 0x1c7   : > { %v3915_v63 = vpack.c.bf16 %v1186_v32, %v1184_v20  ;;  %v4011_v40 = vpack.c.bf16 %v1346_v37, %v1344_v2  ;;  %v1188_v39 = vadd.f32 %v1187_v34, %v4962_v26  ;;  %v1348_v33 = vadd.f32 %v1347_v53, %v4962_v26 }
 0x1c8   : > { %v1189_v31 = vpop.f32.mrf.mxu0  ;;  %v1349_v24 = vpop.f32.mrf.mxu1  ;;  %v5229_v20 = vrot.slane %v4959_v6, %v523_v30  ;;  %v5232_v2 = vrot.slane %v4959_v6, %v531_v13 }
 0x1c9   : > { %3308 = vst [vmem:[%s4976_s20 + $0x270] sm:$0xff] %v3915_v63  ;;  %3404 = vst [vmem:[%s4976_s20 + $0x570] sm:$0xff] %v4011_v40  ;;  %v1190_v8 = vadd.f32 %v1189_v31, %v4965_v28  ;;  %v1350_v59 = vadd.f32 %v1349_v24, %v4965_v28 }
 0x1ca   : > { %v1193_v47 = vpop.f32.mrf.mxu0  ;;  %v1353_v14 = vpop.f32.mrf.mxu1  ;;  %1625 = vmatmul.mubr.bf16.gmra.mxu1 %v4741_v1  ;;  %1978 = vmatmul.mubr.bf16.gmra.mxu0 %v4741_v1 }
 0x1cb   : > { %v3918_v43 = vpack.c.bf16 %v1190_v8, %v1188_v39  ;;  %v4014_v22 = vpack.c.bf16 %v1350_v59, %v1348_v33  ;;  %1634 = vmatprep.mubr.bf16.mxu1 %v4745_v3  ;;  %1987 = vmatprep.mubr.bf16.mxu0 %v4745_v3  ;;  %v1194_v5 = vadd.f32 %v1193_v47, %v4962_v26 }
 0x1cc   : > { %v1195_v62 = vpop.f32.mrf.mxu0  ;;  %v1355_v42 = vpop.f32.mrf.mxu1  ;;  %v1354_v51 = vadd.f32 %v1353_v14, %v4962_v26 }
 0x1cd   : > { %3311 = vst [vmem:[%s4976_s20 + $0x288] sm:$0xff] %v3918_v43  ;;  %3407 = vst [vmem:[%s4976_s20 + $0x588] sm:$0xff] %v4014_v22  ;;  %v1196_v23 = vadd.f32 %v1195_v62, %v4965_v28  ;;  %v1356_v1 = vadd.f32 %v1355_v42, %v4965_v28 }
 0x1ce   : > { %v1197_v25 = vpop.f32.mrf.mxu0  ;;  %v1357_v44 = vpop.f32.mrf.mxu1 }
 0x1cf   : > { %v3921_v45 = vpack.c.bf16 %v1196_v23, %v1194_v5  ;;  %v4017_v58 = vpack.c.bf16 %v1356_v1, %v1354_v51  ;;  %v1198_v3 = vadd.f32 %v1197_v25, %v4962_v26  ;;  %v1358_v18 = vadd.f32 %v1357_v44, %v4962_v26  ;;  %v5755_v23 = vld [vmem:[#allocation12_spill] sm:$0xff] }
 0x1d0   : > { %v1199_v54 = vpop.f32.mrf.mxu0  ;;  %v1359_v7 = vpop.f32.mrf.mxu1 }
 0x1d1   : > { %3314 = vst [vmem:[%s4976_s20 + $0x2a0] sm:$0xff] %v3921_v45  ;;  %3410 = vst [vmem:[%s4976_s20 + $0x5a0] sm:$0xff] %v4017_v58  ;;  %v1200_v55 = vadd.f32 %v1199_v54, %v4965_v28  ;;  %v1360_v19 = vadd.f32 %v1359_v7, %v4965_v28  ;;  %v5756_v45 = vld [vmem:[#allocation13_spill] sm:$0xff] }
 0x1d2   : > { %v1203_v15 = vpop.f32.mrf.mxu0  ;;  %v1363_v52 = vpop.f32.mrf.mxu1  ;;  %1635 = vmatmul.mubr.bf16.gmra.mxu1 %v4761_v35  ;;  %1988 = vmatmul.mubr.bf16.gmra.mxu0 %v4761_v35 }
 0x1d3   : > { %v3924_v11 = vpack.c.bf16 %v1200_v55, %v1198_v3  ;;  %v4020_v4 = vpack.c.bf16 %v1360_v19, %v1358_v18  ;;  %1644 = vmatprep.mubr.bf16.mxu1 %v4765_v41  ;;  %1997 = vmatprep.mubr.bf16.mxu0 %v4765_v41  ;;  %v1204_v35 = vadd.f32 %v1203_v15, %v4962_v26 }
 0x1d4   : > { %v1205_v46 = vpop.f32.mrf.mxu0  ;;  %v1365_v60 = vpop.f32.mrf.mxu1  ;;  %v1364_v10 = vadd.f32 %v1363_v52, %v4962_v26 }
 0x1d5   : > { %3317 = vst [vmem:[%s4976_s20 + $0x2b8] sm:$0xff] %v3924_v11  ;;  %3413 = vst [vmem:[%s4976_s20 + $0x5b8] sm:$0xff] %v4020_v4  ;;  %v1206_v27 = vadd.f32 %v1205_v46, %v4965_v28  ;;  %v1366_v41 = vadd.f32 %v1365_v60, %v4965_v28 }
 0x1d6   : > { %v1207_v12 = vpop.f32.mrf.mxu0  ;;  %v1367_v36 = vpop.f32.mrf.mxu1 }
 0x1d7   : > { %v3927_v56 = vpack.c.bf16 %v1206_v27, %v1204_v35  ;;  %v4023_v49 = vpack.c.bf16 %v1366_v41, %v1364_v10  ;;  %v1208_v32 = vadd.f32 %v1207_v12, %v4962_v26  ;;  %v1368_v37 = vadd.f32 %v1367_v36, %v4962_v26  ;;  %v5757_v35 = vld [vmem:[#allocation14_spill] sm:$0xff]  ;;  %v5758_v12 = vld [vmem:[#allocation15_spill] sm:$0xff] }
 0x1d8   : > { %v1209_v38 = vpop.f32.mrf.mxu0  ;;  %v1369_v0 = vpop.f32.mrf.mxu1 }
 0x1d9   : > { %3320 = vst [vmem:[%s4976_s20 + $0x2d0] sm:$0xff] %v3927_v56  ;;  %3416 = vst [vmem:[%s4976_s20 + $0x5d0] sm:$0xff] %v4023_v49  ;;  %v1210_v34 = vadd.f32 %v1209_v38, %v4965_v28  ;;  %v1370_v53 = vadd.f32 %v1369_v0, %v4965_v28 }
 0x1da   : > { %v1406_v63 = vpop.f32.mrf.mxu1  ;;  %1645 = vmatmul.mubr.bf16.gmra.mxu1 %v4781_v9  ;;  %v1759_v40 = vpop.f32.mrf.mxu0  ;;  %1998 = vmatmul.mubr.bf16.gmra.mxu0 %v4781_v9 }
 0x1db   : > { %v3930_v6 = vpack.c.bf16 %v1210_v34, %v1208_v32  ;;  %v4026_v31 = vpack.c.bf16 %v1370_v53, %v1368_v37  ;;  %1654 = vmatprep.mubr.bf16.mxu1 %v4785_v16  ;;  %2007 = vmatprep.mubr.bf16.mxu0 %v4785_v16  ;;  %v1407_v26 = vadd.f32 %v1406_v63, %v5223_v48 }
 0x1dc   : > { %v1408_v24 = vpop.f32.mrf.mxu1  ;;  %v1761_v39 = vpop.f32.mrf.mxu0  ;;  %v1760_v28 = vadd.f32 %v1759_v40, %v5226_v29 }
 0x1dd   : > { %3323 = vst [vmem:[%s4976_s20 + $0x2e8] sm:$0xff] %v3930_v6  ;;  %3419 = vst [vmem:[%s4976_s20 + $0x5e8] sm:$0xff] %v4026_v31  ;;  %v1409_v33 = vadd.f32 %v1408_v24, %v5229_v20  ;;  %v1762_v9 = vadd.f32 %v1761_v39, %v5232_v2 }
 0x1de   : > { %v1410_v8 = vpop.f32.mrf.mxu1  ;;  %v1763_v59 = vpop.f32.mrf.mxu0 }
 0x1df   : > { %v3838_v47 = vpack.c.bf16 %v1409_v33, %v1407_v26  ;;  %v3839_v14 = vpack.c.bf16 %v1762_v9, %v1760_v28  ;;  %v1411_v16 = vadd.f32 %v1410_v8, %v5223_v48  ;;  %v1764_v62 = vadd.f32 %v1763_v59, %v5226_v29  ;;  %v5759_v33 = vld [vmem:[#allocation16_spill] sm:$0xff] }
 0x1e0   : > { %v1412_v43 = vpop.f32.mrf.mxu1  ;;  %v1765_v22 = vpop.f32.mrf.mxu0 }
 0x1e1   : > { %3231 = vst [vmem:[%s4976_s20 + $0x8] sm:$0xff] %v3838_v47  ;;  %3232 = vst [vmem:[%s4976_s20 + $0x10] sm:$0xff] %v3839_v14  ;;  %v1413_v42 = vadd.f32 %v1412_v43, %v5229_v20  ;;  %v1766_v5 = vadd.f32 %v1765_v22, %v5232_v2  ;;  %v5760_v47 = vld [vmem:[#allocation17_spill] sm:$0xff] }
 0x1e2   : > { %v1416_v51 = vpop.f32.mrf.mxu1  ;;  %1655 = vmatmul.mubr.bf16.gmra.mxu1 %v5755_v23  ;;  %v1769_v1 = vpop.f32.mrf.mxu0  ;;  %2008 = vmatmul.mubr.bf16.gmra.mxu0 %v5755_v23 }
 0x1e3   : > { %v3841_v25 = vpack.c.bf16 %v1413_v42, %v1411_v16  ;;  %v3842_v44 = vpack.c.bf16 %v1766_v5, %v1764_v62  ;;  %1664 = vmatprep.mubr.bf16.mxu1 %v5756_v45  ;;  %2017 = vmatprep.mubr.bf16.mxu0 %v5756_v45  ;;  %v1417_v7 = vadd.f32 %v1416_v51, %v5223_v48 }
 0x1e4   : > { %v1418_v58 = vpop.f32.mrf.mxu1  ;;  %v1771_v54 = vpop.f32.mrf.mxu0  ;;  %v1770_v3 = vadd.f32 %v1769_v1, %v5226_v29 }
 0x1e5   : > { %3234 = vst [vmem:[%s4976_s20 + $0x20] sm:$0xff] %v3841_v25  ;;  %3235 = vst [vmem:[%s4976_s20 + $0x28] sm:$0xff] %v3842_v44  ;;  %v1419_v18 = vadd.f32 %v1418_v58, %v5229_v20  ;;  %v1772_v55 = vadd.f32 %v1771_v54, %v5232_v2 }
 0x1e6   : > { %v1420_v19 = vpop.f32.mrf.mxu1  ;;  %v1773_v15 = vpop.f32.mrf.mxu0 }
 0x1e7   : > { %v3844_v52 = vpack.c.bf16 %v1419_v18, %v1417_v7  ;;  %v3845_v11 = vpack.c.bf16 %v1772_v55, %v1770_v3  ;;  %v1421_v60 = vadd.f32 %v1420_v19, %v5223_v48  ;;  %v1774_v50 = vadd.f32 %v1773_v15, %v5226_v29  ;;  %v5761_v18 = vld [vmem:[#allocation18_spill] sm:$0xff] }
 0x1e8   : > { %v1422_v4 = vpop.f32.mrf.mxu1  ;;  %v1775_v46 = vpop.f32.mrf.mxu0 }
 0x1e9   : > { %3237 = vst [vmem:[%s4976_s20 + $0x38] sm:$0xff] %v3844_v52  ;;  %3238 = vst [vmem:[%s4976_s20 + $0x40] sm:$0xff] %v3845_v11  ;;  %v1423_v17 = vadd.f32 %v1422_v4, %v5229_v20  ;;  %v1776_v30 = vadd.f32 %v1775_v46, %v5232_v2  ;;  %v5762_v52 = vld [vmem:[#allocation19_spill] sm:$0xff] }
 0x1ea   : > { %v1426_v13 = vpop.f32.mrf.mxu1  ;;  %1665 = vmatmul.mubr.bf16.gmra.mxu1 %v5757_v35  ;;  %v1779_v10 = vpop.f32.mrf.mxu0  ;;  %2018 = vmatmul.mubr.bf16.gmra.mxu0 %v5757_v35 }
 0x1eb   : > { %v3847_v27 = vpack.c.bf16 %v1423_v17, %v1421_v60  ;;  %v3848_v41 = vpack.c.bf16 %v1776_v30, %v1774_v50  ;;  %1674 = vmatprep.mubr.bf16.mxu1 %v5758_v12  ;;  %2027 = vmatprep.mubr.bf16.mxu0 %v5758_v12  ;;  %v1427_v49 = vadd.f32 %v1426_v13, %v5223_v48 }
 0x1ec   : > { %v1428_v36 = vpop.f32.mrf.mxu1  ;;  %v1781_v56 = vpop.f32.mrf.mxu0  ;;  %v1780_v38 = vadd.f32 %v1779_v10, %v5226_v29 }
 0x1ed   : > { %3240 = vst [vmem:[%s4976_s20 + $0x50] sm:$0xff] %v3847_v27  ;;  %3241 = vst [vmem:[%s4976_s20 + $0x58] sm:$0xff] %v3848_v41  ;;  %v1429_v0 = vadd.f32 %v1428_v36, %v5229_v20  ;;  %v1782_v32 = vadd.f32 %v1781_v56, %v5232_v2 }
 0x1ee   : > { %v1430_v37 = vpop.f32.mrf.mxu1  ;;  %v1783_v34 = vpop.f32.mrf.mxu0 }
 0x1ef   : > { %v3850_v53 = vpack.c.bf16 %v1429_v0, %v1427_v49  ;;  %v3851_v63 = vpack.c.bf16 %v1782_v32, %v1780_v38  ;;  %v1431_v31 = vadd.f32 %v1430_v37, %v5223_v48  ;;  %v1784_v24 = vadd.f32 %v1783_v34, %v5226_v29  ;;  %v5763_v0 = vld [vmem:[#allocation20_spill] sm:$0xff] }
 0x1f0   : > { %v1432_v40 = vpop.f32.mrf.mxu1  ;;  %v1785_v6 = vpop.f32.mrf.mxu0 }
 0x1f1   : > { %3243 = vst [vmem:[%s4976_s20 + $0x68] sm:$0xff] %v3850_v53  ;;  %3244 = vst [vmem:[%s4976_s20 + $0x70] sm:$0xff] %v3851_v63  ;;  %v1433_v39 = vadd.f32 %v1432_v40, %v5229_v20  ;;  %v1786_v26 = vadd.f32 %v1785_v6, %v5232_v2  ;;  %v5764_v53 = vld [vmem:[#allocation21_spill] sm:$0xff] }
 0x1f2   : > { %v1436_v28 = vpop.f32.mrf.mxu1  ;;  %1675 = vmatmul.mubr.bf16.gmra.mxu1 %v5759_v33  ;;  %v1789_v9 = vpop.f32.mrf.mxu0  ;;  %2028 = vmatmul.mubr.bf16.gmra.mxu0 %v5759_v33 }
 0x1f3   : > { %v3853_v8 = vpack.c.bf16 %v1433_v39, %v1431_v31  ;;  %v3854_v59 = vpack.c.bf16 %v1786_v26, %v1784_v24  ;;  %1684 = vmatprep.mubr.bf16.mxu1 %v5760_v47  ;;  %2037 = vmatprep.mubr.bf16.mxu0 %v5760_v47  ;;  %v1437_v22 = vadd.f32 %v1436_v28, %v5223_v48 }
 0x1f4   : > { %v1438_v14 = vpop.f32.mrf.mxu1  ;;  %v1791_v43 = vpop.f32.mrf.mxu0  ;;  %v1790_v16 = vadd.f32 %v1789_v9, %v5226_v29 }
 0x1f5   : > { %3246 = vst [vmem:[%s4976_s20 + $0x80] sm:$0xff] %v3853_v8  ;;  %3247 = vst [vmem:[%s4976_s20 + $0x88] sm:$0xff] %v3854_v59  ;;  %v1439_v62 = vadd.f32 %v1438_v14, %v5229_v20  ;;  %v1792_v42 = vadd.f32 %v1791_v43, %v5232_v2 }
 0x1f6   : > { %v1440_v5 = vpop.f32.mrf.mxu1  ;;  %v1793_v51 = vpop.f32.mrf.mxu0 }
 0x1f7   : > { %v3856_v23 = vpack.c.bf16 %v1439_v62, %v1437_v22  ;;  %v3857_v1 = vpack.c.bf16 %v1792_v42, %v1790_v16  ;;  %v1441_v45 = vadd.f32 %v1440_v5, %v5223_v48  ;;  %v1794_v58 = vadd.f32 %v1793_v51, %v5226_v29 }
 0x1f8   : > { %v1442_v25 = vpop.f32.mrf.mxu1  ;;  %v1795_v44 = vpop.f32.mrf.mxu0 }
 0x1f9   : > { %3249 = vst [vmem:[%s4976_s20 + $0x98] sm:$0xff] %v3856_v23  ;;  %3250 = vst [vmem:[%s4976_s20 + $0xa0] sm:$0xff] %v3857_v1  ;;  %v1443_v54 = vadd.f32 %v1442_v25, %v5229_v20  ;;  %v1796_v7 = vadd.f32 %v1795_v44, %v5232_v2 }
 0x1fa   : > { %v1446_v3 = vpop.f32.mrf.mxu1  ;;  %1685 = vmatmul.mubr.bf16.gmra.mxu1 %v5761_v18  ;;  %v1799_v55 = vpop.f32.mrf.mxu0  ;;  %2038 = vmatmul.mubr.bf16.gmra.mxu0 %v5761_v18 }
 0x1fb   : > { %v3859_v19 = vpack.c.bf16 %v1443_v54, %v1441_v45  ;;  %v3860_v15 = vpack.c.bf16 %v1796_v7, %v1794_v58  ;;  %1694 = vmatprep.mubr.bf16.mxu1 %v5762_v52  ;;  %2047 = vmatprep.mubr.bf16.mxu0 %v5762_v52  ;;  %v1447_v46 = vadd.f32 %v1446_v3, %v5223_v48 }
 0x1fc   : > { %v1448_v11 = vpop.f32.mrf.mxu1  ;;  %v1801_v4 = vpop.f32.mrf.mxu0  ;;  %v1800_v60 = vadd.f32 %v1799_v55, %v5226_v29 }
 0x1fd   : > { %3252 = vst [vmem:[%s4976_s20 + $0xb0] sm:$0xff] %v3859_v19  ;;  %3253 = vst [vmem:[%s4976_s20 + $0xb8] sm:$0xff] %v3860_v15  ;;  %v1449_v50 = vadd.f32 %v1448_v11, %v5229_v20  ;;  %v1802_v17 = vadd.f32 %v1801_v4, %v5232_v2 }
 0x1fe   : > { %v1450_v30 = vpop.f32.mrf.mxu1  ;;  %v1803_v13 = vpop.f32.mrf.mxu0 }
 0x1ff   : > { %v3862_v35 = vpack.c.bf16 %v1449_v50, %v1447_v46  ;;  %v3863_v10 = vpack.c.bf16 %v1802_v17, %v1800_v60  ;;  %v1451_v12 = vadd.f32 %v1450_v30, %v5223_v48  ;;  %v1804_v36 = vadd.f32 %v1803_v13, %v5226_v29 }
 0x200   : > { %v1452_v27 = vpop.f32.mrf.mxu1  ;;  %v1805_v41 = vpop.f32.mrf.mxu0 }
 0x201   : > { %3255 = vst [vmem:[%s4976_s20 + $0xc8] sm:$0xff] %v3862_v35  ;;  %3256 = vst [vmem:[%s4976_s20 + $0xd0] sm:$0xff] %v3863_v10  ;;  %v1453_v56 = vadd.f32 %v1452_v27, %v5229_v20  ;;  %v1806_v49 = vadd.f32 %v1805_v41, %v5232_v2 }
 0x202   : > { %v1456_v38 = vpop.f32.mrf.mxu1  ;;  %1695 = vmatmul.mubr.bf16.gmra.mxu1 %v5763_v0  ;;  %v1809_v32 = vpop.f32.mrf.mxu0  ;;  %2048 = vmatmul.mubr.bf16.gmra.mxu0 %v5763_v0 }
 0x203   : > { %v3865_v37 = vpack.c.bf16 %v1453_v56, %v1451_v12  ;;  %v3866_v34 = vpack.c.bf16 %v1806_v49, %v1804_v36  ;;  %1704 = vmatprep.mubr.bf16.mxu1 %v5764_v53  ;;  %2057 = vmatprep.mubr.bf16.mxu0 %v5764_v53  ;;  %v1457_v6 = vadd.f32 %v1456_v38, %v5223_v48 }
 0x204   : > { %v1458_v63 = vpop.f32.mrf.mxu1  ;;  %v1811_v40 = vpop.f32.mrf.mxu0  ;;  %v1810_v31 = vadd.f32 %v1809_v32, %v5226_v29 }
 0x205   : > { %3258 = vst [vmem:[%s4976_s20 + $0xe0] sm:$0xff] %v3865_v37  ;;  %3259 = vst [vmem:[%s4976_s20 + $0xe8] sm:$0xff] %v3866_v34  ;;  %v1459_v24 = vadd.f32 %v1458_v63, %v5229_v20  ;;  %v1812_v39 = vadd.f32 %v1811_v40, %v5232_v2 }
 0x206   : > { %v1460_v26 = vpop.f32.mrf.mxu1  ;;  %v1813_v28 = vpop.f32.mrf.mxu0 }
 0x207   : > { %v3868_v33 = vpack.c.bf16 %v1459_v24, %v1457_v6  ;;  %v3869_v9 = vpack.c.bf16 %v1812_v39, %v1810_v31  ;;  %v1461_v47 = vadd.f32 %v1460_v26, %v5223_v48  ;;  %v1814_v14 = vadd.f32 %v1813_v28, %v5226_v29 }
 0x208   : > { %v1462_v8 = vpop.f32.mrf.mxu1  ;;  %v1815_v59 = vpop.f32.mrf.mxu0 }
 0x209   : > { %3261 = vst [vmem:[%s4976_s20 + $0xf8] sm:$0xff] %v3868_v33  ;;  %3262 = vst [vmem:[%s4976_s20 + $0x100] sm:$0xff] %v3869_v9  ;;  %v1463_v43 = vadd.f32 %v1462_v8, %v5229_v20  ;;  %v1816_v22 = vadd.f32 %v1815_v59, %v5232_v2 }
 0x20a   : > { %v1466_v16 = vpop.f32.mrf.mxu1  ;;  %1705 = vmatmul.mubr.bf16.gmra.mxu1 %v4901_v57  ;;  %v1819_v62 = vpop.f32.mrf.mxu0  ;;  %2058 = vmatmul.mubr.bf16.gmra.mxu0 %v4901_v57 }
 0x20b   : > { %v3871_v42 = vpack.c.bf16 %v1463_v43, %v1461_v47  ;;  %v3872_v5 = vpack.c.bf16 %v1816_v22, %v1814_v14  ;;  %1714 = vmatprep.mubr.bf16.mxu1 %v4905_v61  ;;  %2067 = vmatprep.mubr.bf16.mxu0 %v4905_v61  ;;  %v1467_v1 = vadd.f32 %v1466_v16, %v5223_v48 }
 0x20c   : > { %v1468_v51 = vpop.f32.mrf.mxu1  ;;  %v1821_v23 = vpop.f32.mrf.mxu0  ;;  %v1820_v25 = vadd.f32 %v1819_v62, %v5226_v29 }
 0x20d   : > { %3264 = vst [vmem:[%s4976_s20 + $0x110] sm:$0xff] %v3871_v42  ;;  %3265 = vst [vmem:[%s4976_s20 + $0x118] sm:$0xff] %v3872_v5  ;;  %v1469_v44 = vadd.f32 %v1468_v51, %v5229_v20  ;;  %v1822_v57 = vadd.f32 %v1821_v23, %v5232_v2 }
 0x20e   : > { %v1470_v45 = vpop.f32.mrf.mxu1  ;;  %v1823_v58 = vpop.f32.mrf.mxu0 }
 0x20f   : > { %v3874_v54 = vpack.c.bf16 %v1469_v44, %v1467_v1  ;;  %v3875_v7 = vpack.c.bf16 %v1822_v57, %v1820_v25  ;;  %v1471_v61 = vadd.f32 %v1470_v45, %v5223_v48  ;;  %v1824_v55 = vadd.f32 %v1823_v58, %v5226_v29 }
 0x210   : > { %v1472_v3 = vpop.f32.mrf.mxu1  ;;  %v1825_v18 = vpop.f32.mrf.mxu0 }
 0x211   : > { %3267 = vst [vmem:[%s4976_s20 + $0x128] sm:$0xff] %v3874_v54  ;;  %3268 = vst [vmem:[%s4976_s20 + $0x130] sm:$0xff] %v3875_v7  ;;  %v1473_v19 = vadd.f32 %v1472_v3, %v5229_v20  ;;  %v1826_v15 = vadd.f32 %v1825_v18, %v5232_v2 }
 0x212   : > { %v1476_v52 = vpop.f32.mrf.mxu1  ;;  %1715 = vmatmul.mubr.bf16.gmra.mxu1 %v4917_v21  ;;  %v1829_v11 = vpop.f32.mrf.mxu0  ;;  %2068 = vmatmul.mubr.bf16.gmra.mxu0 %v4917_v21 }
 0x213   : > { %v3877_v4 = vpack.c.bf16 %v1473_v19, %v1471_v61  ;;  %v3878_v46 = vpack.c.bf16 %v1826_v15, %v1824_v55  ;;  %v1477_v17 = vadd.f32 %v1476_v52, %v5223_v48  ;;  %v1830_v30 = vadd.f32 %v1829_v11, %v5226_v29 }
 0x214   : > { %v1478_v60 = vpop.f32.mrf.mxu1  ;;  %v1831_v50 = vpop.f32.mrf.mxu0 }
 0x215   : > { %3270 = vst [vmem:[%s4976_s20 + $0x140] sm:$0xff] %v3877_v4  ;;  %3271 = vst [vmem:[%s4976_s20 + $0x148] sm:$0xff] %v3878_v46  ;;  %v1479_v13 = vadd.f32 %v1478_v60, %v5229_v20  ;;  %v1832_v35 = vadd.f32 %v1831_v50, %v5232_v2 }
 0x216   : > { %v1480_v10 = vpop.f32.mrf.mxu1  ;;  %v1833_v27 = vpop.f32.mrf.mxu0 }
 0x217   : > { %v3880_v41 = vpack.c.bf16 %v1479_v13, %v1477_v17  ;;  %v3881_v21 = vpack.c.bf16 %v1832_v35, %v1830_v30  ;;  %v1481_v56 = vadd.f32 %v1480_v10, %v5223_v48  ;;  %v1834_v49 = vadd.f32 %v1833_v27, %v5226_v29 }
 0x218   : > { %v1482_v12 = vpop.f32.mrf.mxu1  ;;  %v1835_v36 = vpop.f32.mrf.mxu0 }
 0x219   : > { %3273 = vst [vmem:[%s4976_s20 + $0x158] sm:$0xff] %v3880_v41  ;;  %3274 = vst [vmem:[%s4976_s20 + $0x160] sm:$0xff] %v3881_v21  ;;  %v1483_v38 = vadd.f32 %v1482_v12, %v5229_v20  ;;  %v1836_v0 = vadd.f32 %v1835_v36, %v5232_v2 }
 0x21a   : > { %v1486_v32 = vpop.f32.mrf.mxu1  ;;  %v1839_v37 = vpop.f32.mrf.mxu0 }
 0x21b   : > { %v3883_v34 = vpack.c.bf16 %v1483_v38, %v1481_v56  ;;  %v3884_v53 = vpack.c.bf16 %v1836_v0, %v1834_v49  ;;  %v1487_v6 = vadd.f32 %v1486_v32, %v5223_v48  ;;  %v1840_v31 = vadd.f32 %v1839_v37, %v5226_v29 }
 0x21c   : > { %v1488_v63 = vpop.f32.mrf.mxu1  ;;  %v1841_v40 = vpop.f32.mrf.mxu0 }
 0x21d   : > { %3276 = vst [vmem:[%s4976_s20 + $0x170] sm:$0xff] %v3883_v34  ;;  %3277 = vst [vmem:[%s4976_s20 + $0x178] sm:$0xff] %v3884_v53  ;;  %v1489_v24 = vadd.f32 %v1488_v63, %v5229_v20  ;;  %v1842_v39 = vadd.f32 %v1841_v40, %v5232_v2 }
 0x21e   : > { %v1490_v26 = vpop.f32.mrf.mxu1  ;;  %v1843_v28 = vpop.f32.mrf.mxu0 }
 0x21f   : > { %v3886_v33 = vpack.c.bf16 %v1489_v24, %v1487_v6  ;;  %v3887_v9 = vpack.c.bf16 %v1842_v39, %v1840_v31  ;;  %v1491_v47 = vadd.f32 %v1490_v26, %v5223_v48  ;;  %v1844_v14 = vadd.f32 %v1843_v28, %v5226_v29 }
 0x220   : > { %v1492_v8 = vpop.f32.mrf.mxu1  ;;  %v1845_v59 = vpop.f32.mrf.mxu0 }
 0x221   : > { %3279 = vst [vmem:[%s4976_s20 + $0x188] sm:$0xff] %v3886_v33  ;;  %3280 = vst [vmem:[%s4976_s20 + $0x190] sm:$0xff] %v3887_v9  ;;  %v1493_v43 = vadd.f32 %v1492_v8, %v5229_v20  ;;  %v1846_v22 = vadd.f32 %v1845_v59, %v5232_v2 }
 0x222   : > { %v1496_v16 = vpop.f32.mrf.mxu1  ;;  %v1849_v62 = vpop.f32.mrf.mxu0 }
 0x223   : > { %v3889_v42 = vpack.c.bf16 %v1493_v43, %v1491_v47  ;;  %v3890_v5 = vpack.c.bf16 %v1846_v22, %v1844_v14  ;;  %v1497_v1 = vadd.f32 %v1496_v16, %v5223_v48  ;;  %v1850_v25 = vadd.f32 %v1849_v62, %v5226_v29 }
 0x224   : > { %v1498_v51 = vpop.f32.mrf.mxu1  ;;  %v1851_v23 = vpop.f32.mrf.mxu0 }
 0x225   : > { %3282 = vst [vmem:[%s4976_s20 + $0x1a0] sm:$0xff] %v3889_v42  ;;  %3283 = vst [vmem:[%s4976_s20 + $0x1a8] sm:$0xff] %v3890_v5  ;;  %v1499_v44 = vadd.f32 %v1498_v51, %v5229_v20  ;;  %v1852_v57 = vadd.f32 %v1851_v23, %v5232_v2 }
 0x226   : > { %v1500_v45 = vpop.f32.mrf.mxu1  ;;  %v1853_v58 = vpop.f32.mrf.mxu0 }
 0x227   : > { %v3892_v54 = vpack.c.bf16 %v1499_v44, %v1497_v1  ;;  %v3893_v7 = vpack.c.bf16 %v1852_v57, %v1850_v25  ;;  %v1501_v61 = vadd.f32 %v1500_v45, %v5223_v48  ;;  %v1854_v55 = vadd.f32 %v1853_v58, %v5226_v29 }
 0x228   : > { %v1502_v3 = vpop.f32.mrf.mxu1  ;;  %v1855_v18 = vpop.f32.mrf.mxu0 }
 0x229   : > { %3285 = vst [vmem:[%s4976_s20 + $0x1b8] sm:$0xff] %v3892_v54  ;;  %3286 = vst [vmem:[%s4976_s20 + $0x1c0] sm:$0xff] %v3893_v7  ;;  %v1503_v19 = vadd.f32 %v1502_v3, %v5229_v20  ;;  %v1856_v15 = vadd.f32 %v1855_v18, %v5232_v2 }
 0x22a   : > { %v1506_v52 = vpop.f32.mrf.mxu1  ;;  %v1859_v11 = vpop.f32.mrf.mxu0 }
 0x22b   : > { %v3895_v4 = vpack.c.bf16 %v1503_v19, %v1501_v61  ;;  %v3896_v46 = vpack.c.bf16 %v1856_v15, %v1854_v55  ;;  %v1507_v17 = vadd.f32 %v1506_v52, %v5223_v48  ;;  %v1860_v30 = vadd.f32 %v1859_v11, %v5226_v29 }
 0x22c   : > { %v1508_v60 = vpop.f32.mrf.mxu1  ;;  %v1861_v50 = vpop.f32.mrf.mxu0 }
 0x22d   : > { %3288 = vst [vmem:[%s4976_s20 + $0x1d0] sm:$0xff] %v3895_v4  ;;  %3289 = vst [vmem:[%s4976_s20 + $0x1d8] sm:$0xff] %v3896_v46  ;;  %v1509_v13 = vadd.f32 %v1508_v60, %v5229_v20  ;;  %v1862_v35 = vadd.f32 %v1861_v50, %v5232_v2 }
 0x22e   : > { %v1510_v10 = vpop.f32.mrf.mxu1  ;;  %v1863_v27 = vpop.f32.mrf.mxu0 }
 0x22f   : > { %v3898_v41 = vpack.c.bf16 %v1509_v13, %v1507_v17  ;;  %v3899_v21 = vpack.c.bf16 %v1862_v35, %v1860_v30  ;;  %v1511_v56 = vadd.f32 %v1510_v10, %v5223_v48  ;;  %v1864_v49 = vadd.f32 %v1863_v27, %v5226_v29 }
 0x230   : > { %v1512_v12 = vpop.f32.mrf.mxu1  ;;  %v1865_v36 = vpop.f32.mrf.mxu0 }
 0x231   : > { %3291 = vst [vmem:[%s4976_s20 + $0x1e8] sm:$0xff] %v3898_v41  ;;  %3292 = vst [vmem:[%s4976_s20 + $0x1f0] sm:$0xff] %v3899_v21  ;;  %v1513_v38 = vadd.f32 %v1512_v12, %v5229_v20  ;;  %v1866_v0 = vadd.f32 %v1865_v36, %v5232_v2 }
 0x232   : > { %v1516_v32 = vpop.f32.mrf.mxu1  ;;  %v1869_v37 = vpop.f32.mrf.mxu0 }
 0x233   : > { %v3901_v34 = vpack.c.bf16 %v1513_v38, %v1511_v56  ;;  %v3902_v53 = vpack.c.bf16 %v1866_v0, %v1864_v49  ;;  %v1517_v6 = vadd.f32 %v1516_v32, %v5223_v48  ;;  %v1870_v31 = vadd.f32 %v1869_v37, %v5226_v29 }
 0x234   : > { %v1518_v63 = vpop.f32.mrf.mxu1  ;;  %v1871_v40 = vpop.f32.mrf.mxu0 }
 0x235   : > { %3294 = vst [vmem:[%s4976_s20 + $0x200] sm:$0xff] %v3901_v34  ;;  %3295 = vst [vmem:[%s4976_s20 + $0x208] sm:$0xff] %v3902_v53  ;;  %v1519_v24 = vadd.f32 %v1518_v63, %v5229_v20  ;;  %v1872_v39 = vadd.f32 %v1871_v40, %v5232_v2 }
 0x236   : > { %v1520_v26 = vpop.f32.mrf.mxu1  ;;  %v1873_v28 = vpop.f32.mrf.mxu0 }
 0x237   : > { %v3904_v33 = vpack.c.bf16 %v1519_v24, %v1517_v6  ;;  %v3905_v9 = vpack.c.bf16 %v1872_v39, %v1870_v31  ;;  %v1521_v47 = vadd.f32 %v1520_v26, %v5223_v48  ;;  %v1874_v14 = vadd.f32 %v1873_v28, %v5226_v29 }
 0x238   : > { %v1522_v8 = vpop.f32.mrf.mxu1  ;;  %v1875_v59 = vpop.f32.mrf.mxu0 }
 0x239   : > { %3297 = vst [vmem:[%s4976_s20 + $0x218] sm:$0xff] %v3904_v33  ;;  %3298 = vst [vmem:[%s4976_s20 + $0x220] sm:$0xff] %v3905_v9  ;;  %v1523_v43 = vadd.f32 %v1522_v8, %v5229_v20  ;;  %v1876_v22 = vadd.f32 %v1875_v59, %v5232_v2 }
 0x23a   : > { %v1526_v16 = vpop.f32.mrf.mxu1  ;;  %v1879_v62 = vpop.f32.mrf.mxu0 }
 0x23b   : > { %v3907_v42 = vpack.c.bf16 %v1523_v43, %v1521_v47  ;;  %v3908_v5 = vpack.c.bf16 %v1876_v22, %v1874_v14  ;;  %v1527_v1 = vadd.f32 %v1526_v16, %v5223_v48  ;;  %v1880_v25 = vadd.f32 %v1879_v62, %v5226_v29 }
 0x23c   : > { %v1528_v51 = vpop.f32.mrf.mxu1  ;;  %v1881_v23 = vpop.f32.mrf.mxu0 }
 0x23d   : > { %3300 = vst [vmem:[%s4976_s20 + $0x230] sm:$0xff] %v3907_v42  ;;  %3301 = vst [vmem:[%s4976_s20 + $0x238] sm:$0xff] %v3908_v5  ;;  %v1529_v44 = vadd.f32 %v1528_v51, %v5229_v20  ;;  %v1882_v57 = vadd.f32 %v1881_v23, %v5232_v2 }
 0x23e   : > { %v1530_v45 = vpop.f32.mrf.mxu1  ;;  %v1883_v58 = vpop.f32.mrf.mxu0 }
 0x23f   : > { %v3910_v54 = vpack.c.bf16 %v1529_v44, %v1527_v1  ;;  %v3911_v7 = vpack.c.bf16 %v1882_v57, %v1880_v25  ;;  %v1531_v61 = vadd.f32 %v1530_v45, %v5223_v48  ;;  %v1884_v55 = vadd.f32 %v1883_v58, %v5226_v29 }
 0x240   : > { %v1532_v3 = vpop.f32.mrf.mxu1  ;;  %v1885_v18 = vpop.f32.mrf.mxu0 }
 0x241   : > { %3303 = vst [vmem:[%s4976_s20 + $0x248] sm:$0xff] %v3910_v54  ;;  %3304 = vst [vmem:[%s4976_s20 + $0x250] sm:$0xff] %v3911_v7  ;;  %v1533_v19 = vadd.f32 %v1532_v3, %v5229_v20  ;;  %v1886_v15 = vadd.f32 %v1885_v18, %v5232_v2 }
 0x242   : > { %v1536_v52 = vpop.f32.mrf.mxu1  ;;  %v1889_v11 = vpop.f32.mrf.mxu0 }
 0x243   : > { %v3913_v4 = vpack.c.bf16 %v1533_v19, %v1531_v61  ;;  %v3914_v46 = vpack.c.bf16 %v1886_v15, %v1884_v55  ;;  %v1537_v17 = vadd.f32 %v1536_v52, %v5223_v48  ;;  %v1890_v30 = vadd.f32 %v1889_v11, %v5226_v29 }
 0x244   : > { %v1538_v60 = vpop.f32.mrf.mxu1  ;;  %v1891_v50 = vpop.f32.mrf.mxu0 }
 0x245   : > { %3306 = vst [vmem:[%s4976_s20 + $0x260] sm:$0xff] %v3913_v4  ;;  %3307 = vst [vmem:[%s4976_s20 + $0x268] sm:$0xff] %v3914_v46  ;;  %v1539_v13 = vadd.f32 %v1538_v60, %v5229_v20  ;;  %v1892_v35 = vadd.f32 %v1891_v50, %v5232_v2 }
 0x246   : > { %v1540_v10 = vpop.f32.mrf.mxu1  ;;  %v1893_v27 = vpop.f32.mrf.mxu0 }
 0x247   : > { %v3916_v41 = vpack.c.bf16 %v1539_v13, %v1537_v17  ;;  %v3917_v21 = vpack.c.bf16 %v1892_v35, %v1890_v30  ;;  %v1541_v56 = vadd.f32 %v1540_v10, %v5223_v48  ;;  %v1894_v49 = vadd.f32 %v1893_v27, %v5226_v29 }
 0x248   : > { %v1542_v12 = vpop.f32.mrf.mxu1  ;;  %v1895_v36 = vpop.f32.mrf.mxu0 }
 0x249   : > { %3309 = vst [vmem:[%s4976_s20 + $0x278] sm:$0xff] %v3916_v41  ;;  %3310 = vst [vmem:[%s4976_s20 + $0x280] sm:$0xff] %v3917_v21  ;;  %v1543_v38 = vadd.f32 %v1542_v12, %v5229_v20  ;;  %v1896_v0 = vadd.f32 %v1895_v36, %v5232_v2 }
 0x24a   : > { %v1546_v32 = vpop.f32.mrf.mxu1  ;;  %v1899_v37 = vpop.f32.mrf.mxu0 }
 0x24b   : > { %v3919_v34 = vpack.c.bf16 %v1543_v38, %v1541_v56  ;;  %v3920_v53 = vpack.c.bf16 %v1896_v0, %v1894_v49  ;;  %v1547_v6 = vadd.f32 %v1546_v32, %v5223_v48  ;;  %v1900_v31 = vadd.f32 %v1899_v37, %v5226_v29 }
 0x24c   : > { %v1548_v63 = vpop.f32.mrf.mxu1  ;;  %v1901_v40 = vpop.f32.mrf.mxu0 }
 0x24d   : > { %3312 = vst [vmem:[%s4976_s20 + $0x290] sm:$0xff] %v3919_v34  ;;  %3313 = vst [vmem:[%s4976_s20 + $0x298] sm:$0xff] %v3920_v53  ;;  %v1549_v24 = vadd.f32 %v1548_v63, %v5229_v20  ;;  %v1902_v39 = vadd.f32 %v1901_v40, %v5232_v2 }
 0x24e   : > { %v1550_v26 = vpop.f32.mrf.mxu1  ;;  %v1903_v28 = vpop.f32.mrf.mxu0 }
 0x24f   : > { %v3922_v33 = vpack.c.bf16 %v1549_v24, %v1547_v6  ;;  %v3923_v9 = vpack.c.bf16 %v1902_v39, %v1900_v31  ;;  %v1551_v47 = vadd.f32 %v1550_v26, %v5223_v48  ;;  %v1904_v14 = vadd.f32 %v1903_v28, %v5226_v29 }
 0x250   : > { %v1552_v8 = vpop.f32.mrf.mxu1  ;;  %v1905_v59 = vpop.f32.mrf.mxu0 }
 0x251   : > { %3315 = vst [vmem:[%s4976_s20 + $0x2a8] sm:$0xff] %v3922_v33  ;;  %3316 = vst [vmem:[%s4976_s20 + $0x2b0] sm:$0xff] %v3923_v9  ;;  %v1553_v43 = vadd.f32 %v1552_v8, %v5229_v20  ;;  %v1906_v22 = vadd.f32 %v1905_v59, %v5232_v2 }
 0x252   : > { %v1556_v16 = vpop.f32.mrf.mxu1  ;;  %v1909_v62 = vpop.f32.mrf.mxu0 }
 0x253   : > { %v3925_v42 = vpack.c.bf16 %v1553_v43, %v1551_v47  ;;  %v3926_v5 = vpack.c.bf16 %v1906_v22, %v1904_v14  ;;  %v1557_v1 = vadd.f32 %v1556_v16, %v5223_v48  ;;  %v1910_v25 = vadd.f32 %v1909_v62, %v5226_v29 }
 0x254   : > { %v1558_v51 = vpop.f32.mrf.mxu1  ;;  %v1911_v23 = vpop.f32.mrf.mxu0 }
 0x255   : > { %3318 = vst [vmem:[%s4976_s20 + $0x2c0] sm:$0xff] %v3925_v42  ;;  %3319 = vst [vmem:[%s4976_s20 + $0x2c8] sm:$0xff] %v3926_v5  ;;  %v1559_v44 = vadd.f32 %v1558_v51, %v5229_v20  ;;  %v1912_v57 = vadd.f32 %v1911_v23, %v5232_v2 }
 0x256   : > { %v1560_v45 = vpop.f32.mrf.mxu1  ;;  %v1913_v58 = vpop.f32.mrf.mxu0 }
 0x257   : > { %v3928_v54 = vpack.c.bf16 %v1559_v44, %v1557_v1  ;;  %v3929_v7 = vpack.c.bf16 %v1912_v57, %v1910_v25  ;;  %v1561_v61 = vadd.f32 %v1560_v45, %v5223_v48  ;;  %v1914_v55 = vadd.f32 %v1913_v58, %v5226_v29 }
 0x258   : > { %v1562_v3 = vpop.f32.mrf.mxu1  ;;  %v1915_v18 = vpop.f32.mrf.mxu0 }
 0x259   : > { %3321 = vst [vmem:[%s4976_s20 + $0x2d8] sm:$0xff] %v3928_v54  ;;  %3322 = vst [vmem:[%s4976_s20 + $0x2e0] sm:$0xff] %v3929_v7  ;;  %v1563_v19 = vadd.f32 %v1562_v3, %v5229_v20  ;;  %v1916_v15 = vadd.f32 %v1915_v18, %v5232_v2 }
 0x25a   : > { %v1566_v52 = vpop.f32.mrf.mxu1  ;;  %v1919_v11 = vpop.f32.mrf.mxu0 }
 0x25b   : > { %v3931_v4 = vpack.c.bf16 %v1563_v19, %v1561_v61  ;;  %v3932_v46 = vpack.c.bf16 %v1916_v15, %v1914_v55  ;;  %v1567_v17 = vadd.f32 %v1566_v52, %v5223_v48  ;;  %v1920_v30 = vadd.f32 %v1919_v11, %v5226_v29 }
 0x25c   : > { %v1568_v60 = vpop.f32.mrf.mxu1  ;;  %v1921_v50 = vpop.f32.mrf.mxu0 }
 0x25d   : > { %3324 = vst [vmem:[%s4976_s20 + $0x2f0] sm:$0xff] %v3931_v4  ;;  %3325 = vst [vmem:[%s4976_s20 + $0x2f8] sm:$0xff] %v3932_v46  ;;  %v1569_v13 = vadd.f32 %v1568_v60, %v5229_v20  ;;  %v1922_v35 = vadd.f32 %v1921_v50, %v5232_v2 }
 0x25e   : > { %v1570_v10 = vpop.f32.mrf.mxu1  ;;  %v1923_v27 = vpop.f32.mrf.mxu0 }
 0x25f   : > { %v3934_v41 = vpack.c.bf16 %v1569_v13, %v1567_v17  ;;  %v3935_v21 = vpack.c.bf16 %v1922_v35, %v1920_v30  ;;  %v1571_v56 = vadd.f32 %v1570_v10, %v5223_v48  ;;  %v1924_v49 = vadd.f32 %v1923_v27, %v5226_v29 }
 0x260   : > { %v1572_v12 = vpop.f32.mrf.mxu1  ;;  %v1925_v36 = vpop.f32.mrf.mxu0 }
 0x261   : > { %3327 = vst [vmem:[%s4976_s20 + $0x308] sm:$0xff] %v3934_v41  ;;  %3328 = vst [vmem:[%s4976_s20 + $0x310] sm:$0xff] %v3935_v21  ;;  %v1573_v38 = vadd.f32 %v1572_v12, %v5229_v20  ;;  %v1926_v0 = vadd.f32 %v1925_v36, %v5232_v2 }
 0x262   : > { %v1576_v32 = vpop.f32.mrf.mxu1  ;;  %v1929_v37 = vpop.f32.mrf.mxu0 }
 0x263   : > { %v3937_v34 = vpack.c.bf16 %v1573_v38, %v1571_v56  ;;  %v3938_v53 = vpack.c.bf16 %v1926_v0, %v1924_v49  ;;  %v1577_v6 = vadd.f32 %v1576_v32, %v5223_v48  ;;  %v1930_v31 = vadd.f32 %v1929_v37, %v5226_v29 }
 0x264   : > { %v1578_v63 = vpop.f32.mrf.mxu1  ;;  %v1931_v40 = vpop.f32.mrf.mxu0 }
 0x265   : > { %3330 = vst [vmem:[%s4976_s20 + $0x320] sm:$0xff] %v3937_v34  ;;  %3331 = vst [vmem:[%s4976_s20 + $0x328] sm:$0xff] %v3938_v53  ;;  %v1579_v24 = vadd.f32 %v1578_v63, %v5229_v20  ;;  %v1932_v39 = vadd.f32 %v1931_v40, %v5232_v2 }
 0x266   : > { %v1580_v26 = vpop.f32.mrf.mxu1  ;;  %v1933_v28 = vpop.f32.mrf.mxu0 }
 0x267   : > { %v3940_v33 = vpack.c.bf16 %v1579_v24, %v1577_v6  ;;  %v3941_v9 = vpack.c.bf16 %v1932_v39, %v1930_v31  ;;  %v1581_v47 = vadd.f32 %v1580_v26, %v5223_v48  ;;  %v1934_v14 = vadd.f32 %v1933_v28, %v5226_v29 }
 0x268   : > { %v1582_v8 = vpop.f32.mrf.mxu1  ;;  %v1935_v59 = vpop.f32.mrf.mxu0 }
 0x269   : > { %3333 = vst [vmem:[%s4976_s20 + $0x338] sm:$0xff] %v3940_v33  ;;  %3334 = vst [vmem:[%s4976_s20 + $0x340] sm:$0xff] %v3941_v9  ;;  %v1583_v43 = vadd.f32 %v1582_v8, %v5229_v20  ;;  %v1936_v22 = vadd.f32 %v1935_v59, %v5232_v2 }
 0x26a   : > { %v1586_v16 = vpop.f32.mrf.mxu1  ;;  %v1939_v62 = vpop.f32.mrf.mxu0 }
 0x26b   : > { %v3943_v42 = vpack.c.bf16 %v1583_v43, %v1581_v47  ;;  %v3944_v5 = vpack.c.bf16 %v1936_v22, %v1934_v14  ;;  %v1587_v1 = vadd.f32 %v1586_v16, %v5223_v48  ;;  %v1940_v25 = vadd.f32 %v1939_v62, %v5226_v29 }
 0x26c   : > { %v1588_v51 = vpop.f32.mrf.mxu1  ;;  %v1941_v23 = vpop.f32.mrf.mxu0 }
 0x26d   : > { %3336 = vst [vmem:[%s4976_s20 + $0x350] sm:$0xff] %v3943_v42  ;;  %3337 = vst [vmem:[%s4976_s20 + $0x358] sm:$0xff] %v3944_v5  ;;  %v1589_v44 = vadd.f32 %v1588_v51, %v5229_v20  ;;  %v1942_v57 = vadd.f32 %v1941_v23, %v5232_v2 }
 0x26e   : > { %v1590_v45 = vpop.f32.mrf.mxu1  ;;  %v1943_v58 = vpop.f32.mrf.mxu0 }
 0x26f   : > { %v3946_v54 = vpack.c.bf16 %v1589_v44, %v1587_v1  ;;  %v3947_v7 = vpack.c.bf16 %v1942_v57, %v1940_v25  ;;  %v1591_v61 = vadd.f32 %v1590_v45, %v5223_v48  ;;  %v1944_v55 = vadd.f32 %v1943_v58, %v5226_v29 }
 0x270   : > { %v1592_v3 = vpop.f32.mrf.mxu1  ;;  %v1945_v18 = vpop.f32.mrf.mxu0 }
 0x271   : > { %3339 = vst [vmem:[%s4976_s20 + $0x368] sm:$0xff] %v3946_v54  ;;  %3340 = vst [vmem:[%s4976_s20 + $0x370] sm:$0xff] %v3947_v7  ;;  %v1593_v19 = vadd.f32 %v1592_v3, %v5229_v20  ;;  %v1946_v15 = vadd.f32 %v1945_v18, %v5232_v2 }
 0x272   : > { %v1596_v52 = vpop.f32.mrf.mxu1  ;;  %v1949_v11 = vpop.f32.mrf.mxu0 }
 0x273   : > { %v3949_v4 = vpack.c.bf16 %v1593_v19, %v1591_v61  ;;  %v3950_v46 = vpack.c.bf16 %v1946_v15, %v1944_v55  ;;  %v1597_v17 = vadd.f32 %v1596_v52, %v5223_v48  ;;  %v1950_v30 = vadd.f32 %v1949_v11, %v5226_v29 }
 0x274   : > { %v1598_v60 = vpop.f32.mrf.mxu1  ;;  %v1951_v50 = vpop.f32.mrf.mxu0 }
 0x275   : > { %3342 = vst [vmem:[%s4976_s20 + $0x380] sm:$0xff] %v3949_v4  ;;  %3343 = vst [vmem:[%s4976_s20 + $0x388] sm:$0xff] %v3950_v46  ;;  %v1599_v13 = vadd.f32 %v1598_v60, %v5229_v20  ;;  %v1952_v35 = vadd.f32 %v1951_v50, %v5232_v2 }
 0x276   : > { %v1600_v10 = vpop.f32.mrf.mxu1  ;;  %v1953_v27 = vpop.f32.mrf.mxu0 }
 0x277   : > { %v3952_v41 = vpack.c.bf16 %v1599_v13, %v1597_v17  ;;  %v3953_v21 = vpack.c.bf16 %v1952_v35, %v1950_v30  ;;  %v1601_v56 = vadd.f32 %v1600_v10, %v5223_v48  ;;  %v1954_v49 = vadd.f32 %v1953_v27, %v5226_v29 }
 0x278   : > { %v1602_v12 = vpop.f32.mrf.mxu1  ;;  %v1955_v36 = vpop.f32.mrf.mxu0 }
 0x279   : > { %3345 = vst [vmem:[%s4976_s20 + $0x398] sm:$0xff] %v3952_v41  ;;  %3346 = vst [vmem:[%s4976_s20 + $0x3a0] sm:$0xff] %v3953_v21  ;;  %v1603_v38 = vadd.f32 %v1602_v12, %v5229_v20  ;;  %v1956_v0 = vadd.f32 %v1955_v36, %v5232_v2 }
 0x27a   : > { %v1606_v32 = vpop.f32.mrf.mxu1  ;;  %v1959_v37 = vpop.f32.mrf.mxu0 }
 0x27b   : > { %v3955_v34 = vpack.c.bf16 %v1603_v38, %v1601_v56  ;;  %v3956_v53 = vpack.c.bf16 %v1956_v0, %v1954_v49  ;;  %v1607_v6 = vadd.f32 %v1606_v32, %v5223_v48  ;;  %v1960_v31 = vadd.f32 %v1959_v37, %v5226_v29 }
 0x27c   : > { %v1608_v63 = vpop.f32.mrf.mxu1  ;;  %v1961_v40 = vpop.f32.mrf.mxu0 }
 0x27d   : > { %3348 = vst [vmem:[%s4976_s20 + $0x3b0] sm:$0xff] %v3955_v34  ;;  %3349 = vst [vmem:[%s4976_s20 + $0x3b8] sm:$0xff] %v3956_v53  ;;  %v1609_v24 = vadd.f32 %v1608_v63, %v5229_v20  ;;  %v1962_v39 = vadd.f32 %v1961_v40, %v5232_v2 }
 0x27e   : > { %v1610_v26 = vpop.f32.mrf.mxu1  ;;  %v1963_v28 = vpop.f32.mrf.mxu0 }
 0x27f   : > { %v3958_v33 = vpack.c.bf16 %v1609_v24, %v1607_v6  ;;  %v3959_v9 = vpack.c.bf16 %v1962_v39, %v1960_v31  ;;  %v1611_v47 = vadd.f32 %v1610_v26, %v5223_v48  ;;  %v1964_v14 = vadd.f32 %v1963_v28, %v5226_v29 }
 0x280   : > { %v1612_v8 = vpop.f32.mrf.mxu1  ;;  %v1965_v59 = vpop.f32.mrf.mxu0 }
 0x281   : > { %3351 = vst [vmem:[%s4976_s20 + $0x3c8] sm:$0xff] %v3958_v33  ;;  %3352 = vst [vmem:[%s4976_s20 + $0x3d0] sm:$0xff] %v3959_v9  ;;  %v1613_v43 = vadd.f32 %v1612_v8, %v5229_v20  ;;  %v1966_v22 = vadd.f32 %v1965_v59, %v5232_v2 }
 0x282   : > { %v1616_v16 = vpop.f32.mrf.mxu1  ;;  %v1969_v62 = vpop.f32.mrf.mxu0 }
 0x283   : > { %v3961_v42 = vpack.c.bf16 %v1613_v43, %v1611_v47  ;;  %v3962_v5 = vpack.c.bf16 %v1966_v22, %v1964_v14  ;;  %v1617_v1 = vadd.f32 %v1616_v16, %v5223_v48  ;;  %v1970_v25 = vadd.f32 %v1969_v62, %v5226_v29 }
 0x284   : > { %v1618_v51 = vpop.f32.mrf.mxu1  ;;  %v1971_v23 = vpop.f32.mrf.mxu0 }
 0x285   : > { %3354 = vst [vmem:[%s4976_s20 + $0x3e0] sm:$0xff] %v3961_v42  ;;  %3355 = vst [vmem:[%s4976_s20 + $0x3e8] sm:$0xff] %v3962_v5  ;;  %v1619_v44 = vadd.f32 %v1618_v51, %v5229_v20  ;;  %v1972_v57 = vadd.f32 %v1971_v23, %v5232_v2 }
 0x286   : > { %v1620_v45 = vpop.f32.mrf.mxu1  ;;  %v1973_v58 = vpop.f32.mrf.mxu0 }
 0x287   : > { %v3964_v54 = vpack.c.bf16 %v1619_v44, %v1617_v1  ;;  %v3965_v7 = vpack.c.bf16 %v1972_v57, %v1970_v25  ;;  %v1621_v61 = vadd.f32 %v1620_v45, %v5223_v48  ;;  %v1974_v55 = vadd.f32 %v1973_v58, %v5226_v29 }
 0x288   : > { %v1622_v3 = vpop.f32.mrf.mxu1  ;;  %v1975_v18 = vpop.f32.mrf.mxu0 }
 0x289   : > { %3357 = vst [vmem:[%s4976_s20 + $0x3f8] sm:$0xff] %v3964_v54  ;;  %3358 = vst [vmem:[%s4976_s20 + $0x400] sm:$0xff] %v3965_v7  ;;  %v1623_v19 = vadd.f32 %v1622_v3, %v5229_v20  ;;  %v1976_v15 = vadd.f32 %v1975_v18, %v5232_v2 }
 0x28a   : > { %v1626_v52 = vpop.f32.mrf.mxu1  ;;  %v1979_v11 = vpop.f32.mrf.mxu0 }
 0x28b   : > { %v3967_v4 = vpack.c.bf16 %v1623_v19, %v1621_v61  ;;  %v3968_v46 = vpack.c.bf16 %v1976_v15, %v1974_v55  ;;  %v1627_v17 = vadd.f32 %v1626_v52, %v5223_v48  ;;  %v1980_v30 = vadd.f32 %v1979_v11, %v5226_v29 }
 0x28c   : > { %v1628_v60 = vpop.f32.mrf.mxu1  ;;  %v1981_v50 = vpop.f32.mrf.mxu0 }
 0x28d   : > { %3360 = vst [vmem:[%s4976_s20 + $0x410] sm:$0xff] %v3967_v4  ;;  %3361 = vst [vmem:[%s4976_s20 + $0x418] sm:$0xff] %v3968_v46  ;;  %v1629_v13 = vadd.f32 %v1628_v60, %v5229_v20  ;;  %v1982_v35 = vadd.f32 %v1981_v50, %v5232_v2 }
 0x28e   : > { %v1630_v10 = vpop.f32.mrf.mxu1  ;;  %v1983_v27 = vpop.f32.mrf.mxu0 }
 0x28f   : > { %v3970_v41 = vpack.c.bf16 %v1629_v13, %v1627_v17  ;;  %v3971_v21 = vpack.c.bf16 %v1982_v35, %v1980_v30  ;;  %v1631_v56 = vadd.f32 %v1630_v10, %v5223_v48  ;;  %v1984_v49 = vadd.f32 %v1983_v27, %v5226_v29 }
 0x290   : > { %v1632_v12 = vpop.f32.mrf.mxu1  ;;  %v1985_v36 = vpop.f32.mrf.mxu0 }
 0x291   : > { %3363 = vst [vmem:[%s4976_s20 + $0x428] sm:$0xff] %v3970_v41  ;;  %3364 = vst [vmem:[%s4976_s20 + $0x430] sm:$0xff] %v3971_v21  ;;  %v1633_v38 = vadd.f32 %v1632_v12, %v5229_v20  ;;  %v1986_v0 = vadd.f32 %v1985_v36, %v5232_v2 }
 0x292   : > { %v1636_v32 = vpop.f32.mrf.mxu1  ;;  %v1989_v37 = vpop.f32.mrf.mxu0 }
 0x293   : > { %v3973_v34 = vpack.c.bf16 %v1633_v38, %v1631_v56  ;;  %v3974_v53 = vpack.c.bf16 %v1986_v0, %v1984_v49  ;;  %v1637_v6 = vadd.f32 %v1636_v32, %v5223_v48  ;;  %v1990_v31 = vadd.f32 %v1989_v37, %v5226_v29 }
 0x294   : > { %v1638_v63 = vpop.f32.mrf.mxu1  ;;  %v1991_v40 = vpop.f32.mrf.mxu0 }
 0x295   : > { %3366 = vst [vmem:[%s4976_s20 + $0x440] sm:$0xff] %v3973_v34  ;;  %3367 = vst [vmem:[%s4976_s20 + $0x448] sm:$0xff] %v3974_v53  ;;  %v1639_v24 = vadd.f32 %v1638_v63, %v5229_v20  ;;  %v1992_v39 = vadd.f32 %v1991_v40, %v5232_v2 }
 0x296   : > { %v1640_v26 = vpop.f32.mrf.mxu1  ;;  %v1993_v28 = vpop.f32.mrf.mxu0 }
 0x297   : > { %v3976_v33 = vpack.c.bf16 %v1639_v24, %v1637_v6  ;;  %v3977_v9 = vpack.c.bf16 %v1992_v39, %v1990_v31  ;;  %v1641_v47 = vadd.f32 %v1640_v26, %v5223_v48  ;;  %v1994_v14 = vadd.f32 %v1993_v28, %v5226_v29 }
 0x298   : > { %v1642_v8 = vpop.f32.mrf.mxu1  ;;  %v1995_v59 = vpop.f32.mrf.mxu0 }
 0x299   : > { %3369 = vst [vmem:[%s4976_s20 + $0x458] sm:$0xff] %v3976_v33  ;;  %3370 = vst [vmem:[%s4976_s20 + $0x460] sm:$0xff] %v3977_v9  ;;  %v1643_v43 = vadd.f32 %v1642_v8, %v5229_v20  ;;  %v1996_v22 = vadd.f32 %v1995_v59, %v5232_v2 }
 0x29a   : > { %v1646_v16 = vpop.f32.mrf.mxu1  ;;  %v1999_v62 = vpop.f32.mrf.mxu0 }
 0x29b   : > { %v3979_v42 = vpack.c.bf16 %v1643_v43, %v1641_v47  ;;  %v3980_v5 = vpack.c.bf16 %v1996_v22, %v1994_v14  ;;  %v1647_v1 = vadd.f32 %v1646_v16, %v5223_v48  ;;  %v2000_v25 = vadd.f32 %v1999_v62, %v5226_v29 }
 0x29c   : > { %v1648_v51 = vpop.f32.mrf.mxu1  ;;  %v2001_v23 = vpop.f32.mrf.mxu0 }
 0x29d   : > { %3372 = vst [vmem:[%s4976_s20 + $0x470] sm:$0xff] %v3979_v42  ;;  %3373 = vst [vmem:[%s4976_s20 + $0x478] sm:$0xff] %v3980_v5  ;;  %v1649_v44 = vadd.f32 %v1648_v51, %v5229_v20  ;;  %v2002_v57 = vadd.f32 %v2001_v23, %v5232_v2 }
 0x29e   : > { %v1650_v45 = vpop.f32.mrf.mxu1  ;;  %v2003_v58 = vpop.f32.mrf.mxu0 }
 0x29f   : > { %v3982_v54 = vpack.c.bf16 %v1649_v44, %v1647_v1  ;;  %v3983_v7 = vpack.c.bf16 %v2002_v57, %v2000_v25  ;;  %v1651_v61 = vadd.f32 %v1650_v45, %v5223_v48  ;;  %v2004_v55 = vadd.f32 %v2003_v58, %v5226_v29 }
 0x2a0   : > { %v1652_v3 = vpop.f32.mrf.mxu1  ;;  %v2005_v18 = vpop.f32.mrf.mxu0 }
 0x2a1   : > { %3375 = vst [vmem:[%s4976_s20 + $0x488] sm:$0xff] %v3982_v54  ;;  %3376 = vst [vmem:[%s4976_s20 + $0x490] sm:$0xff] %v3983_v7  ;;  %v1653_v19 = vadd.f32 %v1652_v3, %v5229_v20  ;;  %v2006_v15 = vadd.f32 %v2005_v18, %v5232_v2 }
 0x2a2   : > { %v1656_v52 = vpop.f32.mrf.mxu1  ;;  %v2009_v11 = vpop.f32.mrf.mxu0 }
 0x2a3   : > { %v3985_v4 = vpack.c.bf16 %v1653_v19, %v1651_v61  ;;  %v3986_v46 = vpack.c.bf16 %v2006_v15, %v2004_v55  ;;  %v1657_v17 = vadd.f32 %v1656_v52, %v5223_v48  ;;  %v2010_v30 = vadd.f32 %v2009_v11, %v5226_v29 }
 0x2a4   : > { %v1658_v60 = vpop.f32.mrf.mxu1  ;;  %v2011_v50 = vpop.f32.mrf.mxu0 }
 0x2a5   : > { %3378 = vst [vmem:[%s4976_s20 + $0x4a0] sm:$0xff] %v3985_v4  ;;  %3379 = vst [vmem:[%s4976_s20 + $0x4a8] sm:$0xff] %v3986_v46  ;;  %v1659_v13 = vadd.f32 %v1658_v60, %v5229_v20  ;;  %v2012_v35 = vadd.f32 %v2011_v50, %v5232_v2 }
 0x2a6   : > { %v1660_v10 = vpop.f32.mrf.mxu1  ;;  %v2013_v27 = vpop.f32.mrf.mxu0 }
 0x2a7   : > { %v3988_v41 = vpack.c.bf16 %v1659_v13, %v1657_v17  ;;  %v3989_v21 = vpack.c.bf16 %v2012_v35, %v2010_v30  ;;  %v1661_v56 = vadd.f32 %v1660_v10, %v5223_v48  ;;  %v2014_v49 = vadd.f32 %v2013_v27, %v5226_v29 }
 0x2a8   : > { %v1662_v12 = vpop.f32.mrf.mxu1  ;;  %v2015_v36 = vpop.f32.mrf.mxu0 }
 0x2a9   : > { %3381 = vst [vmem:[%s4976_s20 + $0x4b8] sm:$0xff] %v3988_v41  ;;  %3382 = vst [vmem:[%s4976_s20 + $0x4c0] sm:$0xff] %v3989_v21  ;;  %v1663_v38 = vadd.f32 %v1662_v12, %v5229_v20  ;;  %v2016_v0 = vadd.f32 %v2015_v36, %v5232_v2 }
 0x2aa   : > { %v1666_v32 = vpop.f32.mrf.mxu1  ;;  %v2019_v37 = vpop.f32.mrf.mxu0 }
 0x2ab   : > { %v3991_v34 = vpack.c.bf16 %v1663_v38, %v1661_v56  ;;  %v3992_v53 = vpack.c.bf16 %v2016_v0, %v2014_v49  ;;  %v1667_v6 = vadd.f32 %v1666_v32, %v5223_v48  ;;  %v2020_v31 = vadd.f32 %v2019_v37, %v5226_v29 }
 0x2ac   : > { %v1668_v63 = vpop.f32.mrf.mxu1  ;;  %v2021_v40 = vpop.f32.mrf.mxu0 }
 0x2ad   : > { %3384 = vst [vmem:[%s4976_s20 + $0x4d0] sm:$0xff] %v3991_v34  ;;  %3385 = vst [vmem:[%s4976_s20 + $0x4d8] sm:$0xff] %v3992_v53  ;;  %v1669_v24 = vadd.f32 %v1668_v63, %v5229_v20  ;;  %v2022_v39 = vadd.f32 %v2021_v40, %v5232_v2 }
 0x2ae   : > { %v1670_v26 = vpop.f32.mrf.mxu1  ;;  %v2023_v28 = vpop.f32.mrf.mxu0 }
 0x2af   : > { %v3994_v33 = vpack.c.bf16 %v1669_v24, %v1667_v6  ;;  %v3995_v9 = vpack.c.bf16 %v2022_v39, %v2020_v31  ;;  %v1671_v47 = vadd.f32 %v1670_v26, %v5223_v48  ;;  %v2024_v14 = vadd.f32 %v2023_v28, %v5226_v29 }
 0x2b0   : > { %v1672_v8 = vpop.f32.mrf.mxu1  ;;  %v2025_v59 = vpop.f32.mrf.mxu0 }
 0x2b1   : > { %3387 = vst [vmem:[%s4976_s20 + $0x4e8] sm:$0xff] %v3994_v33  ;;  %3388 = vst [vmem:[%s4976_s20 + $0x4f0] sm:$0xff] %v3995_v9  ;;  %v1673_v43 = vadd.f32 %v1672_v8, %v5229_v20  ;;  %v2026_v22 = vadd.f32 %v2025_v59, %v5232_v2 }
 0x2b2   : > { %v1676_v16 = vpop.f32.mrf.mxu1  ;;  %v2029_v62 = vpop.f32.mrf.mxu0 }
 0x2b3   : > { %v3997_v42 = vpack.c.bf16 %v1673_v43, %v1671_v47  ;;  %v3998_v5 = vpack.c.bf16 %v2026_v22, %v2024_v14  ;;  %v1677_v1 = vadd.f32 %v1676_v16, %v5223_v48  ;;  %v2030_v25 = vadd.f32 %v2029_v62, %v5226_v29 }
 0x2b4   : > { %v1678_v51 = vpop.f32.mrf.mxu1  ;;  %v2031_v23 = vpop.f32.mrf.mxu0 }
 0x2b5   : > { %3390 = vst [vmem:[%s4976_s20 + $0x500] sm:$0xff] %v3997_v42  ;;  %3391 = vst [vmem:[%s4976_s20 + $0x508] sm:$0xff] %v3998_v5  ;;  %v1679_v44 = vadd.f32 %v1678_v51, %v5229_v20  ;;  %v2032_v57 = vadd.f32 %v2031_v23, %v5232_v2 }
 0x2b6   : > { %v1680_v45 = vpop.f32.mrf.mxu1  ;;  %v2033_v58 = vpop.f32.mrf.mxu0 }
 0x2b7   : > { %v4000_v54 = vpack.c.bf16 %v1679_v44, %v1677_v1  ;;  %v4001_v7 = vpack.c.bf16 %v2032_v57, %v2030_v25  ;;  %v1681_v61 = vadd.f32 %v1680_v45, %v5223_v48  ;;  %v2034_v55 = vadd.f32 %v2033_v58, %v5226_v29 }
 0x2b8   : > { %v1682_v3 = vpop.f32.mrf.mxu1  ;;  %v2035_v18 = vpop.f32.mrf.mxu0 }
 0x2b9   : > { %3393 = vst [vmem:[%s4976_s20 + $0x518] sm:$0xff] %v4000_v54  ;;  %3394 = vst [vmem:[%s4976_s20 + $0x520] sm:$0xff] %v4001_v7  ;;  %v1683_v19 = vadd.f32 %v1682_v3, %v5229_v20  ;;  %v2036_v15 = vadd.f32 %v2035_v18, %v5232_v2 }
 0x2ba   : > { %v1686_v52 = vpop.f32.mrf.mxu1  ;;  %v2039_v11 = vpop.f32.mrf.mxu0 }
 0x2bb   : > { %v4003_v4 = vpack.c.bf16 %v1683_v19, %v1681_v61  ;;  %v4004_v46 = vpack.c.bf16 %v2036_v15, %v2034_v55  ;;  %v1687_v17 = vadd.f32 %v1686_v52, %v5223_v48  ;;  %v2040_v30 = vadd.f32 %v2039_v11, %v5226_v29 }
 0x2bc   : > { %v1688_v60 = vpop.f32.mrf.mxu1  ;;  %v2041_v50 = vpop.f32.mrf.mxu0 }
 0x2bd   : > { %3396 = vst [vmem:[%s4976_s20 + $0x530] sm:$0xff] %v4003_v4  ;;  %3397 = vst [vmem:[%s4976_s20 + $0x538] sm:$0xff] %v4004_v46  ;;  %v1689_v13 = vadd.f32 %v1688_v60, %v5229_v20  ;;  %v2042_v35 = vadd.f32 %v2041_v50, %v5232_v2 }
 0x2be   : > { %v1690_v10 = vpop.f32.mrf.mxu1  ;;  %v2043_v27 = vpop.f32.mrf.mxu0 }
 0x2bf   : > { %v4006_v41 = vpack.c.bf16 %v1689_v13, %v1687_v17  ;;  %v4007_v21 = vpack.c.bf16 %v2042_v35, %v2040_v30  ;;  %v1691_v56 = vadd.f32 %v1690_v10, %v5223_v48  ;;  %v2044_v49 = vadd.f32 %v2043_v27, %v5226_v29 }
 0x2c0   : > { %v1692_v12 = vpop.f32.mrf.mxu1  ;;  %v2045_v36 = vpop.f32.mrf.mxu0 }
 0x2c1   : > { %3399 = vst [vmem:[%s4976_s20 + $0x548] sm:$0xff] %v4006_v41  ;;  %3400 = vst [vmem:[%s4976_s20 + $0x550] sm:$0xff] %v4007_v21  ;;  %v1693_v38 = vadd.f32 %v1692_v12, %v5229_v20  ;;  %v2046_v0 = vadd.f32 %v2045_v36, %v5232_v2 }
 0x2c2   : > { %v1696_v32 = vpop.f32.mrf.mxu1  ;;  %v2049_v37 = vpop.f32.mrf.mxu0 }
 0x2c3   : > { %v4009_v34 = vpack.c.bf16 %v1693_v38, %v1691_v56  ;;  %v4010_v53 = vpack.c.bf16 %v2046_v0, %v2044_v49  ;;  %v1697_v6 = vadd.f32 %v1696_v32, %v5223_v48  ;;  %v2050_v31 = vadd.f32 %v2049_v37, %v5226_v29 }
 0x2c4   : > { %v1698_v63 = vpop.f32.mrf.mxu1  ;;  %v2051_v40 = vpop.f32.mrf.mxu0 }
 0x2c5   : > { %3402 = vst [vmem:[%s4976_s20 + $0x560] sm:$0xff] %v4009_v34  ;;  %3403 = vst [vmem:[%s4976_s20 + $0x568] sm:$0xff] %v4010_v53  ;;  %v1699_v24 = vadd.f32 %v1698_v63, %v5229_v20  ;;  %v2052_v39 = vadd.f32 %v2051_v40, %v5232_v2 }
 0x2c6   : > { %v1700_v26 = vpop.f32.mrf.mxu1  ;;  %v2053_v28 = vpop.f32.mrf.mxu0 }
 0x2c7   : > { %v4012_v33 = vpack.c.bf16 %v1699_v24, %v1697_v6  ;;  %v4013_v9 = vpack.c.bf16 %v2052_v39, %v2050_v31  ;;  %v1701_v47 = vadd.f32 %v1700_v26, %v5223_v48  ;;  %v2054_v14 = vadd.f32 %v2053_v28, %v5226_v29 }
 0x2c8   : > { %v1702_v8 = vpop.f32.mrf.mxu1  ;;  %v2055_v59 = vpop.f32.mrf.mxu0 }
 0x2c9   : > { %3405 = vst [vmem:[%s4976_s20 + $0x578] sm:$0xff] %v4012_v33  ;;  %3406 = vst [vmem:[%s4976_s20 + $0x580] sm:$0xff] %v4013_v9  ;;  %v1703_v43 = vadd.f32 %v1702_v8, %v5229_v20  ;;  %v2056_v22 = vadd.f32 %v2055_v59, %v5232_v2 }
 0x2ca   : > { %v1706_v16 = vpop.f32.mrf.mxu1  ;;  %v2059_v62 = vpop.f32.mrf.mxu0 }
 0x2cb   : > { %v4015_v42 = vpack.c.bf16 %v1703_v43, %v1701_v47  ;;  %v4016_v5 = vpack.c.bf16 %v2056_v22, %v2054_v14  ;;  %v1707_v1 = vadd.f32 %v1706_v16, %v5223_v48  ;;  %v2060_v25 = vadd.f32 %v2059_v62, %v5226_v29 }
 0x2cc   : > { %v1708_v51 = vpop.f32.mrf.mxu1  ;;  %v2061_v23 = vpop.f32.mrf.mxu0 }
 0x2cd   : > { %3408 = vst [vmem:[%s4976_s20 + $0x590] sm:$0xff] %v4015_v42  ;;  %3409 = vst [vmem:[%s4976_s20 + $0x598] sm:$0xff] %v4016_v5  ;;  %v1709_v44 = vadd.f32 %v1708_v51, %v5229_v20  ;;  %v2062_v57 = vadd.f32 %v2061_v23, %v5232_v2 }
 0x2ce   : > { %v1710_v45 = vpop.f32.mrf.mxu1  ;;  %v2063_v58 = vpop.f32.mrf.mxu0 }
 0x2cf   : > { %v4018_v54 = vpack.c.bf16 %v1709_v44, %v1707_v1  ;;  %v4019_v7 = vpack.c.bf16 %v2062_v57, %v2060_v25  ;;  %v1711_v61 = vadd.f32 %v1710_v45, %v5223_v48  ;;  %v2064_v55 = vadd.f32 %v2063_v58, %v5226_v29 }
 0x2d0   : > { %v1712_v3 = vpop.f32.mrf.mxu1  ;;  %v2065_v18 = vpop.f32.mrf.mxu0 }
 0x2d1   : > { %3411 = vst [vmem:[%s4976_s20 + $0x5a8] sm:$0xff] %v4018_v54  ;;  %3412 = vst [vmem:[%s4976_s20 + $0x5b0] sm:$0xff] %v4019_v7  ;;  %v1713_v19 = vadd.f32 %v1712_v3, %v5229_v20  ;;  %v2066_v15 = vadd.f32 %v2065_v18, %v5232_v2 }
 0x2d2   : > { %v1716_v52 = vpop.f32.mrf.mxu1  ;;  %v2069_v11 = vpop.f32.mrf.mxu0 }
 0x2d3   : > { %v4021_v4 = vpack.c.bf16 %v1713_v19, %v1711_v61  ;;  %v4022_v46 = vpack.c.bf16 %v2066_v15, %v2064_v55  ;;  %v1717_v17 = vadd.f32 %v1716_v52, %v5223_v48  ;;  %v2070_v30 = vadd.f32 %v2069_v11, %v5226_v29 }
 0x2d4   : > { %v1718_v60 = vpop.f32.mrf.mxu1  ;;  %v2071_v50 = vpop.f32.mrf.mxu0 }
 0x2d5   : > { %3414 = vst [vmem:[%s4976_s20 + $0x5c0] sm:$0xff] %v4021_v4  ;;  %3415 = vst [vmem:[%s4976_s20 + $0x5c8] sm:$0xff] %v4022_v46  ;;  %v1719_v13 = vadd.f32 %v1718_v60, %v5229_v20  ;;  %v2072_v35 = vadd.f32 %v2071_v50, %v5232_v2 }
 0x2d6   : > { %v1720_v10 = vpop.f32.mrf.mxu1  ;;  %v2073_v27 = vpop.f32.mrf.mxu0 }
 0x2d7   : > { %v4024_v41 = vpack.c.bf16 %v1719_v13, %v1717_v17  ;;  %v4025_v21 = vpack.c.bf16 %v2072_v35, %v2070_v30  ;;  %v1721_v56 = vadd.f32 %v1720_v10, %v5223_v48  ;;  %v2074_v49 = vadd.f32 %v2073_v27, %v5226_v29 }
 0x2d8   : > { %v1722_v12 = vpop.f32.mrf.mxu1  ;;  %v2075_v36 = vpop.f32.mrf.mxu0 }
 0x2d9   : > { %3417 = vst [vmem:[%s4976_s20 + $0x5d8] sm:$0xff] %v4024_v41  ;;  %3418 = vst [vmem:[%s4976_s20 + $0x5e0] sm:$0xff] %v4025_v21  ;;  %v1723_v38 = vadd.f32 %v1722_v12, %v5229_v20  ;;  %v2076_v0 = vadd.f32 %v2075_v36, %v5232_v2 }
 0x2db   : > { %v4027_v32 = vpack.c.bf16 %v1723_v38, %v1721_v56  ;;  %v4028_v37 = vpack.c.bf16 %v2076_v0, %v2074_v49 }
 0x2dd   : > { %3420 = vst [vmem:[%s4976_s20 + $0x5f0] sm:$0xff] %v4027_v32  ;;  %3421 = vst [vmem:[%s4976_s20 + $0x5f8] sm:$0xff] %v4028_v37 }
 0x2de   : > { %4373 = shalt.err (!%p4370_p9)
}
 0x2df   : > { %s4374_s23 = scalar_lea.hbm %s5659_s29, 24576  ;;  %s4378_s4 = scalar_lea.hbm %s5709_s3, 49152 }
 0x2e0   : > { %p4375_p13 = scmp.ne.s32.totalorder %s5659_s29, %s4374_s23  ;;  %p4379_p4 = scmp.lt.s32.totalorder %s5659_s29, %s5709_s3 }
 0x2e1   : > { %p4380_p8 = scmp.lt.s32.totalorder %s4378_s4, %s4374_s23 }
 0x2e2   : > { %p4376_p5 = pnand %p4375_p13, %p5765_p10 }
 0x2e3   : > { %p4381_p3 = por %p4380_p8, %p4379_p4 }
 0x2e4   : > { %p4377_p0 = pneg %p4376_p5 }
 0x2e6   : > { %p4382_p11 = pnand %p4381_p3, %p4377_p0 }
 0x2e8   : > { %4385 = shalt.err (!%p4382_p11)
}
 0x2e9   : > { %s4438_s18 = smov 384   ;;  %s4439_s20 = smov 24  }
 0x2ea   : > { %4073 = dma.vmem_to_hbm [thread:$0]  (%p5765_p10), %s5661_s27, 24576, %s5659_s29, %s3423_s8, %s4438_s18, %s4438_s18, %s4439_s20  }
 0x2eb PF: > { %s3452_s25 = sand.u32 1, %s4416_s12   ;;  %p5766_p1 = scmp.ne.s32.totalorder %s5735_s19, 0 }
 0x2ec   : > { %p5767_p2 = scmp.ge.s32.totalorder %s4428_s15, 2  ;;  %s3453_s16 = scalar_lea.sflag [#allocation4], %s3452_s25 }
 0x2ee   : > { %p4087_p6 = pnand %p5767_p2, %p5766_p1 }
 0x2f0   : > { %p4088_p12 = pneg %p4087_p6 }
 0x2f2   : > { %4411 = dma.done.wait (%p4088_p12), %s3453_s16, 24576  }
 0x2f3   : > { %4413 = vsyncadd (%p4088_p12), %s3453_s16, 4294942720  ;;  %p17_p7 = scmp.ge.s32.totalorder %s4532_s7, 4   ;;  %s5768_s12 = smov %s4420_s13 }
 0x2f4   : > { %s5769_s13 = smov %s4424_s14  ;;  %s5770_s14 = smov %s4548_s11 }
 0x2f5   : > { %s5771_s15 = smov %s4532_s7  ;;  %19 = sbr.rel (!%p17_p7) target bundleno = 6 (0x6), region = 85 }
 0x2fa   :  { %3458 = vsyncpa [#allocation3], 1 }
 0x2fb   :  { %3460 = vsyncpa [#allocation3 + $0x1], 1 }
 0x2fc   :  { %3461 = vsyncpa [#allocation6], 1 }
 0x2fd   :  { %3462 = vsyncpa [#allocation4], 1 }
 0x2fe   :  { %3464 = vsyncpa [#allocation4 + $0x1], 1 }

</bundles_post_ra>
